<compile_context>
chip_gen: v6e
topology: v6e:2x2x1
jax: 0.10.0
libtpu: 0.0.40
codegen_flags: <defaults>
</compile_context>

<pallas_src>
import math

import jax
import jax.numpy as jnp
from jax.experimental import pallas as pl
from jax.experimental.pallas import tpu as pltpu  # noqa: F401  (TPU backend parity)

# ----------------------------- config -----------------------------
PAD_IDX = 0
SRC_VOCAB = 32
TGT_VOCAB = 32
D_MODEL = 32
N_HEADS = 4
D_HEAD = D_MODEL // N_HEADS
D_FF = 64
N_LAYERS = 2
MAX_LEN = 32
EPS = 1e-5
NEG = -1e9

B = 2
L_SRC = 8
L_TGT = 8
BL = B * L_SRC            # folded batch*seq rows (design assumes L_SRC == L_TGT)
GEN_PAD = 128             # generator logits padded to a full 128-lane tile

# ---------------- packed-weight layout (shared by packer and kernel) ----------------
ENC_W_SLOTS = 3           # per encoder layer: wqkv | wo | w1         (each in a 128-lane slot)
DEC_W_SLOTS = 5           # per decoder layer: s_wqkv | s_wo | c_wqkv | c_wo | w1
GEN_W_SLOT = ENC_W_SLOTS * N_LAYERS + DEC_W_SLOTS * N_LAYERS          # = 16
N_W_SLOTS = GEN_W_SLOT + 1                                            # = 17

ENC_V_ROWS = 8            # bqkv, bo, ln1g, ln1b, b1, b2, ln2g, ln2b
DEC_V_ROWS = 12           # s_bqkv, s_bo, ln1g, ln1b, c_bqkv, c_bo, ln2g, ln2b, b1, b2, ln3g, ln3b
GEN_B_ROW = ENC_V_ROWS * N_LAYERS + DEC_V_ROWS * N_LAYERS             # = 40
N_V_ROWS = GEN_B_ROW + 1                                              # = 41


# ----------------------------- the fused Pallas kernel -----------------------------
def _transformer_kernel(src_ref, tgt_ref, masks_ref, wa_ref, wb_ref, vec_ref,
                        logp_ref, attn_ref):
    """Whole encoder-decoder-generator forward in one Pallas invocation.

    Activations are lane-dense (B*L, D_MODEL) tiles (batch folded into the sublane axis).
    Heads are folded into the sublane axis of the attention score/context matrices via a
    static head-block-diagonal selector mask, so every MHA is 4-5 MXU matmuls total.
    """
    scale = 1.0 / math.sqrt(D_HEAD)

    masks = masks_ref[...]                       # (N_HEADS*BL, 3*BL + D_MODEL)
    enc_mask = masks[:, 0 * BL:1 * BL]           # additive, head-tiled, block-diag over batch
    self_mask = masks[:, 1 * BL:2 * BL]
    cross_mask = masks[:, 2 * BL:3 * BL]
    hm = masks[:, 3 * BL:3 * BL + D_MODEL]       # head selector: 1 where column-dim belongs to row's head

    def vrow(i, width):
        return vec_ref[i:i + 1, :width]          # (1, width) bias / LN vector

    def layer_norm(x, g, b):
        mu = jnp.mean(x, axis=-1, keepdims=True)
        xc = x - mu
        var = jnp.mean(xc * xc, axis=-1, keepdims=True)
        return xc * jax.lax.rsqrt(var + EPS) * g + b

    def ffn(x, w1, b1, w2, b2):
        h = jnp.maximum(jnp.dot(x, w1, preferred_element_type=jnp.float32) + b1, 0.0)
        return jnp.dot(h, w2, preferred_element_type=jnp.float32) + b2

    def mha(x_q, x_kv, wqkv, bqkv, wo, bo, mask_big, fused):
        # ---- projections ----
        if fused:                                # self-attention: one (16,32)x(32,96) matmul
            qkv = jnp.dot(x_q, wqkv, preferred_element_type=jnp.float32) + bqkv
            q = qkv[:, :D_MODEL]
            k = qkv[:, D_MODEL:2 * D_MODEL]
            v = qkv[:, 2 * D_MODEL:3 * D_MODEL]
        else:                                    # cross-attention: q from x_q, kv from x_kv
            q = jnp.dot(x_q, wqkv[:, :D_MODEL],
                        preferred_element_type=jnp.float32) + bqkv[:, :D_MODEL]
            kv = jnp.dot(x_kv, wqkv[:, D_MODEL:3 * D_MODEL],
                         preferred_element_type=jnp.float32) + bqkv[:, D_MODEL:3 * D_MODEL]
            k = kv[:, :D_MODEL]
            v = kv[:, D_MODEL:2 * D_MODEL]
        q = q * scale                            # scale q, not the score matrix

        # ---- all-head scores in one matmul ----
        # replicate q over the sublane axis (one block per head) and zero the other heads' dims
        q_rep = jnp.concatenate([q] * N_HEADS, axis=0) * hm          # (H*BL, D) head-block-diag
        s = jax.lax.dot_general(q_rep, k, (((1,), (1,)), ((), ())),
                                preferred_element_type=jnp.float32)  # (H*BL, BL)
        s = s + mask_big                         # additive pad/causal + cross-batch mask, head-tiled

        # per-row softmax == per-head softmax (each row belongs to exactly one head)
        m = jnp.max(s, axis=-1, keepdims=True)
        e = jnp.exp(s - m)
        p = e / jnp.sum(e, axis=-1, keepdims=True)                   # exact (p is a kernel output)

        # ---- all-head context in one matmul, then one output projection ----
        c = jnp.dot(p, v, preferred_element_type=jnp.float32) * hm   # (H*BL, D) per-head cols kept
        ctx = (c[0 * BL:1 * BL] + c[1 * BL:2 * BL]
               + c[2 * BL:3 * BL] + c[3 * BL:4 * BL])                # lane-concatenated heads (BL, D)
        out = jnp.dot(ctx, wo, preferred_element_type=jnp.float32) + bo
        return out, p

    # ------------------ encoder stack ------------------
    x = src_ref[...]
    for l in range(N_LAYERS):
        ws = ENC_W_SLOTS * l
        vb = ENC_V_ROWS * l
        wqkv = wa_ref[ws + 0, :, :3 * D_MODEL]
        wo = wa_ref[ws + 1, :, :D_MODEL]
        w1 = wa_ref[ws + 2, :, :D_FF]
        w2 = wb_ref[l]
        sa, _ = mha(x, x, wqkv, vrow(vb + 0, 3 * D_MODEL), wo, vrow(vb + 1, D_MODEL),
                    enc_mask, True)
        x = layer_norm(x + sa, vrow(vb + 2, D_MODEL), vrow(vb + 3, D_MODEL))
        f = ffn(x, w1, vrow(vb + 4, D_FF), w2, vrow(vb + 5, D_MODEL))
        x = layer_norm(x + f, vrow(vb + 6, D_MODEL), vrow(vb + 7, D_MODEL))
    enc = x

    # ------------------ decoder stack ------------------
    y = tgt_ref[...]
    for l in range(N_LAYERS):
        ws = ENC_W_SLOTS * N_LAYERS + DEC_W_SLOTS * l
        vb = ENC_V_ROWS * N_LAYERS + DEC_V_ROWS * l
        s_wqkv = wa_ref[ws + 0, :, :3 * D_MODEL]
        s_wo = wa_ref[ws + 1, :, :D_MODEL]
        c_wqkv = wa_ref[ws + 2, :, :3 * D_MODEL]
        c_wo = wa_ref[ws + 3, :, :D_MODEL]
        w1 = wa_ref[ws + 4, :, :D_FF]
        w2 = wb_ref[N_LAYERS + l]

        sa, _ = mha(y, y, s_wqkv, vrow(vb + 0, 3 * D_MODEL), s_wo, vrow(vb + 1, D_MODEL),
                    self_mask, True)
        y = layer_norm(y + sa, vrow(vb + 2, D_MODEL), vrow(vb + 3, D_MODEL))

        ca, p = mha(y, enc, c_wqkv, vrow(vb + 4, 3 * D_MODEL), c_wo, vrow(vb + 5, D_MODEL),
                    cross_mask, False)
        if l == N_LAYERS - 1:                    # only the returned (last-layer) attention is stored
            attn_ref[...] = p                    # one full-tile store; diag blocks taken in wrapper
        y = layer_norm(y + ca, vrow(vb + 6, D_MODEL), vrow(vb + 7, D_MODEL))

        f = ffn(y, w1, vrow(vb + 8, D_FF), w2, vrow(vb + 9, D_MODEL))
        y = layer_norm(y + f, vrow(vb + 10, D_MODEL), vrow(vb + 11, D_MODEL))

    # ------------------ generator (linear + log_softmax), lane-dense ------------------
    gw = wa_ref[GEN_W_SLOT, :, :]                # (D_MODEL, 128) zero-padded weight
    gb = vec_ref[GEN_B_ROW:GEN_B_ROW + 1, :]     # (1, 128) bias, NEG-padded beyond vocab
    logits = jnp.dot(y, gw, preferred_element_type=jnp.float32) + gb
    m = jnp.max(logits, axis=-1, keepdims=True)
    lse = jnp.log(jnp.sum(jnp.exp(logits - m), axis=-1, keepdims=True)) + m
    logp_ref[...] = logits - lse                 # unmasked (16,128) store; wrapper slices vocab


# ----------------------------- plain-JAX glue -----------------------------
def sinusoidal_pe(max_len, d_model):
    pos = jnp.arange(max_len, dtype=jnp.float32)[:, None]
    i = jnp.arange(0, d_model, 2, dtype=jnp.float32)
    angle = pos / jnp.power(10000.0, i / d_model)
    pe = jnp.zeros((max_len, d_model), jnp.float32)
    pe = pe.at[:, 0::2].set(jnp.sin(angle))
    pe = pe.at[:, 1::2].set(jnp.cos(angle))
    return pe


def embed(table, ids, pe):
    L = ids.shape[1]
    x = jnp.take(table, ids, axis=0) * jnp.sqrt(jnp.float32(D_MODEL))
    return x + pe[:L][None, :, :]


def _block_diag_additive(keep):
    """keep: (B, Lq, Lk) bool -> (B*Lq, B*Lk) additive mask (0 keep / NEG masked),
    cross-batch entries masked so batch can live on the sublane axis inside the kernel."""
    Bb, Lq, Lk = keep.shape
    eye = jnp.eye(Bb, dtype=bool)
    big = eye[:, None, :, None] & keep[:, :, None, :]
    big = big.reshape(Bb * Lq, Bb * Lk)
    return jnp.where(big, 0.0, NEG).astype(jnp.float32)


def transformer_forward(packed, src, tgt):
    Bx, Ls = src.shape
    Lt = tgt.shape[1]
    # TODO(synk): the folded-batch / shared packed-mask layout assumes L_SRC == L_TGT (true here).

    src_pad = src != PAD_IDX
    tgt_pad = tgt != PAD_IDX
    sub = jnp.tril(jnp.ones((Lt, Lt), dtype=bool))

    enc_keep = jnp.broadcast_to(src_pad[:, None, :], (Bx, Ls, Ls))
    tgt_keep = tgt_pad[:, None, :] & sub[None, :, :]
    cross_keep = jnp.broadcast_to(src_pad[:, None, :], (Bx, Lt, Ls))

    def head_tiled(keep):
        return jnp.tile(_block_diag_additive(keep), (N_HEADS, 1))   # (H*B*Lq, B*Lk)

    # static head-block-diagonal selector mask (H*B*L, D_MODEL)
    bl = Bx * Lt
    row_head = jnp.arange(N_HEADS * bl)[:, None] // bl
    col_head = jnp.arange(D_MODEL)[None, :] // D_HEAD
    hm = (row_head == col_head).astype(jnp.float32)

    masks_packed = jnp.concatenate(
        [head_tiled(enc_keep), head_tiled(tgt_keep), head_tiled(cross_keep), hm], axis=1)

    src_x = embed(packed["src_embed"], src, packed["pe"]).reshape(Bx * Ls, D_MODEL)
    tgt_x = embed(packed["tgt_embed"], tgt, packed["pe"]).reshape(Bx * Lt, D_MODEL)

    logp_pad, attn_raw = pl.pallas_call(
        _transformer_kernel,
        out_shape=(
            jax.ShapeDtypeStruct((Bx * Lt, GEN_PAD), jnp.float32),          # lane-dense log-probs
            jax.ShapeDtypeStruct((N_HEADS * Bx * Lt, Bx * Ls), jnp.float32),  # full-tile attn probs
        ),
    )(src_x, tgt_x, masks_packed, packed["W_A"], packed["W_B"], packed["VEC"])

    out = logp_pad[:, :TGT_VOCAB].reshape(Bx, Lt, TGT_VOCAB)
    # extract per-batch diagonal blocks: (H, B, Lt, B, Ls) -> (B, H, Lt, Ls)
    p5 = attn_raw.reshape(N_HEADS, Bx, Lt, Bx, Ls)
    idx = jnp.arange(Bx)
    attn = p5[:, idx, :, idx, :]
    return out, attn


# ----------------------------- parameters -----------------------------
def init_params(key):
    keys = iter(jax.random.split(key, 256))

    def dense(din, dout):
        return {"w": jax.random.normal(next(keys), (din, dout), jnp.float32) * 0.05,
                "b": jnp.zeros((dout,), jnp.float32)}

    def ln_p():
        return {"g": jnp.ones((D_MODEL,), jnp.float32), "b": jnp.zeros((D_MODEL,), jnp.float32)}

    def mha_p():
        return {"q": dense(D_MODEL, D_MODEL), "k": dense(D_MODEL, D_MODEL),
                "v": dense(D_MODEL, D_MODEL), "o": dense(D_MODEL, D_MODEL)}

    def ffn_p():
        return {"w1": dense(D_MODEL, D_FF), "w2": dense(D_FF, D_MODEL)}

    pe = sinusoidal_pe(MAX_LEN, D_MODEL)
    enc_layers = [{"self_attn": mha_p(), "ln1": ln_p(), "ffn": ffn_p(), "ln2": ln_p()}
                  for _ in range(N_LAYERS)]
    dec_layers = [{"self_attn": mha_p(), "ln1": ln_p(), "cross_attn": mha_p(), "ln2": ln_p(),
                   "ffn": ffn_p(), "ln3": ln_p()} for _ in range(N_LAYERS)]
    return {
        "encoder": {"embed": jax.random.normal(next(keys), (SRC_VOCAB, D_MODEL), jnp.float32) * 0.05,
                    "pe": pe, "layers": enc_layers},
        "decoder": {"embed": jax.random.normal(next(keys), (TGT_VOCAB, D_MODEL), jnp.float32) * 0.05,
                    "pe": pe, "layers": dec_layers},
        "generator": dense(D_MODEL, TGT_VOCAB),
    }


def pack_params(p):
    """Pack structured params into 3 kernel arrays: W_A (17,32,128), W_B (4,64,32), VEC (41,128)."""

    def qkv_w(att):
        return jnp.concatenate([att["q"]["w"], att["k"]["w"], att["v"]["w"]], axis=1)   # (32,96)

    def qkv_b(att):
        return jnp.concatenate([att["q"]["b"], att["k"]["b"], att["v"]["b"]])            # (96,)

    def pad_mat(m):
        return jnp.pad(m, ((0, 0), (0, 128 - m.shape[1])))

    def pad_vec(v, fill=0.0):
        return jnp.full((128,), fill, jnp.float32).at[:v.shape[0]].set(v)

    enc_layers = p["encoder"]["layers"]
    dec_layers = p["decoder"]["layers"]

    wa_slots, vec_rows, w2_list = [], [], []

    for lp in enc_layers:
        wa_slots += [pad_mat(qkv_w(lp["self_attn"])),
                     pad_mat(lp["self_attn"]["o"]["w"]),
                     pad_mat(lp["ffn"]["w1"]["w"])]
        vec_rows += [pad_vec(qkv_b(lp["self_attn"])), pad_vec(lp["self_attn"]["o"]["b"]),
                     pad_vec(lp["ln1"]["g"]), pad_vec(lp["ln1"]["b"]),
                     pad_vec(lp["ffn"]["w1"]["b"]), pad_vec(lp["ffn"]["w2"]["b"]),
                     pad_vec(lp["ln2"]["g"]), pad_vec(lp["ln2"]["b"])]
        w2_list.append(lp["ffn"]["w2"]["w"])

    for lp in dec_layers:
        wa_slots += [pad_mat(qkv_w(lp["self_attn"])),
                     pad_mat(lp["self_attn"]["o"]["w"]),
                     pad_mat(qkv_w(lp["cross_attn"])),
                     pad_mat(lp["cross_attn"]["o"]["w"]),
                     pad_mat(lp["ffn"]["w1"]["w"])]
        vec_rows += [pad_vec(qkv_b(lp["self_attn"])), pad_vec(lp["self_attn"]["o"]["b"]),
                     pad_vec(lp["ln1"]["g"]), pad_vec(lp["ln1"]["b"]),
                     pad_vec(qkv_b(lp["cross_attn"])), pad_vec(lp["cross_attn"]["o"]["b"]),
                     pad_vec(lp["ln2"]["g"]), pad_vec(lp["ln2"]["b"]),
                     pad_vec(lp["ffn"]["w1"]["b"]), pad_vec(lp["ffn"]["w2"]["b"]),
                     pad_vec(lp["ln3"]["g"]), pad_vec(lp["ln3"]["b"])]

    for lp in dec_layers:
        w2_list.append(lp["ffn"]["w2"]["w"])

    wa_slots.append(pad_mat(p["generator"]["w"]))                 # zero-padded generator weight
    vec_rows.append(pad_vec(p["generator"]["b"], fill=NEG))       # NEG-padded generator bias

    W_A = jnp.stack(wa_slots)     # (17, 32, 128)
    W_B = jnp.stack(w2_list)      # (4, 64, 32)   enc w2 x2 then dec w2 x2
    VEC = jnp.stack(vec_rows)     # (41, 128)

    assert W_A.shape == (N_W_SLOTS, D_MODEL, 128)
    assert W_B.shape == (2 * N_LAYERS, D_FF, D_MODEL)
    assert VEC.shape == (N_V_ROWS, 128)

    return {"src_embed": p["encoder"]["embed"], "tgt_embed": p["decoder"]["embed"],
            "pe": p["encoder"]["pe"], "W_A": W_A, "W_B": W_B, "VEC": VEC}


# ----------------------------- main -----------------------------
if __name__ == "__main__":
    key = jax.random.PRNGKey(0)
    k_src, k_tgt = jax.random.split(key)
    src = jax.random.randint(k_src, (B, L_SRC), 1, SRC_VOCAB, dtype=jnp.int32)
    tgt = jax.random.randint(k_tgt, (B, L_TGT), 1, TGT_VOCAB, dtype=jnp.int32)
    # add some padding tokens to exercise the pad masks
    src = src.at[0, 6:].set(PAD_IDX)
    tgt = tgt.at[1, 5:].set(PAD_IDX)

    params = init_params(jax.random.PRNGKey(1234))
    packed = pack_params(params)

    fwd = jax.jit(transformer_forward)
    out, attn = fwd(packed, src, tgt)
    out, attn = jax.block_until_ready((out, attn))

    assert out.shape == (B, L_TGT, TGT_VOCAB), out.shape
    assert attn.shape == (B, N_HEADS, L_TGT, L_SRC), attn.shape
    assert bool(jnp.all(jnp.isfinite(out))) and bool(jnp.all(jnp.isfinite(attn)))
    # attention rows must be normalized over the source positions
    assert bool(jnp.allclose(jnp.sum(attn, axis=-1), 1.0, atol=1e-4))
    print("KERNEL_OK")
</pallas_src>

<mosaic_0001>
module attributes {stable_mosaic.version = 11 : i64} {
  func.func @_transformer_kernel(%arg0: memref<16x32xf32, #tpu.memory_space<vmem>>, %arg1: memref<16x32xf32, #tpu.memory_space<vmem>>, %arg2: memref<64x80xf32, #tpu.memory_space<vmem>>, %arg3: memref<17x32x128xf32, #tpu.memory_space<vmem>>, %arg4: memref<4x64x32xf32, #tpu.memory_space<vmem>>, %arg5: memref<41x128xf32, #tpu.memory_space<vmem>>, %arg6: memref<16x128xf32, #tpu.memory_space<vmem>>, %arg7: memref<64x16xf32, #tpu.memory_space<vmem>>) attributes {dimension_semantics = [], scalar_prefetch = 0 : i64, scratch_operands = 0 : i64, tpu.core_type = #tpu.core_type<tc>} {
    %c0 = arith.constant 0 : index
    %c0_0 = arith.constant 0 : index
    %0 = vector.load %arg2[%c0, %c0_0] : memref<64x80xf32, #tpu.memory_space<vmem>>, vector<64x80xf32>
    %1 = vector.extract_strided_slice %0 {offsets = [0, 0], sizes = [64, 16], strides = [1, 1]} : vector<64x80xf32> to vector<64x16xf32>
    %2 = vector.extract_strided_slice %0 {offsets = [0, 16], sizes = [64, 16], strides = [1, 1]} : vector<64x80xf32> to vector<64x16xf32>
    %3 = vector.extract_strided_slice %0 {offsets = [0, 32], sizes = [64, 16], strides = [1, 1]} : vector<64x80xf32> to vector<64x16xf32>
    %4 = vector.extract_strided_slice %0 {offsets = [0, 48], sizes = [64, 32], strides = [1, 1]} : vector<64x80xf32> to vector<64x32xf32>
    %c0_1 = arith.constant 0 : index
    %c0_2 = arith.constant 0 : index
    %5 = vector.load %arg0[%c0_1, %c0_2] : memref<16x32xf32, #tpu.memory_space<vmem>>, vector<16x32xf32>
    %c0_3 = arith.constant 0 : index
    %c0_4 = arith.constant 0 : index
    %c0_5 = arith.constant 0 : index
    %6 = vector.load %arg3[%c0_3, %c0_4, %c0_5] : memref<17x32x128xf32, #tpu.memory_space<vmem>>, vector<1x32x96xf32>
    %7 = vector.shape_cast %6 : vector<1x32x96xf32> to vector<32x96xf32>
    %c1 = arith.constant 1 : index
    %c0_6 = arith.constant 0 : index
    %c0_7 = arith.constant 0 : index
    %8 = vector.load %arg3[%c1, %c0_6, %c0_7] : memref<17x32x128xf32, #tpu.memory_space<vmem>>, vector<1x32x32xf32>
    %9 = vector.shape_cast %8 : vector<1x32x32xf32> to vector<32x32xf32>
    %c2 = arith.constant 2 : index
    %c0_8 = arith.constant 0 : index
    %c0_9 = arith.constant 0 : index
    %10 = vector.load %arg3[%c2, %c0_8, %c0_9] : memref<17x32x128xf32, #tpu.memory_space<vmem>>, vector<1x32x64xf32>
    %11 = vector.shape_cast %10 : vector<1x32x64xf32> to vector<32x64xf32>
    %c0_10 = arith.constant 0 : index
    %c0_11 = arith.constant 0 : index
    %c0_12 = arith.constant 0 : index
    %12 = vector.load %arg4[%c0_10, %c0_11, %c0_12] : memref<4x64x32xf32, #tpu.memory_space<vmem>>, vector<1x64x32xf32>
    %13 = vector.shape_cast %12 : vector<1x64x32xf32> to vector<64x32xf32>
    %c0_13 = arith.constant 0 : index
    %c0_14 = arith.constant 0 : index
    %14 = vector.load %arg5[%c0_13, %c0_14] : memref<41x128xf32, #tpu.memory_space<vmem>>, vector<1x96xf32>
    %c1_15 = arith.constant 1 : index
    %c0_16 = arith.constant 0 : index
    %15 = vector.load %arg5[%c1_15, %c0_16] : memref<41x128xf32, #tpu.memory_space<vmem>>, vector<1x32xf32>
    %cst = arith.constant dense<0.000000e+00> : vector<16x96xf32>
    %16 = tpu.matmul %5, %7, %cst {dimension_numbers = #tpu.dot_dimension_numbers<[1], [0], [0], [1], [0, 0, 1, 1], [], []>} : vector<16x32xf32>, vector<32x96xf32>, vector<16x96xf32> -> vector<16x96xf32>
    %17 = vector.broadcast %14 : vector<1x96xf32> to vector<16x96xf32>
    %18 = arith.addf %16, %17 : vector<16x96xf32>
    %19 = vector.extract_strided_slice %18 {offsets = [0, 0], sizes = [16, 32], strides = [1, 1]} : vector<16x96xf32> to vector<16x32xf32>
    %20 = vector.extract_strided_slice %18 {offsets = [0, 32], sizes = [16, 32], strides = [1, 1]} : vector<16x96xf32> to vector<16x32xf32>
    %21 = vector.extract_strided_slice %18 {offsets = [0, 64], sizes = [16, 32], strides = [1, 1]} : vector<16x96xf32> to vector<16x32xf32>
    %cst_17 = arith.constant 0.353553385 : f32
    %22 = vector.broadcast %cst_17 : f32 to vector<16x32xf32>
    %23 = arith.mulf %19, %22 : vector<16x32xf32>
    %24 = tpu.concatenate %23, %23, %23, %23 in 0 : vector<16x32xf32>, vector<16x32xf32>, vector<16x32xf32>, vector<16x32xf32> -> vector<64x32xf32>
    %25 = arith.mulf %24, %4 : vector<64x32xf32>
    %cst_18 = arith.constant dense<0.000000e+00> : vector<64x16xf32>
    %26 = tpu.matmul %25, %20, %cst_18 {dimension_numbers = #tpu.dot_dimension_numbers<[1], [1], [0], [0], [0, 0, 1, 0], [], []>} : vector<64x32xf32>, vector<16x32xf32>, vector<64x16xf32> -> vector<64x16xf32>
    %27 = arith.addf %26, %1 : vector<64x16xf32>
    %cst_19 = arith.constant dense<0xFF800000> : vector<64xf32>
    %28 = vector.multi_reduction <maximumf>, %27, %cst_19 [1] : vector<64x16xf32> to vector<64xf32>
    %29 = vector.shape_cast %28 : vector<64xf32> to vector<64x1xf32>
    %30 = vector.broadcast %29 : vector<64x1xf32> to vector<64x16xf32>
    %31 = arith.subf %27, %30 : vector<64x16xf32>
    %32 = math.exp %31 : vector<64x16xf32>
    %cst_20 = arith.constant dense<0.000000e+00> : vector<64xf32>
    %33 = vector.multi_reduction <add>, %32, %cst_20 [1] : vector<64x16xf32> to vector<64xf32>
    %34 = vector.shape_cast %33 : vector<64xf32> to vector<64x1xf32>
    %35 = vector.broadcast %34 : vector<64x1xf32> to vector<64x16xf32>
    %36 = arith.divf %32, %35 : vector<64x16xf32>
    %cst_21 = arith.constant dense<0.000000e+00> : vector<64x32xf32>
    %37 = tpu.matmul %36, %21, %cst_21 {dimension_numbers = #tpu.dot_dimension_numbers<[1], [0], [0], [1], [0, 0, 1, 1], [], []>} : vector<64x16xf32>, vector<16x32xf32>, vector<64x32xf32> -> vector<64x32xf32>
    %38 = arith.mulf %37, %4 : vector<64x32xf32>
    %39 = vector.extract_strided_slice %38 {offsets = [0, 0], sizes = [16, 32], strides = [1, 1]} : vector<64x32xf32> to vector<16x32xf32>
    %40 = vector.extract_strided_slice %38 {offsets = [16, 0], sizes = [16, 32], strides = [1, 1]} : vector<64x32xf32> to vector<16x32xf32>
    %41 = arith.addf %39, %40 : vector<16x32xf32>
    %42 = vector.extract_strided_slice %38 {offsets = [32, 0], sizes = [16, 32], strides = [1, 1]} : vector<64x32xf32> to vector<16x32xf32>
    %43 = arith.addf %41, %42 : vector<16x32xf32>
    %44 = vector.extract_strided_slice %38 {offsets = [48, 0], sizes = [16, 32], strides = [1, 1]} : vector<64x32xf32> to vector<16x32xf32>
    %45 = arith.addf %43, %44 : vector<16x32xf32>
    %cst_22 = arith.constant dense<0.000000e+00> : vector<16x32xf32>
    %46 = tpu.matmul %45, %9, %cst_22 {dimension_numbers = #tpu.dot_dimension_numbers<[1], [0], [0], [1], [0, 0, 1, 1], [], []>} : vector<16x32xf32>, vector<32x32xf32>, vector<16x32xf32> -> vector<16x32xf32>
    %47 = vector.broadcast %15 : vector<1x32xf32> to vector<16x32xf32>
    %48 = arith.addf %46, %47 : vector<16x32xf32>
    %49 = arith.addf %5, %48 : vector<16x32xf32>
    %c2_23 = arith.constant 2 : index
    %c0_24 = arith.constant 0 : index
    %50 = vector.load %arg5[%c2_23, %c0_24] : memref<41x128xf32, #tpu.memory_space<vmem>>, vector<1x32xf32>
    %c3 = arith.constant 3 : index
    %c0_25 = arith.constant 0 : index
    %51 = vector.load %arg5[%c3, %c0_25] : memref<41x128xf32, #tpu.memory_space<vmem>>, vector<1x32xf32>
    %cst_26 = arith.constant dense<0.000000e+00> : vector<16xf32>
    %52 = vector.multi_reduction <add>, %49, %cst_26 [1] : vector<16x32xf32> to vector<16xf32>
    %53 = vector.shape_cast %52 : vector<16xf32> to vector<16x1xf32>
    %cst_27 = arith.constant 3.200000e+01 : f32
    %54 = vector.broadcast %cst_27 : f32 to vector<16x1xf32>
    %55 = arith.divf %53, %54 : vector<16x1xf32>
    %56 = vector.broadcast %55 : vector<16x1xf32> to vector<16x32xf32>
    %57 = arith.subf %49, %56 : vector<16x32xf32>
    %58 = arith.mulf %57, %57 : vector<16x32xf32>
    %cst_28 = arith.constant dense<0.000000e+00> : vector<16xf32>
    %59 = vector.multi_reduction <add>, %58, %cst_28 [1] : vector<16x32xf32> to vector<16xf32>
    %60 = vector.shape_cast %59 : vector<16xf32> to vector<16x1xf32>
    %cst_29 = arith.constant 3.200000e+01 : f32
    %61 = vector.broadcast %cst_29 : f32 to vector<16x1xf32>
    %62 = arith.divf %60, %61 : vector<16x1xf32>
    %cst_30 = arith.constant 9.99999974E-6 : f32
    %63 = vector.broadcast %cst_30 : f32 to vector<16x1xf32>
    %64 = arith.addf %62, %63 : vector<16x1xf32>
    %65 = math.rsqrt %64 : vector<16x1xf32>
    %66 = vector.broadcast %65 : vector<16x1xf32> to vector<16x32xf32>
    %67 = arith.mulf %57, %66 : vector<16x32xf32>
    %68 = vector.broadcast %50 : vector<1x32xf32> to vector<16x32xf32>
    %69 = arith.mulf %67, %68 : vector<16x32xf32>
    %70 = vector.broadcast %51 : vector<1x32xf32> to vector<16x32xf32>
    %71 = arith.addf %69, %70 : vector<16x32xf32>
    %c4 = arith.constant 4 : index
    %c0_31 = arith.constant 0 : index
    %72 = vector.load %arg5[%c4, %c0_31] : memref<41x128xf32, #tpu.memory_space<vmem>>, vector<1x64xf32>
    %c5 = arith.constant 5 : index
    %c0_32 = arith.constant 0 : index
    %73 = vector.load %arg5[%c5, %c0_32] : memref<41x128xf32, #tpu.memory_space<vmem>>, vector<1x32xf32>
    %cst_33 = arith.constant dense<0.000000e+00> : vector<16x64xf32>
    %74 = tpu.matmul %71, %11, %cst_33 {dimension_numbers = #tpu.dot_dimension_numbers<[1], [0], [0], [1], [0, 0, 1, 1], [], []>} : vector<16x32xf32>, vector<32x64xf32>, vector<16x64xf32> -> vector<16x64xf32>
    %75 = vector.broadcast %72 : vector<1x64xf32> to vector<16x64xf32>
    %76 = arith.addf %74, %75 : vector<16x64xf32>
    %cst_34 = arith.constant 0.000000e+00 : f32
    %77 = vector.broadcast %cst_34 : f32 to vector<16x64xf32>
    %78 = arith.maximumf %76, %77 : vector<16x64xf32>
    %cst_35 = arith.constant dense<0.000000e+00> : vector<16x32xf32>
    %79 = tpu.matmul %78, %13, %cst_35 {dimension_numbers = #tpu.dot_dimension_numbers<[1], [0], [0], [1], [0, 0, 1, 1], [], []>} : vector<16x64xf32>, vector<64x32xf32>, vector<16x32xf32> -> vector<16x32xf32>
    %80 = vector.broadcast %73 : vector<1x32xf32> to vector<16x32xf32>
    %81 = arith.addf %79, %80 : vector<16x32xf32>
    %82 = arith.addf %71, %81 : vector<16x32xf32>
    %c6 = arith.constant 6 : index
    %c0_36 = arith.constant 0 : index
    %83 = vector.load %arg5[%c6, %c0_36] : memref<41x128xf32, #tpu.memory_space<vmem>>, vector<1x32xf32>
    %c7 = arith.constant 7 : index
    %c0_37 = arith.constant 0 : index
    %84 = vector.load %arg5[%c7, %c0_37] : memref<41x128xf32, #tpu.memory_space<vmem>>, vector<1x32xf32>
    %cst_38 = arith.constant dense<0.000000e+00> : vector<16xf32>
    %85 = vector.multi_reduction <add>, %82, %cst_38 [1] : vector<16x32xf32> to vector<16xf32>
    %86 = vector.shape_cast %85 : vector<16xf32> to vector<16x1xf32>
    %cst_39 = arith.constant 3.200000e+01 : f32
    %87 = vector.broadcast %cst_39 : f32 to vector<16x1xf32>
    %88 = arith.divf %86, %87 : vector<16x1xf32>
    %89 = vector.broadcast %88 : vector<16x1xf32> to vector<16x32xf32>
    %90 = arith.subf %82, %89 : vector<16x32xf32>
    %91 = arith.mulf %90, %90 : vector<16x32xf32>
    %cst_40 = arith.constant dense<0.000000e+00> : vector<16xf32>
    %92 = vector.multi_reduction <add>, %91, %cst_40 [1] : vector<16x32xf32> to vector<16xf32>
    %93 = vector.shape_cast %92 : vector<16xf32> to vector<16x1xf32>
    %cst_41 = arith.constant 3.200000e+01 : f32
    %94 = vector.broadcast %cst_41 : f32 to vector<16x1xf32>
    %95 = arith.divf %93, %94 : vector<16x1xf32>
    %cst_42 = arith.constant 9.99999974E-6 : f32
    %96 = vector.broadcast %cst_42 : f32 to vector<16x1xf32>
    %97 = arith.addf %95, %96 : vector<16x1xf32>
    %98 = math.rsqrt %97 : vector<16x1xf32>
    %99 = vector.broadcast %98 : vector<16x1xf32> to vector<16x32xf32>
    %100 = arith.mulf %90, %99 : vector<16x32xf32>
    %101 = vector.broadcast %83 : vector<1x32xf32> to vector<16x32xf32>
    %102 = arith.mulf %100, %101 : vector<16x32xf32>
    %103 = vector.broadcast %84 : vector<1x32xf32> to vector<16x32xf32>
    %104 = arith.addf %102, %103 : vector<16x32xf32>
    %c3_43 = arith.constant 3 : index
    %c0_44 = arith.constant 0 : index
    %c0_45 = arith.constant 0 : index
    %105 = vector.load %arg3[%c3_43, %c0_44, %c0_45] : memref<17x32x128xf32, #tpu.memory_space<vmem>>, vector<1x32x96xf32>
    %106 = vector.shape_cast %105 : vector<1x32x96xf32> to vector<32x96xf32>
    %c4_46 = arith.constant 4 : index
    %c0_47 = arith.constant 0 : index
    %c0_48 = arith.constant 0 : index
    %107 = vector.load %arg3[%c4_46, %c0_47, %c0_48] : memref<17x32x128xf32, #tpu.memory_space<vmem>>, vector<1x32x32xf32>
    %108 = vector.shape_cast %107 : vector<1x32x32xf32> to vector<32x32xf32>
    %c5_49 = arith.constant 5 : index
    %c0_50 = arith.constant 0 : index
    %c0_51 = arith.constant 0 : index
    %109 = vector.load %arg3[%c5_49, %c0_50, %c0_51] : memref<17x32x128xf32, #tpu.memory_space<vmem>>, vector<1x32x64xf32>
    %110 = vector.shape_cast %109 : vector<1x32x64xf32> to vector<32x64xf32>
    %c1_52 = arith.constant 1 : index
    %c0_53 = arith.constant 0 : index
    %c0_54 = arith.constant 0 : index
    %111 = vector.load %arg4[%c1_52, %c0_53, %c0_54] : memref<4x64x32xf32, #tpu.memory_space<vmem>>, vector<1x64x32xf32>
    %112 = vector.shape_cast %111 : vector<1x64x32xf32> to vector<64x32xf32>
    %c8 = arith.constant 8 : index
    %c0_55 = arith.constant 0 : index
    %113 = vector.load %arg5[%c8, %c0_55] : memref<41x128xf32, #tpu.memory_space<vmem>>, vector<1x96xf32>
    %c9 = arith.constant 9 : index
    %c0_56 = arith.constant 0 : index
    %114 = vector.load %arg5[%c9, %c0_56] : memref<41x128xf32, #tpu.memory_space<vmem>>, vector<1x32xf32>
    %cst_57 = arith.constant dense<0.000000e+00> : vector<16x96xf32>
    %115 = tpu.matmul %104, %106, %cst_57 {dimension_numbers = #tpu.dot_dimension_numbers<[1], [0], [0], [1], [0, 0, 1, 1], [], []>} : vector<16x32xf32>, vector<32x96xf32>, vector<16x96xf32> -> vector<16x96xf32>
    %116 = vector.broadcast %113 : vector<1x96xf32> to vector<16x96xf32>
    %117 = arith.addf %115, %116 : vector<16x96xf32>
    %118 = vector.extract_strided_slice %117 {offsets = [0, 0], sizes = [16, 32], strides = [1, 1]} : vector<16x96xf32> to vector<16x32xf32>
    %119 = vector.extract_strided_slice %117 {offsets = [0, 32], sizes = [16, 32], strides = [1, 1]} : vector<16x96xf32> to vector<16x32xf32>
    %120 = vector.extract_strided_slice %117 {offsets = [0, 64], sizes = [16, 32], strides = [1, 1]} : vector<16x96xf32> to vector<16x32xf32>
    %cst_58 = arith.constant 0.353553385 : f32
    %121 = vector.broadcast %cst_58 : f32 to vector<16x32xf32>
    %122 = arith.mulf %118, %121 : vector<16x32xf32>
    %123 = tpu.concatenate %122, %122, %122, %122 in 0 : vector<16x32xf32>, vector<16x32xf32>, vector<16x32xf32>, vector<16x32xf32> -> vector<64x32xf32>
    %124 = arith.mulf %123, %4 : vector<64x32xf32>
    %cst_59 = arith.constant dense<0.000000e+00> : vector<64x16xf32>
    %125 = tpu.matmul %124, %119, %cst_59 {dimension_numbers = #tpu.dot_dimension_numbers<[1], [1], [0], [0], [0, 0, 1, 0], [], []>} : vector<64x32xf32>, vector<16x32xf32>, vector<64x16xf32> -> vector<64x16xf32>
    %126 = arith.addf %125, %1 : vector<64x16xf32>
    %cst_60 = arith.constant dense<0xFF800000> : vector<64xf32>
    %127 = vector.multi_reduction <maximumf>, %126, %cst_60 [1] : vector<64x16xf32> to vector<64xf32>
    %128 = vector.shape_cast %127 : vector<64xf32> to vector<64x1xf32>
    %129 = vector.broadcast %128 : vector<64x1xf32> to vector<64x16xf32>
    %130 = arith.subf %126, %129 : vector<64x16xf32>
    %131 = math.exp %130 : vector<64x16xf32>
    %cst_61 = arith.constant dense<0.000000e+00> : vector<64xf32>
    %132 = vector.multi_reduction <add>, %131, %cst_61 [1] : vector<64x16xf32> to vector<64xf32>
    %133 = vector.shape_cast %132 : vector<64xf32> to vector<64x1xf32>
    %134 = vector.broadcast %133 : vector<64x1xf32> to vector<64x16xf32>
    %135 = arith.divf %131, %134 : vector<64x16xf32>
    %cst_62 = arith.constant dense<0.000000e+00> : vector<64x32xf32>
    %136 = tpu.matmul %135, %120, %cst_62 {dimension_numbers = #tpu.dot_dimension_numbers<[1], [0], [0], [1], [0, 0, 1, 1], [], []>} : vector<64x16xf32>, vector<16x32xf32>, vector<64x32xf32> -> vector<64x32xf32>
    %137 = arith.mulf %136, %4 : vector<64x32xf32>
    %138 = vector.extract_strided_slice %137 {offsets = [0, 0], sizes = [16, 32], strides = [1, 1]} : vector<64x32xf32> to vector<16x32xf32>
    %139 = vector.extract_strided_slice %137 {offsets = [16, 0], sizes = [16, 32], strides = [1, 1]} : vector<64x32xf32> to vector<16x32xf32>
    %140 = arith.addf %138, %139 : vector<16x32xf32>
    %141 = vector.extract_strided_slice %137 {offsets = [32, 0], sizes = [16, 32], strides = [1, 1]} : vector<64x32xf32> to vector<16x32xf32>
    %142 = arith.addf %140, %141 : vector<16x32xf32>
    %143 = vector.extract_strided_slice %137 {offsets = [48, 0], sizes = [16, 32], strides = [1, 1]} : vector<64x32xf32> to vector<16x32xf32>
    %144 = arith.addf %142, %143 : vector<16x32xf32>
    %cst_63 = arith.constant dense<0.000000e+00> : vector<16x32xf32>
    %145 = tpu.matmul %144, %108, %cst_63 {dimension_numbers = #tpu.dot_dimension_numbers<[1], [0], [0], [1], [0, 0, 1, 1], [], []>} : vector<16x32xf32>, vector<32x32xf32>, vector<16x32xf32> -> vector<16x32xf32>
    %146 = vector.broadcast %114 : vector<1x32xf32> to vector<16x32xf32>
    %147 = arith.addf %145, %146 : vector<16x32xf32>
    %148 = arith.addf %104, %147 : vector<16x32xf32>
    %c10 = arith.constant 10 : index
    %c0_64 = arith.constant 0 : index
    %149 = vector.load %arg5[%c10, %c0_64] : memref<41x128xf32, #tpu.memory_space<vmem>>, vector<1x32xf32>
    %c11 = arith.constant 11 : index
    %c0_65 = arith.constant 0 : index
    %150 = vector.load %arg5[%c11, %c0_65] : memref<41x128xf32, #tpu.memory_space<vmem>>, vector<1x32xf32>
    %cst_66 = arith.constant dense<0.000000e+00> : vector<16xf32>
    %151 = vector.multi_reduction <add>, %148, %cst_66 [1] : vector<16x32xf32> to vector<16xf32>
    %152 = vector.shape_cast %151 : vector<16xf32> to vector<16x1xf32>
    %cst_67 = arith.constant 3.200000e+01 : f32
    %153 = vector.broadcast %cst_67 : f32 to vector<16x1xf32>
    %154 = arith.divf %152, %153 : vector<16x1xf32>
    %155 = vector.broadcast %154 : vector<16x1xf32> to vector<16x32xf32>
    %156 = arith.subf %148, %155 : vector<16x32xf32>
    %157 = arith.mulf %156, %156 : vector<16x32xf32>
    %cst_68 = arith.constant dense<0.000000e+00> : vector<16xf32>
    %158 = vector.multi_reduction <add>, %157, %cst_68 [1] : vector<16x32xf32> to vector<16xf32>
    %159 = vector.shape_cast %158 : vector<16xf32> to vector<16x1xf32>
    %cst_69 = arith.constant 3.200000e+01 : f32
    %160 = vector.broadcast %cst_69 : f32 to vector<16x1xf32>
    %161 = arith.divf %159, %160 : vector<16x1xf32>
    %cst_70 = arith.constant 9.99999974E-6 : f32
    %162 = vector.broadcast %cst_70 : f32 to vector<16x1xf32>
    %163 = arith.addf %161, %162 : vector<16x1xf32>
    %164 = math.rsqrt %163 : vector<16x1xf32>
    %165 = vector.broadcast %164 : vector<16x1xf32> to vector<16x32xf32>
    %166 = arith.mulf %156, %165 : vector<16x32xf32>
    %167 = vector.broadcast %149 : vector<1x32xf32> to vector<16x32xf32>
    %168 = arith.mulf %166, %167 : vector<16x32xf32>
    %169 = vector.broadcast %150 : vector<1x32xf32> to vector<16x32xf32>
    %170 = arith.addf %168, %169 : vector<16x32xf32>
    %c12 = arith.constant 12 : index
    %c0_71 = arith.constant 0 : index
    %171 = vector.load %arg5[%c12, %c0_71] : memref<41x128xf32, #tpu.memory_space<vmem>>, vector<1x64xf32>
    %c13 = arith.constant 13 : index
    %c0_72 = arith.constant 0 : index
    %172 = vector.load %arg5[%c13, %c0_72] : memref<41x128xf32, #tpu.memory_space<vmem>>, vector<1x32xf32>
    %cst_73 = arith.constant dense<0.000000e+00> : vector<16x64xf32>
    %173 = tpu.matmul %170, %110, %cst_73 {dimension_numbers = #tpu.dot_dimension_numbers<[1], [0], [0], [1], [0, 0, 1, 1], [], []>} : vector<16x32xf32>, vector<32x64xf32>, vector<16x64xf32> -> vector<16x64xf32>
    %174 = vector.broadcast %171 : vector<1x64xf32> to vector<16x64xf32>
    %175 = arith.addf %173, %174 : vector<16x64xf32>
    %cst_74 = arith.constant 0.000000e+00 : f32
    %176 = vector.broadcast %cst_74 : f32 to vector<16x64xf32>
    %177 = arith.maximumf %175, %176 : vector<16x64xf32>
    %cst_75 = arith.constant dense<0.000000e+00> : vector<16x32xf32>
    %178 = tpu.matmul %177, %112, %cst_75 {dimension_numbers = #tpu.dot_dimension_numbers<[1], [0], [0], [1], [0, 0, 1, 1], [], []>} : vector<16x64xf32>, vector<64x32xf32>, vector<16x32xf32> -> vector<16x32xf32>
    %179 = vector.broadcast %172 : vector<1x32xf32> to vector<16x32xf32>
    %180 = arith.addf %178, %179 : vector<16x32xf32>
    %181 = arith.addf %170, %180 : vector<16x32xf32>
    %c14 = arith.constant 14 : index
    %c0_76 = arith.constant 0 : index
    %182 = vector.load %arg5[%c14, %c0_76] : memref<41x128xf32, #tpu.memory_space<vmem>>, vector<1x32xf32>
    %c15 = arith.constant 15 : index
    %c0_77 = arith.constant 0 : index
    %183 = vector.load %arg5[%c15, %c0_77] : memref<41x128xf32, #tpu.memory_space<vmem>>, vector<1x32xf32>
    %cst_78 = arith.constant dense<0.000000e+00> : vector<16xf32>
    %184 = vector.multi_reduction <add>, %181, %cst_78 [1] : vector<16x32xf32> to vector<16xf32>
    %185 = vector.shape_cast %184 : vector<16xf32> to vector<16x1xf32>
    %cst_79 = arith.constant 3.200000e+01 : f32
    %186 = vector.broadcast %cst_79 : f32 to vector<16x1xf32>
    %187 = arith.divf %185, %186 : vector<16x1xf32>
    %188 = vector.broadcast %187 : vector<16x1xf32> to vector<16x32xf32>
    %189 = arith.subf %181, %188 : vector<16x32xf32>
    %190 = arith.mulf %189, %189 : vector<16x32xf32>
    %cst_80 = arith.constant dense<0.000000e+00> : vector<16xf32>
    %191 = vector.multi_reduction <add>, %190, %cst_80 [1] : vector<16x32xf32> to vector<16xf32>
    %192 = vector.shape_cast %191 : vector<16xf32> to vector<16x1xf32>
    %cst_81 = arith.constant 3.200000e+01 : f32
    %193 = vector.broadcast %cst_81 : f32 to vector<16x1xf32>
    %194 = arith.divf %192, %193 : vector<16x1xf32>
    %cst_82 = arith.constant 9.99999974E-6 : f32
    %195 = vector.broadcast %cst_82 : f32 to vector<16x1xf32>
    %196 = arith.addf %194, %195 : vector<16x1xf32>
    %197 = math.rsqrt %196 : vector<16x1xf32>
    %198 = vector.broadcast %197 : vector<16x1xf32> to vector<16x32xf32>
    %199 = arith.mulf %189, %198 : vector<16x32xf32>
    %200 = vector.broadcast %182 : vector<1x32xf32> to vector<16x32xf32>
    %201 = arith.mulf %199, %200 : vector<16x32xf32>
    %202 = vector.broadcast %183 : vector<1x32xf32> to vector<16x32xf32>
    %203 = arith.addf %201, %202 : vector<16x32xf32>
    %c0_83 = arith.constant 0 : index
    %c0_84 = arith.constant 0 : index
    %204 = vector.load %arg1[%c0_83, %c0_84] : memref<16x32xf32, #tpu.memory_space<vmem>>, vector<16x32xf32>
    %c6_85 = arith.constant 6 : index
    %c0_86 = arith.constant 0 : index
    %c0_87 = arith.constant 0 : index
    %205 = vector.load %arg3[%c6_85, %c0_86, %c0_87] : memref<17x32x128xf32, #tpu.memory_space<vmem>>, vector<1x32x96xf32>
    %206 = vector.shape_cast %205 : vector<1x32x96xf32> to vector<32x96xf32>
    %c7_88 = arith.constant 7 : index
    %c0_89 = arith.constant 0 : index
    %c0_90 = arith.constant 0 : index
    %207 = vector.load %arg3[%c7_88, %c0_89, %c0_90] : memref<17x32x128xf32, #tpu.memory_space<vmem>>, vector<1x32x32xf32>
    %208 = vector.shape_cast %207 : vector<1x32x32xf32> to vector<32x32xf32>
    %c8_91 = arith.constant 8 : index
    %c0_92 = arith.constant 0 : index
    %c0_93 = arith.constant 0 : index
    %209 = vector.load %arg3[%c8_91, %c0_92, %c0_93] : memref<17x32x128xf32, #tpu.memory_space<vmem>>, vector<1x32x96xf32>
    %210 = vector.shape_cast %209 : vector<1x32x96xf32> to vector<32x96xf32>
    %c9_94 = arith.constant 9 : index
    %c0_95 = arith.constant 0 : index
    %c0_96 = arith.constant 0 : index
    %211 = vector.load %arg3[%c9_94, %c0_95, %c0_96] : memref<17x32x128xf32, #tpu.memory_space<vmem>>, vector<1x32x32xf32>
    %212 = vector.shape_cast %211 : vector<1x32x32xf32> to vector<32x32xf32>
    %c10_97 = arith.constant 10 : index
    %c0_98 = arith.constant 0 : index
    %c0_99 = arith.constant 0 : index
    %213 = vector.load %arg3[%c10_97, %c0_98, %c0_99] : memref<17x32x128xf32, #tpu.memory_space<vmem>>, vector<1x32x64xf32>
    %214 = vector.shape_cast %213 : vector<1x32x64xf32> to vector<32x64xf32>
    %c2_100 = arith.constant 2 : index
    %c0_101 = arith.constant 0 : index
    %c0_102 = arith.constant 0 : index
    %215 = vector.load %arg4[%c2_100, %c0_101, %c0_102] : memref<4x64x32xf32, #tpu.memory_space<vmem>>, vector<1x64x32xf32>
    %216 = vector.shape_cast %215 : vector<1x64x32xf32> to vector<64x32xf32>
    %c16 = arith.constant 16 : index
    %c0_103 = arith.constant 0 : index
    %217 = vector.load %arg5[%c16, %c0_103] : memref<41x128xf32, #tpu.memory_space<vmem>>, vector<1x96xf32>
    %c17 = arith.constant 17 : index
    %c0_104 = arith.constant 0 : index
    %218 = vector.load %arg5[%c17, %c0_104] : memref<41x128xf32, #tpu.memory_space<vmem>>, vector<1x32xf32>
    %cst_105 = arith.constant dense<0.000000e+00> : vector<16x96xf32>
    %219 = tpu.matmul %204, %206, %cst_105 {dimension_numbers = #tpu.dot_dimension_numbers<[1], [0], [0], [1], [0, 0, 1, 1], [], []>} : vector<16x32xf32>, vector<32x96xf32>, vector<16x96xf32> -> vector<16x96xf32>
    %220 = vector.broadcast %217 : vector<1x96xf32> to vector<16x96xf32>
    %221 = arith.addf %219, %220 : vector<16x96xf32>
    %222 = vector.extract_strided_slice %221 {offsets = [0, 0], sizes = [16, 32], strides = [1, 1]} : vector<16x96xf32> to vector<16x32xf32>
    %223 = vector.extract_strided_slice %221 {offsets = [0, 32], sizes = [16, 32], strides = [1, 1]} : vector<16x96xf32> to vector<16x32xf32>
    %224 = vector.extract_strided_slice %221 {offsets = [0, 64], sizes = [16, 32], strides = [1, 1]} : vector<16x96xf32> to vector<16x32xf32>
    %cst_106 = arith.constant 0.353553385 : f32
    %225 = vector.broadcast %cst_106 : f32 to vector<16x32xf32>
    %226 = arith.mulf %222, %225 : vector<16x32xf32>
    %227 = tpu.concatenate %226, %226, %226, %226 in 0 : vector<16x32xf32>, vector<16x32xf32>, vector<16x32xf32>, vector<16x32xf32> -> vector<64x32xf32>
    %228 = arith.mulf %227, %4 : vector<64x32xf32>
    %cst_107 = arith.constant dense<0.000000e+00> : vector<64x16xf32>
    %229 = tpu.matmul %228, %223, %cst_107 {dimension_numbers = #tpu.dot_dimension_numbers<[1], [1], [0], [0], [0, 0, 1, 0], [], []>} : vector<64x32xf32>, vector<16x32xf32>, vector<64x16xf32> -> vector<64x16xf32>
    %230 = arith.addf %229, %2 : vector<64x16xf32>
    %cst_108 = arith.constant dense<0xFF800000> : vector<64xf32>
    %231 = vector.multi_reduction <maximumf>, %230, %cst_108 [1] : vector<64x16xf32> to vector<64xf32>
    %232 = vector.shape_cast %231 : vector<64xf32> to vector<64x1xf32>
    %233 = vector.broadcast %232 : vector<64x1xf32> to vector<64x16xf32>
    %234 = arith.subf %230, %233 : vector<64x16xf32>
    %235 = math.exp %234 : vector<64x16xf32>
    %cst_109 = arith.constant dense<0.000000e+00> : vector<64xf32>
    %236 = vector.multi_reduction <add>, %235, %cst_109 [1] : vector<64x16xf32> to vector<64xf32>
    %237 = vector.shape_cast %236 : vector<64xf32> to vector<64x1xf32>
    %238 = vector.broadcast %237 : vector<64x1xf32> to vector<64x16xf32>
    %239 = arith.divf %235, %238 : vector<64x16xf32>
    %cst_110 = arith.constant dense<0.000000e+00> : vector<64x32xf32>
    %240 = tpu.matmul %239, %224, %cst_110 {dimension_numbers = #tpu.dot_dimension_numbers<[1], [0], [0], [1], [0, 0, 1, 1], [], []>} : vector<64x16xf32>, vector<16x32xf32>, vector<64x32xf32> -> vector<64x32xf32>
    %241 = arith.mulf %240, %4 : vector<64x32xf32>
    %242 = vector.extract_strided_slice %241 {offsets = [0, 0], sizes = [16, 32], strides = [1, 1]} : vector<64x32xf32> to vector<16x32xf32>
    %243 = vector.extract_strided_slice %241 {offsets = [16, 0], sizes = [16, 32], strides = [1, 1]} : vector<64x32xf32> to vector<16x32xf32>
    %244 = arith.addf %242, %243 : vector<16x32xf32>
    %245 = vector.extract_strided_slice %241 {offsets = [32, 0], sizes = [16, 32], strides = [1, 1]} : vector<64x32xf32> to vector<16x32xf32>
    %246 = arith.addf %244, %245 : vector<16x32xf32>
    %247 = vector.extract_strided_slice %241 {offsets = [48, 0], sizes = [16, 32], strides = [1, 1]} : vector<64x32xf32> to vector<16x32xf32>
    %248 = arith.addf %246, %247 : vector<16x32xf32>
    %cst_111 = arith.constant dense<0.000000e+00> : vector<16x32xf32>
    %249 = tpu.matmul %248, %208, %cst_111 {dimension_numbers = #tpu.dot_dimension_numbers<[1], [0], [0], [1], [0, 0, 1, 1], [], []>} : vector<16x32xf32>, vector<32x32xf32>, vector<16x32xf32> -> vector<16x32xf32>
    %250 = vector.broadcast %218 : vector<1x32xf32> to vector<16x32xf32>
    %251 = arith.addf %249, %250 : vector<16x32xf32>
    %252 = arith.addf %204, %251 : vector<16x32xf32>
    %c18 = arith.constant 18 : index
    %c0_112 = arith.constant 0 : index
    %253 = vector.load %arg5[%c18, %c0_112] : memref<41x128xf32, #tpu.memory_space<vmem>>, vector<1x32xf32>
    %c19 = arith.constant 19 : index
    %c0_113 = arith.constant 0 : index
    %254 = vector.load %arg5[%c19, %c0_113] : memref<41x128xf32, #tpu.memory_space<vmem>>, vector<1x32xf32>
    %cst_114 = arith.constant dense<0.000000e+00> : vector<16xf32>
    %255 = vector.multi_reduction <add>, %252, %cst_114 [1] : vector<16x32xf32> to vector<16xf32>
    %256 = vector.shape_cast %255 : vector<16xf32> to vector<16x1xf32>
    %cst_115 = arith.constant 3.200000e+01 : f32
    %257 = vector.broadcast %cst_115 : f32 to vector<16x1xf32>
    %258 = arith.divf %256, %257 : vector<16x1xf32>
    %259 = vector.broadcast %258 : vector<16x1xf32> to vector<16x32xf32>
    %260 = arith.subf %252, %259 : vector<16x32xf32>
    %261 = arith.mulf %260, %260 : vector<16x32xf32>
    %cst_116 = arith.constant dense<0.000000e+00> : vector<16xf32>
    %262 = vector.multi_reduction <add>, %261, %cst_116 [1] : vector<16x32xf32> to vector<16xf32>
    %263 = vector.shape_cast %262 : vector<16xf32> to vector<16x1xf32>
    %cst_117 = arith.constant 3.200000e+01 : f32
    %264 = vector.broadcast %cst_117 : f32 to vector<16x1xf32>
    %265 = arith.divf %263, %264 : vector<16x1xf32>
    %cst_118 = arith.constant 9.99999974E-6 : f32
    %266 = vector.broadcast %cst_118 : f32 to vector<16x1xf32>
    %267 = arith.addf %265, %266 : vector<16x1xf32>
    %268 = math.rsqrt %267 : vector<16x1xf32>
    %269 = vector.broadcast %268 : vector<16x1xf32> to vector<16x32xf32>
    %270 = arith.mulf %260, %269 : vector<16x32xf32>
    %271 = vector.broadcast %253 : vector<1x32xf32> to vector<16x32xf32>
    %272 = arith.mulf %270, %271 : vector<16x32xf32>
    %273 = vector.broadcast %254 : vector<1x32xf32> to vector<16x32xf32>
    %274 = arith.addf %272, %273 : vector<16x32xf32>
    %c20 = arith.constant 20 : index
    %c0_119 = arith.constant 0 : index
    %275 = vector.load %arg5[%c20, %c0_119] : memref<41x128xf32, #tpu.memory_space<vmem>>, vector<1x96xf32>
    %c21 = arith.constant 21 : index
    %c0_120 = arith.constant 0 : index
    %276 = vector.load %arg5[%c21, %c0_120] : memref<41x128xf32, #tpu.memory_space<vmem>>, vector<1x32xf32>
    %277 = vector.extract_strided_slice %210 {offsets = [0, 0], sizes = [32, 32], strides = [1, 1]} : vector<32x96xf32> to vector<32x32xf32>
    %cst_121 = arith.constant dense<0.000000e+00> : vector<16x32xf32>
    %278 = tpu.matmul %274, %277, %cst_121 {dimension_numbers = #tpu.dot_dimension_numbers<[1], [0], [0], [1], [0, 0, 1, 1], [], []>} : vector<16x32xf32>, vector<32x32xf32>, vector<16x32xf32> -> vector<16x32xf32>
    %279 = vector.extract_strided_slice %275 {offsets = [0, 0], sizes = [1, 32], strides = [1, 1]} : vector<1x96xf32> to vector<1x32xf32>
    %280 = vector.broadcast %279 : vector<1x32xf32> to vector<16x32xf32>
    %281 = arith.addf %278, %280 : vector<16x32xf32>
    %282 = vector.extract_strided_slice %210 {offsets = [0, 32], sizes = [32, 64], strides = [1, 1]} : vector<32x96xf32> to vector<32x64xf32>
    %cst_122 = arith.constant dense<0.000000e+00> : vector<16x64xf32>
    %283 = tpu.matmul %203, %282, %cst_122 {dimension_numbers = #tpu.dot_dimension_numbers<[1], [0], [0], [1], [0, 0, 1, 1], [], []>} : vector<16x32xf32>, vector<32x64xf32>, vector<16x64xf32> -> vector<16x64xf32>
    %284 = vector.extract_strided_slice %275 {offsets = [0, 32], sizes = [1, 64], strides = [1, 1]} : vector<1x96xf32> to vector<1x64xf32>
    %285 = vector.broadcast %284 : vector<1x64xf32> to vector<16x64xf32>
    %286 = arith.addf %283, %285 : vector<16x64xf32>
    %287 = vector.extract_strided_slice %286 {offsets = [0, 0], sizes = [16, 32], strides = [1, 1]} : vector<16x64xf32> to vector<16x32xf32>
    %288 = vector.extract_strided_slice %286 {offsets = [0, 32], sizes = [16, 32], strides = [1, 1]} : vector<16x64xf32> to vector<16x32xf32>
    %cst_123 = arith.constant 0.353553385 : f32
    %289 = vector.broadcast %cst_123 : f32 to vector<16x32xf32>
    %290 = arith.mulf %281, %289 : vector<16x32xf32>
    %291 = tpu.concatenate %290, %290, %290, %290 in 0 : vector<16x32xf32>, vector<16x32xf32>, vector<16x32xf32>, vector<16x32xf32> -> vector<64x32xf32>
    %292 = arith.mulf %291, %4 : vector<64x32xf32>
    %cst_124 = arith.constant dense<0.000000e+00> : vector<64x16xf32>
    %293 = tpu.matmul %292, %287, %cst_124 {dimension_numbers = #tpu.dot_dimension_numbers<[1], [1], [0], [0], [0, 0, 1, 0], [], []>} : vector<64x32xf32>, vector<16x32xf32>, vector<64x16xf32> -> vector<64x16xf32>
    %294 = arith.addf %293, %3 : vector<64x16xf32>
    %cst_125 = arith.constant dense<0xFF800000> : vector<64xf32>
    %295 = vector.multi_reduction <maximumf>, %294, %cst_125 [1] : vector<64x16xf32> to vector<64xf32>
    %296 = vector.shape_cast %295 : vector<64xf32> to vector<64x1xf32>
    %297 = vector.broadcast %296 : vector<64x1xf32> to vector<64x16xf32>
    %298 = arith.subf %294, %297 : vector<64x16xf32>
    %299 = math.exp %298 : vector<64x16xf32>
    %cst_126 = arith.constant dense<0.000000e+00> : vector<64xf32>
    %300 = vector.multi_reduction <add>, %299, %cst_126 [1] : vector<64x16xf32> to vector<64xf32>
    %301 = vector.shape_cast %300 : vector<64xf32> to vector<64x1xf32>
    %302 = vector.broadcast %301 : vector<64x1xf32> to vector<64x16xf32>
    %303 = arith.divf %299, %302 : vector<64x16xf32>
    %cst_127 = arith.constant dense<0.000000e+00> : vector<64x32xf32>
    %304 = tpu.matmul %303, %288, %cst_127 {dimension_numbers = #tpu.dot_dimension_numbers<[1], [0], [0], [1], [0, 0, 1, 1], [], []>} : vector<64x16xf32>, vector<16x32xf32>, vector<64x32xf32> -> vector<64x32xf32>
    %305 = arith.mulf %304, %4 : vector<64x32xf32>
    %306 = vector.extract_strided_slice %305 {offsets = [0, 0], sizes = [16, 32], strides = [1, 1]} : vector<64x32xf32> to vector<16x32xf32>
    %307 = vector.extract_strided_slice %305 {offsets = [16, 0], sizes = [16, 32], strides = [1, 1]} : vector<64x32xf32> to vector<16x32xf32>
    %308 = arith.addf %306, %307 : vector<16x32xf32>
    %309 = vector.extract_strided_slice %305 {offsets = [32, 0], sizes = [16, 32], strides = [1, 1]} : vector<64x32xf32> to vector<16x32xf32>
    %310 = arith.addf %308, %309 : vector<16x32xf32>
    %311 = vector.extract_strided_slice %305 {offsets = [48, 0], sizes = [16, 32], strides = [1, 1]} : vector<64x32xf32> to vector<16x32xf32>
    %312 = arith.addf %310, %311 : vector<16x32xf32>
    %cst_128 = arith.constant dense<0.000000e+00> : vector<16x32xf32>
    %313 = tpu.matmul %312, %212, %cst_128 {dimension_numbers = #tpu.dot_dimension_numbers<[1], [0], [0], [1], [0, 0, 1, 1], [], []>} : vector<16x32xf32>, vector<32x32xf32>, vector<16x32xf32> -> vector<16x32xf32>
    %314 = vector.broadcast %276 : vector<1x32xf32> to vector<16x32xf32>
    %315 = arith.addf %313, %314 : vector<16x32xf32>
    %316 = arith.addf %274, %315 : vector<16x32xf32>
    %c22 = arith.constant 22 : index
    %c0_129 = arith.constant 0 : index
    %317 = vector.load %arg5[%c22, %c0_129] : memref<41x128xf32, #tpu.memory_space<vmem>>, vector<1x32xf32>
    %c23 = arith.constant 23 : index
    %c0_130 = arith.constant 0 : index
    %318 = vector.load %arg5[%c23, %c0_130] : memref<41x128xf32, #tpu.memory_space<vmem>>, vector<1x32xf32>
    %cst_131 = arith.constant dense<0.000000e+00> : vector<16xf32>
    %319 = vector.multi_reduction <add>, %316, %cst_131 [1] : vector<16x32xf32> to vector<16xf32>
    %320 = vector.shape_cast %319 : vector<16xf32> to vector<16x1xf32>
    %cst_132 = arith.constant 3.200000e+01 : f32
    %321 = vector.broadcast %cst_132 : f32 to vector<16x1xf32>
    %322 = arith.divf %320, %321 : vector<16x1xf32>
    %323 = vector.broadcast %322 : vector<16x1xf32> to vector<16x32xf32>
    %324 = arith.subf %316, %323 : vector<16x32xf32>
    %325 = arith.mulf %324, %324 : vector<16x32xf32>
    %cst_133 = arith.constant dense<0.000000e+00> : vector<16xf32>
    %326 = vector.multi_reduction <add>, %325, %cst_133 [1] : vector<16x32xf32> to vector<16xf32>
    %327 = vector.shape_cast %326 : vector<16xf32> to vector<16x1xf32>
    %cst_134 = arith.constant 3.200000e+01 : f32
    %328 = vector.broadcast %cst_134 : f32 to vector<16x1xf32>
    %329 = arith.divf %327, %328 : vector<16x1xf32>
    %cst_135 = arith.constant 9.99999974E-6 : f32
    %330 = vector.broadcast %cst_135 : f32 to vector<16x1xf32>
    %331 = arith.addf %329, %330 : vector<16x1xf32>
    %332 = math.rsqrt %331 : vector<16x1xf32>
    %333 = vector.broadcast %332 : vector<16x1xf32> to vector<16x32xf32>
    %334 = arith.mulf %324, %333 : vector<16x32xf32>
    %335 = vector.broadcast %317 : vector<1x32xf32> to vector<16x32xf32>
    %336 = arith.mulf %334, %335 : vector<16x32xf32>
    %337 = vector.broadcast %318 : vector<1x32xf32> to vector<16x32xf32>
    %338 = arith.addf %336, %337 : vector<16x32xf32>
    %c24 = arith.constant 24 : index
    %c0_136 = arith.constant 0 : index
    %339 = vector.load %arg5[%c24, %c0_136] : memref<41x128xf32, #tpu.memory_space<vmem>>, vector<1x64xf32>
    %c25 = arith.constant 25 : index
    %c0_137 = arith.constant 0 : index
    %340 = vector.load %arg5[%c25, %c0_137] : memref<41x128xf32, #tpu.memory_space<vmem>>, vector<1x32xf32>
    %cst_138 = arith.constant dense<0.000000e+00> : vector<16x64xf32>
    %341 = tpu.matmul %338, %214, %cst_138 {dimension_numbers = #tpu.dot_dimension_numbers<[1], [0], [0], [1], [0, 0, 1, 1], [], []>} : vector<16x32xf32>, vector<32x64xf32>, vector<16x64xf32> -> vector<16x64xf32>
    %342 = vector.broadcast %339 : vector<1x64xf32> to vector<16x64xf32>
    %343 = arith.addf %341, %342 : vector<16x64xf32>
    %cst_139 = arith.constant 0.000000e+00 : f32
    %344 = vector.broadcast %cst_139 : f32 to vector<16x64xf32>
    %345 = arith.maximumf %343, %344 : vector<16x64xf32>
    %cst_140 = arith.constant dense<0.000000e+00> : vector<16x32xf32>
    %346 = tpu.matmul %345, %216, %cst_140 {dimension_numbers = #tpu.dot_dimension_numbers<[1], [0], [0], [1], [0, 0, 1, 1], [], []>} : vector<16x64xf32>, vector<64x32xf32>, vector<16x32xf32> -> vector<16x32xf32>
    %347 = vector.broadcast %340 : vector<1x32xf32> to vector<16x32xf32>
    %348 = arith.addf %346, %347 : vector<16x32xf32>
    %349 = arith.addf %338, %348 : vector<16x32xf32>
    %c26 = arith.constant 26 : index
    %c0_141 = arith.constant 0 : index
    %350 = vector.load %arg5[%c26, %c0_141] : memref<41x128xf32, #tpu.memory_space<vmem>>, vector<1x32xf32>
    %c27 = arith.constant 27 : index
    %c0_142 = arith.constant 0 : index
    %351 = vector.load %arg5[%c27, %c0_142] : memref<41x128xf32, #tpu.memory_space<vmem>>, vector<1x32xf32>
    %cst_143 = arith.constant dense<0.000000e+00> : vector<16xf32>
    %352 = vector.multi_reduction <add>, %349, %cst_143 [1] : vector<16x32xf32> to vector<16xf32>
    %353 = vector.shape_cast %352 : vector<16xf32> to vector<16x1xf32>
    %cst_144 = arith.constant 3.200000e+01 : f32
    %354 = vector.broadcast %cst_144 : f32 to vector<16x1xf32>
    %355 = arith.divf %353, %354 : vector<16x1xf32>
    %356 = vector.broadcast %355 : vector<16x1xf32> to vector<16x32xf32>
    %357 = arith.subf %349, %356 : vector<16x32xf32>
    %358 = arith.mulf %357, %357 : vector<16x32xf32>
    %cst_145 = arith.constant dense<0.000000e+00> : vector<16xf32>
    %359 = vector.multi_reduction <add>, %358, %cst_145 [1] : vector<16x32xf32> to vector<16xf32>
    %360 = vector.shape_cast %359 : vector<16xf32> to vector<16x1xf32>
    %cst_146 = arith.constant 3.200000e+01 : f32
    %361 = vector.broadcast %cst_146 : f32 to vector<16x1xf32>
    %362 = arith.divf %360, %361 : vector<16x1xf32>
    %cst_147 = arith.constant 9.99999974E-6 : f32
    %363 = vector.broadcast %cst_147 : f32 to vector<16x1xf32>
    %364 = arith.addf %362, %363 : vector<16x1xf32>
    %365 = math.rsqrt %364 : vector<16x1xf32>
    %366 = vector.broadcast %365 : vector<16x1xf32> to vector<16x32xf32>
    %367 = arith.mulf %357, %366 : vector<16x32xf32>
    %368 = vector.broadcast %350 : vector<1x32xf32> to vector<16x32xf32>
    %369 = arith.mulf %367, %368 : vector<16x32xf32>
    %370 = vector.broadcast %351 : vector<1x32xf32> to vector<16x32xf32>
    %371 = arith.addf %369, %370 : vector<16x32xf32>
    %c11_148 = arith.constant 11 : index
    %c0_149 = arith.constant 0 : index
    %c0_150 = arith.constant 0 : index
    %372 = vector.load %arg3[%c11_148, %c0_149, %c0_150] : memref<17x32x128xf32, #tpu.memory_space<vmem>>, vector<1x32x96xf32>
    %373 = vector.shape_cast %372 : vector<1x32x96xf32> to vector<32x96xf32>
    %c12_151 = arith.constant 12 : index
    %c0_152 = arith.constant 0 : index
    %c0_153 = arith.constant 0 : index
    %374 = vector.load %arg3[%c12_151, %c0_152, %c0_153] : memref<17x32x128xf32, #tpu.memory_space<vmem>>, vector<1x32x32xf32>
    %375 = vector.shape_cast %374 : vector<1x32x32xf32> to vector<32x32xf32>
    %c13_154 = arith.constant 13 : index
    %c0_155 = arith.constant 0 : index
    %c0_156 = arith.constant 0 : index
    %376 = vector.load %arg3[%c13_154, %c0_155, %c0_156] : memref<17x32x128xf32, #tpu.memory_space<vmem>>, vector<1x32x96xf32>
    %377 = vector.shape_cast %376 : vector<1x32x96xf32> to vector<32x96xf32>
    %c14_157 = arith.constant 14 : index
    %c0_158 = arith.constant 0 : index
    %c0_159 = arith.constant 0 : index
    %378 = vector.load %arg3[%c14_157, %c0_158, %c0_159] : memref<17x32x128xf32, #tpu.memory_space<vmem>>, vector<1x32x32xf32>
    %379 = vector.shape_cast %378 : vector<1x32x32xf32> to vector<32x32xf32>
    %c15_160 = arith.constant 15 : index
    %c0_161 = arith.constant 0 : index
    %c0_162 = arith.constant 0 : index
    %380 = vector.load %arg3[%c15_160, %c0_161, %c0_162] : memref<17x32x128xf32, #tpu.memory_space<vmem>>, vector<1x32x64xf32>
    %381 = vector.shape_cast %380 : vector<1x32x64xf32> to vector<32x64xf32>
    %c3_163 = arith.constant 3 : index
    %c0_164 = arith.constant 0 : index
    %c0_165 = arith.constant 0 : index
    %382 = vector.load %arg4[%c3_163, %c0_164, %c0_165] : memref<4x64x32xf32, #tpu.memory_space<vmem>>, vector<1x64x32xf32>
    %383 = vector.shape_cast %382 : vector<1x64x32xf32> to vector<64x32xf32>
    %c28 = arith.constant 28 : index
    %c0_166 = arith.constant 0 : index
    %384 = vector.load %arg5[%c28, %c0_166] : memref<41x128xf32, #tpu.memory_space<vmem>>, vector<1x96xf32>
    %c29 = arith.constant 29 : index
    %c0_167 = arith.constant 0 : index
    %385 = vector.load %arg5[%c29, %c0_167] : memref<41x128xf32, #tpu.memory_space<vmem>>, vector<1x32xf32>
    %cst_168 = arith.constant dense<0.000000e+00> : vector<16x96xf32>
    %386 = tpu.matmul %371, %373, %cst_168 {dimension_numbers = #tpu.dot_dimension_numbers<[1], [0], [0], [1], [0, 0, 1, 1], [], []>} : vector<16x32xf32>, vector<32x96xf32>, vector<16x96xf32> -> vector<16x96xf32>
    %387 = vector.broadcast %384 : vector<1x96xf32> to vector<16x96xf32>
    %388 = arith.addf %386, %387 : vector<16x96xf32>
    %389 = vector.extract_strided_slice %388 {offsets = [0, 0], sizes = [16, 32], strides = [1, 1]} : vector<16x96xf32> to vector<16x32xf32>
    %390 = vector.extract_strided_slice %388 {offsets = [0, 32], sizes = [16, 32], strides = [1, 1]} : vector<16x96xf32> to vector<16x32xf32>
    %391 = vector.extract_strided_slice %388 {offsets = [0, 64], sizes = [16, 32], strides = [1, 1]} : vector<16x96xf32> to vector<16x32xf32>
    %cst_169 = arith.constant 0.353553385 : f32
    %392 = vector.broadcast %cst_169 : f32 to vector<16x32xf32>
    %393 = arith.mulf %389, %392 : vector<16x32xf32>
    %394 = tpu.concatenate %393, %393, %393, %393 in 0 : vector<16x32xf32>, vector<16x32xf32>, vector<16x32xf32>, vector<16x32xf32> -> vector<64x32xf32>
    %395 = arith.mulf %394, %4 : vector<64x32xf32>
    %cst_170 = arith.constant dense<0.000000e+00> : vector<64x16xf32>
    %396 = tpu.matmul %395, %390, %cst_170 {dimension_numbers = #tpu.dot_dimension_numbers<[1], [1], [0], [0], [0, 0, 1, 0], [], []>} : vector<64x32xf32>, vector<16x32xf32>, vector<64x16xf32> -> vector<64x16xf32>
    %397 = arith.addf %396, %2 : vector<64x16xf32>
    %cst_171 = arith.constant dense<0xFF800000> : vector<64xf32>
    %398 = vector.multi_reduction <maximumf>, %397, %cst_171 [1] : vector<64x16xf32> to vector<64xf32>
    %399 = vector.shape_cast %398 : vector<64xf32> to vector<64x1xf32>
    %400 = vector.broadcast %399 : vector<64x1xf32> to vector<64x16xf32>
    %401 = arith.subf %397, %400 : vector<64x16xf32>
    %402 = math.exp %401 : vector<64x16xf32>
    %cst_172 = arith.constant dense<0.000000e+00> : vector<64xf32>
    %403 = vector.multi_reduction <add>, %402, %cst_172 [1] : vector<64x16xf32> to vector<64xf32>
    %404 = vector.shape_cast %403 : vector<64xf32> to vector<64x1xf32>
    %405 = vector.broadcast %404 : vector<64x1xf32> to vector<64x16xf32>
    %406 = arith.divf %402, %405 : vector<64x16xf32>
    %cst_173 = arith.constant dense<0.000000e+00> : vector<64x32xf32>
    %407 = tpu.matmul %406, %391, %cst_173 {dimension_numbers = #tpu.dot_dimension_numbers<[1], [0], [0], [1], [0, 0, 1, 1], [], []>} : vector<64x16xf32>, vector<16x32xf32>, vector<64x32xf32> -> vector<64x32xf32>
    %408 = arith.mulf %407, %4 : vector<64x32xf32>
    %409 = vector.extract_strided_slice %408 {offsets = [0, 0], sizes = [16, 32], strides = [1, 1]} : vector<64x32xf32> to vector<16x32xf32>
    %410 = vector.extract_strided_slice %408 {offsets = [16, 0], sizes = [16, 32], strides = [1, 1]} : vector<64x32xf32> to vector<16x32xf32>
    %411 = arith.addf %409, %410 : vector<16x32xf32>
    %412 = vector.extract_strided_slice %408 {offsets = [32, 0], sizes = [16, 32], strides = [1, 1]} : vector<64x32xf32> to vector<16x32xf32>
    %413 = arith.addf %411, %412 : vector<16x32xf32>
    %414 = vector.extract_strided_slice %408 {offsets = [48, 0], sizes = [16, 32], strides = [1, 1]} : vector<64x32xf32> to vector<16x32xf32>
    %415 = arith.addf %413, %414 : vector<16x32xf32>
    %cst_174 = arith.constant dense<0.000000e+00> : vector<16x32xf32>
    %416 = tpu.matmul %415, %375, %cst_174 {dimension_numbers = #tpu.dot_dimension_numbers<[1], [0], [0], [1], [0, 0, 1, 1], [], []>} : vector<16x32xf32>, vector<32x32xf32>, vector<16x32xf32> -> vector<16x32xf32>
    %417 = vector.broadcast %385 : vector<1x32xf32> to vector<16x32xf32>
    %418 = arith.addf %416, %417 : vector<16x32xf32>
    %419 = arith.addf %371, %418 : vector<16x32xf32>
    %c30 = arith.constant 30 : index
    %c0_175 = arith.constant 0 : index
    %420 = vector.load %arg5[%c30, %c0_175] : memref<41x128xf32, #tpu.memory_space<vmem>>, vector<1x32xf32>
    %c31 = arith.constant 31 : index
    %c0_176 = arith.constant 0 : index
    %421 = vector.load %arg5[%c31, %c0_176] : memref<41x128xf32, #tpu.memory_space<vmem>>, vector<1x32xf32>
    %cst_177 = arith.constant dense<0.000000e+00> : vector<16xf32>
    %422 = vector.multi_reduction <add>, %419, %cst_177 [1] : vector<16x32xf32> to vector<16xf32>
    %423 = vector.shape_cast %422 : vector<16xf32> to vector<16x1xf32>
    %cst_178 = arith.constant 3.200000e+01 : f32
    %424 = vector.broadcast %cst_178 : f32 to vector<16x1xf32>
    %425 = arith.divf %423, %424 : vector<16x1xf32>
    %426 = vector.broadcast %425 : vector<16x1xf32> to vector<16x32xf32>
    %427 = arith.subf %419, %426 : vector<16x32xf32>
    %428 = arith.mulf %427, %427 : vector<16x32xf32>
    %cst_179 = arith.constant dense<0.000000e+00> : vector<16xf32>
    %429 = vector.multi_reduction <add>, %428, %cst_179 [1] : vector<16x32xf32> to vector<16xf32>
    %430 = vector.shape_cast %429 : vector<16xf32> to vector<16x1xf32>
    %cst_180 = arith.constant 3.200000e+01 : f32
    %431 = vector.broadcast %cst_180 : f32 to vector<16x1xf32>
    %432 = arith.divf %430, %431 : vector<16x1xf32>
    %cst_181 = arith.constant 9.99999974E-6 : f32
    %433 = vector.broadcast %cst_181 : f32 to vector<16x1xf32>
    %434 = arith.addf %432, %433 : vector<16x1xf32>
    %435 = math.rsqrt %434 : vector<16x1xf32>
    %436 = vector.broadcast %435 : vector<16x1xf32> to vector<16x32xf32>
    %437 = arith.mulf %427, %436 : vector<16x32xf32>
    %438 = vector.broadcast %420 : vector<1x32xf32> to vector<16x32xf32>
    %439 = arith.mulf %437, %438 : vector<16x32xf32>
    %440 = vector.broadcast %421 : vector<1x32xf32> to vector<16x32xf32>
    %441 = arith.addf %439, %440 : vector<16x32xf32>
    %c32 = arith.constant 32 : index
    %c0_182 = arith.constant 0 : index
    %442 = vector.load %arg5[%c32, %c0_182] : memref<41x128xf32, #tpu.memory_space<vmem>>, vector<1x96xf32>
    %c33 = arith.constant 33 : index
    %c0_183 = arith.constant 0 : index
    %443 = vector.load %arg5[%c33, %c0_183] : memref<41x128xf32, #tpu.memory_space<vmem>>, vector<1x32xf32>
    %444 = vector.extract_strided_slice %377 {offsets = [0, 0], sizes = [32, 32], strides = [1, 1]} : vector<32x96xf32> to vector<32x32xf32>
    %cst_184 = arith.constant dense<0.000000e+00> : vector<16x32xf32>
    %445 = tpu.matmul %441, %444, %cst_184 {dimension_numbers = #tpu.dot_dimension_numbers<[1], [0], [0], [1], [0, 0, 1, 1], [], []>} : vector<16x32xf32>, vector<32x32xf32>, vector<16x32xf32> -> vector<16x32xf32>
    %446 = vector.extract_strided_slice %442 {offsets = [0, 0], sizes = [1, 32], strides = [1, 1]} : vector<1x96xf32> to vector<1x32xf32>
    %447 = vector.broadcast %446 : vector<1x32xf32> to vector<16x32xf32>
    %448 = arith.addf %445, %447 : vector<16x32xf32>
    %449 = vector.extract_strided_slice %377 {offsets = [0, 32], sizes = [32, 64], strides = [1, 1]} : vector<32x96xf32> to vector<32x64xf32>
    %cst_185 = arith.constant dense<0.000000e+00> : vector<16x64xf32>
    %450 = tpu.matmul %203, %449, %cst_185 {dimension_numbers = #tpu.dot_dimension_numbers<[1], [0], [0], [1], [0, 0, 1, 1], [], []>} : vector<16x32xf32>, vector<32x64xf32>, vector<16x64xf32> -> vector<16x64xf32>
    %451 = vector.extract_strided_slice %442 {offsets = [0, 32], sizes = [1, 64], strides = [1, 1]} : vector<1x96xf32> to vector<1x64xf32>
    %452 = vector.broadcast %451 : vector<1x64xf32> to vector<16x64xf32>
    %453 = arith.addf %450, %452 : vector<16x64xf32>
    %454 = vector.extract_strided_slice %453 {offsets = [0, 0], sizes = [16, 32], strides = [1, 1]} : vector<16x64xf32> to vector<16x32xf32>
    %455 = vector.extract_strided_slice %453 {offsets = [0, 32], sizes = [16, 32], strides = [1, 1]} : vector<16x64xf32> to vector<16x32xf32>
    %cst_186 = arith.constant 0.353553385 : f32
    %456 = vector.broadcast %cst_186 : f32 to vector<16x32xf32>
    %457 = arith.mulf %448, %456 : vector<16x32xf32>
    %458 = tpu.concatenate %457, %457, %457, %457 in 0 : vector<16x32xf32>, vector<16x32xf32>, vector<16x32xf32>, vector<16x32xf32> -> vector<64x32xf32>
    %459 = arith.mulf %458, %4 : vector<64x32xf32>
    %cst_187 = arith.constant dense<0.000000e+00> : vector<64x16xf32>
    %460 = tpu.matmul %459, %454, %cst_187 {dimension_numbers = #tpu.dot_dimension_numbers<[1], [1], [0], [0], [0, 0, 1, 0], [], []>} : vector<64x32xf32>, vector<16x32xf32>, vector<64x16xf32> -> vector<64x16xf32>
    %461 = arith.addf %460, %3 : vector<64x16xf32>
    %cst_188 = arith.constant dense<0xFF800000> : vector<64xf32>
    %462 = vector.multi_reduction <maximumf>, %461, %cst_188 [1] : vector<64x16xf32> to vector<64xf32>
    %463 = vector.shape_cast %462 : vector<64xf32> to vector<64x1xf32>
    %464 = vector.broadcast %463 : vector<64x1xf32> to vector<64x16xf32>
    %465 = arith.subf %461, %464 : vector<64x16xf32>
    %466 = math.exp %465 : vector<64x16xf32>
    %cst_189 = arith.constant dense<0.000000e+00> : vector<64xf32>
    %467 = vector.multi_reduction <add>, %466, %cst_189 [1] : vector<64x16xf32> to vector<64xf32>
    %468 = vector.shape_cast %467 : vector<64xf32> to vector<64x1xf32>
    %469 = vector.broadcast %468 : vector<64x1xf32> to vector<64x16xf32>
    %470 = arith.divf %466, %469 : vector<64x16xf32>
    %cst_190 = arith.constant dense<0.000000e+00> : vector<64x32xf32>
    %471 = tpu.matmul %470, %455, %cst_190 {dimension_numbers = #tpu.dot_dimension_numbers<[1], [0], [0], [1], [0, 0, 1, 1], [], []>} : vector<64x16xf32>, vector<16x32xf32>, vector<64x32xf32> -> vector<64x32xf32>
    %472 = arith.mulf %471, %4 : vector<64x32xf32>
    %473 = vector.extract_strided_slice %472 {offsets = [0, 0], sizes = [16, 32], strides = [1, 1]} : vector<64x32xf32> to vector<16x32xf32>
    %474 = vector.extract_strided_slice %472 {offsets = [16, 0], sizes = [16, 32], strides = [1, 1]} : vector<64x32xf32> to vector<16x32xf32>
    %475 = arith.addf %473, %474 : vector<16x32xf32>
    %476 = vector.extract_strided_slice %472 {offsets = [32, 0], sizes = [16, 32], strides = [1, 1]} : vector<64x32xf32> to vector<16x32xf32>
    %477 = arith.addf %475, %476 : vector<16x32xf32>
    %478 = vector.extract_strided_slice %472 {offsets = [48, 0], sizes = [16, 32], strides = [1, 1]} : vector<64x32xf32> to vector<16x32xf32>
    %479 = arith.addf %477, %478 : vector<16x32xf32>
    %cst_191 = arith.constant dense<0.000000e+00> : vector<16x32xf32>
    %480 = tpu.matmul %479, %379, %cst_191 {dimension_numbers = #tpu.dot_dimension_numbers<[1], [0], [0], [1], [0, 0, 1, 1], [], []>} : vector<16x32xf32>, vector<32x32xf32>, vector<16x32xf32> -> vector<16x32xf32>
    %481 = vector.broadcast %443 : vector<1x32xf32> to vector<16x32xf32>
    %482 = arith.addf %480, %481 : vector<16x32xf32>
    %c0_192 = arith.constant 0 : index
    %c0_193 = arith.constant 0 : index
    %483 = vector.load %arg7[%c0_192, %c0_193] : memref<64x16xf32, #tpu.memory_space<vmem>>, vector<64x16xf32>
    tpu.vector_store %arg7[%c0_192, %c0_193], %470 {strides = array<i32>} : memref<64x16xf32, #tpu.memory_space<vmem>>, vector<64x16xf32>,
    %484 = arith.addf %441, %482 : vector<16x32xf32>
    %c34 = arith.constant 34 : index
    %c0_194 = arith.constant 0 : index
    %485 = vector.load %arg5[%c34, %c0_194] : memref<41x128xf32, #tpu.memory_space<vmem>>, vector<1x32xf32>
    %c35 = arith.constant 35 : index
    %c0_195 = arith.constant 0 : index
    %486 = vector.load %arg5[%c35, %c0_195] : memref<41x128xf32, #tpu.memory_space<vmem>>, vector<1x32xf32>
    %cst_196 = arith.constant dense<0.000000e+00> : vector<16xf32>
    %487 = vector.multi_reduction <add>, %484, %cst_196 [1] : vector<16x32xf32> to vector<16xf32>
    %488 = vector.shape_cast %487 : vector<16xf32> to vector<16x1xf32>
    %cst_197 = arith.constant 3.200000e+01 : f32
    %489 = vector.broadcast %cst_197 : f32 to vector<16x1xf32>
    %490 = arith.divf %488, %489 : vector<16x1xf32>
    %491 = vector.broadcast %490 : vector<16x1xf32> to vector<16x32xf32>
    %492 = arith.subf %484, %491 : vector<16x32xf32>
    %493 = arith.mulf %492, %492 : vector<16x32xf32>
    %cst_198 = arith.constant dense<0.000000e+00> : vector<16xf32>
    %494 = vector.multi_reduction <add>, %493, %cst_198 [1] : vector<16x32xf32> to vector<16xf32>
    %495 = vector.shape_cast %494 : vector<16xf32> to vector<16x1xf32>
    %cst_199 = arith.constant 3.200000e+01 : f32
    %496 = vector.broadcast %cst_199 : f32 to vector<16x1xf32>
    %497 = arith.divf %495, %496 : vector<16x1xf32>
    %cst_200 = arith.constant 9.99999974E-6 : f32
    %498 = vector.broadcast %cst_200 : f32 to vector<16x1xf32>
    %499 = arith.addf %497, %498 : vector<16x1xf32>
    %500 = math.rsqrt %499 : vector<16x1xf32>
    %501 = vector.broadcast %500 : vector<16x1xf32> to vector<16x32xf32>
    %502 = arith.mulf %492, %501 : vector<16x32xf32>
    %503 = vector.broadcast %485 : vector<1x32xf32> to vector<16x32xf32>
    %504 = arith.mulf %502, %503 : vector<16x32xf32>
    %505 = vector.broadcast %486 : vector<1x32xf32> to vector<16x32xf32>
    %506 = arith.addf %504, %505 : vector<16x32xf32>
    %c36 = arith.constant 36 : index
    %c0_201 = arith.constant 0 : index
    %507 = vector.load %arg5[%c36, %c0_201] : memref<41x128xf32, #tpu.memory_space<vmem>>, vector<1x64xf32>
    %c37 = arith.constant 37 : index
    %c0_202 = arith.constant 0 : index
    %508 = vector.load %arg5[%c37, %c0_202] : memref<41x128xf32, #tpu.memory_space<vmem>>, vector<1x32xf32>
    %cst_203 = arith.constant dense<0.000000e+00> : vector<16x64xf32>
    %509 = tpu.matmul %506, %381, %cst_203 {dimension_numbers = #tpu.dot_dimension_numbers<[1], [0], [0], [1], [0, 0, 1, 1], [], []>} : vector<16x32xf32>, vector<32x64xf32>, vector<16x64xf32> -> vector<16x64xf32>
    %510 = vector.broadcast %507 : vector<1x64xf32> to vector<16x64xf32>
    %511 = arith.addf %509, %510 : vector<16x64xf32>
    %cst_204 = arith.constant 0.000000e+00 : f32
    %512 = vector.broadcast %cst_204 : f32 to vector<16x64xf32>
    %513 = arith.maximumf %511, %512 : vector<16x64xf32>
    %cst_205 = arith.constant dense<0.000000e+00> : vector<16x32xf32>
    %514 = tpu.matmul %513, %383, %cst_205 {dimension_numbers = #tpu.dot_dimension_numbers<[1], [0], [0], [1], [0, 0, 1, 1], [], []>} : vector<16x64xf32>, vector<64x32xf32>, vector<16x32xf32> -> vector<16x32xf32>
    %515 = vector.broadcast %508 : vector<1x32xf32> to vector<16x32xf32>
    %516 = arith.addf %514, %515 : vector<16x32xf32>
    %517 = arith.addf %506, %516 : vector<16x32xf32>
    %c38 = arith.constant 38 : index
    %c0_206 = arith.constant 0 : index
    %518 = vector.load %arg5[%c38, %c0_206] : memref<41x128xf32, #tpu.memory_space<vmem>>, vector<1x32xf32>
    %c39 = arith.constant 39 : index
    %c0_207 = arith.constant 0 : index
    %519 = vector.load %arg5[%c39, %c0_207] : memref<41x128xf32, #tpu.memory_space<vmem>>, vector<1x32xf32>
    %cst_208 = arith.constant dense<0.000000e+00> : vector<16xf32>
    %520 = vector.multi_reduction <add>, %517, %cst_208 [1] : vector<16x32xf32> to vector<16xf32>
    %521 = vector.shape_cast %520 : vector<16xf32> to vector<16x1xf32>
    %cst_209 = arith.constant 3.200000e+01 : f32
    %522 = vector.broadcast %cst_209 : f32 to vector<16x1xf32>
    %523 = arith.divf %521, %522 : vector<16x1xf32>
    %524 = vector.broadcast %523 : vector<16x1xf32> to vector<16x32xf32>
    %525 = arith.subf %517, %524 : vector<16x32xf32>
    %526 = arith.mulf %525, %525 : vector<16x32xf32>
    %cst_210 = arith.constant dense<0.000000e+00> : vector<16xf32>
    %527 = vector.multi_reduction <add>, %526, %cst_210 [1] : vector<16x32xf32> to vector<16xf32>
    %528 = vector.shape_cast %527 : vector<16xf32> to vector<16x1xf32>
    %cst_211 = arith.constant 3.200000e+01 : f32
    %529 = vector.broadcast %cst_211 : f32 to vector<16x1xf32>
    %530 = arith.divf %528, %529 : vector<16x1xf32>
    %cst_212 = arith.constant 9.99999974E-6 : f32
    %531 = vector.broadcast %cst_212 : f32 to vector<16x1xf32>
    %532 = arith.addf %530, %531 : vector<16x1xf32>
    %533 = math.rsqrt %532 : vector<16x1xf32>
    %534 = vector.broadcast %533 : vector<16x1xf32> to vector<16x32xf32>
    %535 = arith.mulf %525, %534 : vector<16x32xf32>
    %536 = vector.broadcast %518 : vector<1x32xf32> to vector<16x32xf32>
    %537 = arith.mulf %535, %536 : vector<16x32xf32>
    %538 = vector.broadcast %519 : vector<1x32xf32> to vector<16x32xf32>
    %539 = arith.addf %537, %538 : vector<16x32xf32>
    %c16_213 = arith.constant 16 : index
    %c0_214 = arith.constant 0 : index
    %c0_215 = arith.constant 0 : index
    %540 = vector.load %arg3[%c16_213, %c0_214, %c0_215] : memref<17x32x128xf32, #tpu.memory_space<vmem>>, vector<1x32x128xf32>
    %541 = vector.shape_cast %540 : vector<1x32x128xf32> to vector<32x128xf32>
    %c40 = arith.constant 40 : index
    %c0_216 = arith.constant 0 : index
    %542 = vector.load %arg5[%c40, %c0_216] : memref<41x128xf32, #tpu.memory_space<vmem>>, vector<1x128xf32>
    %cst_217 = arith.constant dense<0.000000e+00> : vector<16x128xf32>
    %543 = tpu.matmul %539, %541, %cst_217 {dimension_numbers = #tpu.dot_dimension_numbers<[1], [0], [0], [1], [0, 0, 1, 1], [], []>} : vector<16x32xf32>, vector<32x128xf32>, vector<16x128xf32> -> vector<16x128xf32>
    %544 = vector.broadcast %542 : vector<1x128xf32> to vector<16x128xf32>
    %545 = arith.addf %543, %544 : vector<16x128xf32>
    %cst_218 = arith.constant dense<0xFF800000> : vector<16xf32>
    %546 = vector.multi_reduction <maximumf>, %545, %cst_218 [1] : vector<16x128xf32> to vector<16xf32>
    %547 = vector.shape_cast %546 : vector<16xf32> to vector<16x1xf32>
    %548 = vector.broadcast %547 : vector<16x1xf32> to vector<16x128xf32>
    %549 = arith.subf %545, %548 : vector<16x128xf32>
    %550 = math.exp %549 : vector<16x128xf32>
    %cst_219 = arith.constant dense<0.000000e+00> : vector<16xf32>
    %551 = vector.multi_reduction <add>, %550, %cst_219 [1] : vector<16x128xf32> to vector<16xf32>
    %552 = vector.shape_cast %551 : vector<16xf32> to vector<16x1xf32>
    %553 = math.log %552 : vector<16x1xf32>
    %554 = arith.addf %553, %547 : vector<16x1xf32>
    %555 = vector.broadcast %554 : vector<16x1xf32> to vector<16x128xf32>
    %556 = arith.subf %545, %555 : vector<16x128xf32>
    %c0_220 = arith.constant 0 : index
    %c0_221 = arith.constant 0 : index
    %557 = vector.load %arg6[%c0_220, %c0_221] : memref<16x128xf32, #tpu.memory_space<vmem>>, vector<16x128xf32>
    tpu.vector_store %arg6[%c0_220, %c0_221], %556 {strides = array<i32>} : memref<16x128xf32, #tpu.memory_space<vmem>>, vector<16x128xf32>,
    return
  }
}

</mosaic_0001>

<bundles_post_ra>
// kernel: transformer_forward.1
= control target key start
LH: loop header
LB: loop body
LE: loop exit
PB: predicated region body
PF: predicated region fallthrough
CT: control target
= control target key end

     0   :  { %s6304_s9 = smov 80   ;;  %vm63_vm0 = vcmask 261120   ;;  %s6305_s24 = smov 96   ;;  %vm326_vm1 = vcmask 130048   ;;  %vm785_vm2 = vcmask 523264   ;;  %s7620_s3 = inlined_call_operand.vmem [shape: f32[17,32,128], index: 3, kind: input, shape index: {}]   ;;  %s7621_s2 = inlined_call_operand.vmem [shape: f32[64,80], index: 2, kind: input, shape index: {}]   ;;  %s7622_s0 = inlined_call_operand.vmem [shape: f32[16,32], index: 0, kind: input, shape index: {}]   ;;  %s7623_s5 = inlined_call_operand.vmem [shape: f32[41,128], index: 5, kind: input, shape index: {}]   ;;  %s7624_s4 = inlined_call_operand.vmem [shape: f32[4,64,32], index: 4, kind: input, shape index: {}]   ;;  %s7625_s1 = inlined_call_operand.vmem [shape: f32[16,32], index: 1, kind: input, shape index: {}]   ;;  %s7626_s7 = inlined_call_operand.vmem [shape: f32[64,16], index: 7, kind: output, shape index: {1}]   ;;  %s7627_s6 = inlined_call_operand.vmem [shape: f32[16,128], index: 6, kind: output, shape index: {0}]  }
   0x1   :  { %v38_v0 = vld [vmem:[%s7620_s3 + $0x18] sm:$0xff]  ;;  %v37_v1 = vld [vmem:[%s7620_s3 + $0x10] sm:$0xff]  ;;  %v6357_v2 = vld [vmem:[%s7621_s2 + $0x8] sm:$0xff]  ;;  %s6306_s10 = smov 64   ;;  %s6307_s11 = smov 112  }
   0x2   :  { %5575 = vmatprep.subr.mxu0 %v38_v0  ;;  %v36_v3 = vld [vmem:[%s7620_s3 + $0x8] sm:$0xff]  ;;  %157 = vrot.lane.b32.xlu1 %v6357_v2, %s6304_s9  ;;  %v6367_v4 = vld [vmem:[%s7621_s2] sm:$0xff]  ;;  %v6382_v7 = vld [vmem:[%s7621_s2 + $0x10] sm:$0xff] }
   0x3   :  { %5576 = vmatpush3.msra.mxu0 %v38_v0  ;;  %v35_v5 = vld [vmem:[%s7620_s3] sm:$0xff]  ;;  %v6375_v6 = vld [vmem:[%s7622_s0 + $0x8] sm:$0xff]  ;;  %v6416_v15 = vld [vmem:[%s7621_s2 + $0x18] sm:$0xff] }
   0x4   :  { %5577 = vmatprep.subr.mxu0 %v37_v1  ;;  %v6391_v8 = vld [vmem:[%s7621_s2 + $0x20] sm:$0xff]  ;;  %v6423_v16 = vld [vmem:[%s7621_s2 + $0x28] sm:$0xff]  ;;  %v6430_v17 = vld [vmem:[%s7621_s2 + $0x38] sm:$0xff] }
   0x5   :  { %5578 = vmatpush3.msra.mxu0 %v37_v1  ;;  %v6398_v9 = vld [vmem:[%s7622_s0] sm:$0xff]  ;;  %v6486_v53 = vld [vmem:[%s7621_s2 + $0x30] sm:$0xff] }
   0x6   :  { %5579 = vmatprep.subr.mxu0 %v36_v3  ;;  %155 = vrot.lane.b32.xlu1 %v6367_v4, %s6304_s9  ;;  %v5026_v10 = vld [vmem:[%s7623_s5] ss:$0 sm:$0xff] }
   0x7   :  { %5580 = vmatpush3.msra.mxu0 %v36_v3  ;;  %5583 = vmatprep.mubr.msk.f32.mxu1 %vm63_vm0, %v6398_v9 }
   0x8   :  { %5581 = vmatprep.subr.mxu0 %v35_v5 }
   0x9   :  { %5582 = vmatpush3.msra.mxu0 %v35_v5 }
   0xa   :  { %5584 = vmatmul.mubr.msk.f32.vlgmr.msra.gmra.mxu0 %vm63_vm0, %v6375_v6  ;;  %159 = vrot.lane.b32.xlu1 %v6382_v7, %s6304_s9 }
   0xe   :  { %163 = vrot.lane.b32.xlu1 %v6391_v8, %s6304_s9 }
  0x74   :  { %v6434_v18 = vpop.permute.xlu1 %157 }
  0x78   :  { %v6436_v20 = vpop.permute.xlu1 %155 }
  0x7c   :  { %v6446_v24 = vpop.permute.xlu1 %159 }
  0x80   :  { %v6460_v31 = vpop.permute.xlu1 %163 }
  0xca   :  { %v5585_v11 = vpop.f32.mrf.mxu0 }
  0xcb   :  { %v6405_v12 = vadd.f32 %v5585_v11, %v5026_v10 }
  0xcc   :  { %v136_v13 = vpop.f32.mrf.mxu0 }
  0xcd   :  { %191 = vrot.lane.b32.xlu0 %v6405_v12, %s6305_s24  ;;  %v6409_v14 = vadd.f32 %v5026_v10, %v136_v13  ;;  %v146_v21 = vmul.f32 0.35355338, %v6405_v12 }
  0xcf   :  { %v6442_v22 = vmul.f32 0.35355338, %v6409_v14  ;;  %v180_v25 = vmul.f32 %v6434_v18, %v146_v21 }
  0xd1   :  { %189 = vrot.lane.b32.xlu0 %v6409_v14, %s6305_s24  ;;  %v179_v27 = vmul.f32 %v6436_v20, %v6442_v22  ;;  %v181_v30 = vmul.f32 %v6446_v24, %v6442_v22  ;;  %v183_v34 = vmul.f32 %v6460_v31, %v6442_v22 }
  0xd5   :  { %161 = vrot.lane.b32.xlu0 %v6416_v15, %s6304_s9 }
  0xd9   :  { %165 = vrot.lane.b32.xlu0 %v6423_v16, %s6304_s9 }
  0xdd   :  { %169 = vrot.lane.b32.xlu0 %v6430_v17, %s6304_s9 }
 0x13f   :  { %v192_v19 = vpop.permute.xlu0 %191 }
 0x140   :  { %5586 = vmatprep.subr.msk.mxu1 %vm63_vm0, %v192_v19 }
 0x141   :  { %5587 = vmatpush3.xpose.msk.msra.mxu1 %vm63_vm0, %v192_v19 }
 0x143   :  { %v190_v23 = vpop.permute.xlu0 %189 }
 0x144   :  { %5588 = vmatprep.subr.msk.mxu1 %vm63_vm0, %v190_v23 }
 0x145   :  { %5589 = vmatpush3.xpose.msk.msra.mxu1 %vm63_vm0, %v190_v23 }
 0x147   :  { %v6449_v26 = vpop.permute.xlu0 %161 }
 0x148   :  { %5591 = vmatmul.mubr.msk.f32.vlgmr.msra.gmra.mxu1 %vm63_vm0, %v180_v25  ;;  %v182_v28 = vmul.f32 %v6449_v26, %v146_v21 }
 0x149   :  { %5590 = vmatprep.mubr.msk.f32.mxu1 %vm63_vm0, %v179_v27 }
 0x14b   :  { %v6456_v29 = vpop.permute.xlu0 %165 }
 0x14c   :  { %5594 = vmatmul.mubr.msk.f32.gmra.mxu1 %vm63_vm0, %v182_v28  ;;  %v184_v32 = vmul.f32 %v6456_v29, %v146_v21 }
 0x14d   :  { %5593 = vmatprep.mubr.msk.f32.mxu1 %vm63_vm0, %v181_v30 }
 0x14f   :  { %v6465_v33 = vpop.permute.xlu0 %169 }
 0x150   :  { %5597 = vmatmul.mubr.msk.f32.gmra.mxu1 %vm63_vm0, %v184_v32  ;;  %v186_v35 = vmul.f32 %v6465_v33, %v146_v21 }
 0x151   :  { %5596 = vmatprep.mubr.msk.f32.mxu1 %vm63_vm0, %v183_v34 }
 0x154   :  { %5600 = vmatmul.mubr.msk.f32.gmra.mxu1 %vm63_vm0, %v186_v35 }
 0x208   :  { %v5592_v36 = vpop.f32.mrf.mxu1 }
 0x209   :  { %v293_v37 = vadd.f32 %v5592_v36, %v6357_v2 }
 0x20a   :  { %v287_v38 = vpop.f32.mrf.mxu1 }
 0x20b   :  { %v288_v39 = vadd.f32 %v287_v38, %v6367_v4  ;;  %v330_v40 = vsel %vm326_vm1, %v293_v37, -inf }
 0x20c   :  { %331 = vmax.xlane.f32.xlu0 %v330_v40  ;;  %v5595_v41 = vpop.f32.mrf.mxu1 }
 0x20d   :  { %v303_v42 = vadd.f32 %v5595_v41, %v6416_v15  ;;  %v327_v43 = vsel %vm326_vm1, %v288_v39, -inf }
 0x20e   :  { %v297_v44 = vpop.f32.mrf.mxu1  ;;  %328 = vmax.xlane.f32.xlu1 %v327_v43 }
 0x20f   :  { %v298_v45 = vadd.f32 %v297_v44, %v6382_v7  ;;  %v336_v49 = vsel %vm326_vm1, %v303_v42, -inf }
 0x210   :  { %v5598_v46 = vpop.f32.mrf.mxu1 }
 0x211   :  { %v313_v47 = vadd.f32 %v5598_v46, %v6423_v16  ;;  %v333_v48 = vsel %vm326_vm1, %v298_v45, -inf }
 0x212   :  { %v307_v50 = vpop.f32.mrf.mxu1  ;;  %334 = vmax.xlane.f32.xlu0 %v333_v48  ;;  %337 = vmax.xlane.f32.xlu1 %v336_v49 }
 0x213   :  { %v308_v51 = vadd.f32 %v307_v50, %v6391_v8  ;;  %v342_v56 = vsel %vm326_vm1, %v313_v47, -inf }
 0x214   :  { %v5601_v52 = vpop.f32.mrf.mxu1 }
 0x215   :  { %v323_v54 = vadd.f32 %v5601_v52, %v6430_v17  ;;  %v339_v55 = vsel %vm326_vm1, %v308_v51, -inf }
 0x216   :  { %v317_v57 = vpop.f32.mrf.mxu1  ;;  %340 = vmax.xlane.f32.xlu0 %v339_v55  ;;  %343 = vmax.xlane.f32.xlu1 %v342_v56 }
 0x217   :  { %v318_v58 = vadd.f32 %v317_v57, %v6486_v53  ;;  %v348_v60 = vsel %vm326_vm1, %v323_v54, -inf }
 0x219   :  { %v345_v59 = vsel %vm326_vm1, %v318_v58, -inf }
 0x21a   :  { %346 = vmax.xlane.f32.xlu0 %v345_v59  ;;  %349 = vmax.xlane.f32.xlu1 %v348_v60 }
 0x295   :  { %v332_v61 = vpop.xlane.xlu0 %331 }
 0x296   :  { %v352_v62 = vsub.f32 %v293_v37, %v332_v61 }
 0x297   :  { %v329_v63 = vpop.xlane.xlu1 %328 }
 0x298   :  { %v361_v0 = vmul.f32 1.442695, %v352_v62  ;;  %v351_v1 = vsub.f32 %v288_v39, %v329_v63 }
 0x29a   :  { %6056 = vpow2.f32 %v361_v0  ;;  %v359_v3 = vmul.f32 1.442695, %v351_v1 }
 0x29b   :  { %v335_v5 = vpop.xlane.xlu0 %334  ;;  %v338_v10 = vpop.xlane.xlu1 %337 }
 0x29c   :  { %6058 = vpow2.f32 %v359_v3  ;;  %v353_v11 = vsub.f32 %v298_v45, %v335_v5  ;;  %v354_v13 = vsub.f32 %v303_v42, %v338_v10 }
 0x29e   :  { %v363_v19 = vmul.f32 1.442695, %v353_v11  ;;  %v365_v21 = vmul.f32 1.442695, %v354_v13 }
 0x29f   :  { %v341_v23 = vpop.xlane.xlu0 %340  ;;  %v344_v25 = vpop.xlane.xlu1 %343 }
 0x2a0   :  { %6060 = vpow2.f32 %v363_v19  ;;  %v355_v27 = vsub.f32 %v308_v51, %v341_v23  ;;  %v356_v28 = vsub.f32 %v313_v47, %v344_v25 }
 0x2a1   :  { %6062 = vpow2.f32 %v365_v21 }
 0x2a2   :  { %v367_v30 = vmul.f32 1.442695, %v355_v27  ;;  %v369_v32 = vmul.f32 1.442695, %v356_v28 }
 0x2a3   :  { %v347_v34 = vpop.xlane.xlu0 %346  ;;  %v350_v35 = vpop.xlane.xlu1 %349 }
 0x2a4   :  { %6064 = vpow2.f32 %v367_v30  ;;  %v357_v36 = vsub.f32 %v318_v58, %v347_v34  ;;  %v358_v37 = vsub.f32 %v323_v54, %v350_v35 }
 0x2a5   :  { %6066 = vpow2.f32 %v369_v32 }
 0x2a6   :  { %v371_v38 = vmul.f32 1.442695, %v357_v36  ;;  %v373_v39 = vmul.f32 1.442695, %v358_v37  ;;  %v5021_v37 = vld [vmem:[%s7620_s3 + $0x38] sm:$0xff] }
 0x2a7   :  { %v6057_v40 = vpop.eup %6056  ;;  %5618 = vmatprep.subr.mxu1 %v5021_v37 }
 0x2a8   :  { %6068 = vpow2.f32 %v371_v38  ;;  %v378_v41 = vsel %vm326_vm1, %v6057_v40, 0.0  ;;  %5619 = vmatpush3.msra.mxu1 %v5021_v37  ;;  %v5020_v38 = vld [vmem:[%s7620_s3 + $0x30] sm:$0xff]  ;;  %v5022_v37 = vld [vmem:[%s7620_s3 + $0x40] sm:$0xff] }
 0x2a9   :  { %v6059_v42 = vpop.eup %6058  ;;  %6070 = vpow2.f32 %v373_v39  ;;  %379 = vadd.xlane.f32.xlu1 %v378_v41  ;;  %5620 = vmatprep.subr.mxu1 %v5020_v38  ;;  %v5019_v39 = vld [vmem:[%s7620_s3 + $0x28] sm:$0xff] }
 0x2aa   :  { %v375_v43 = vsel %vm326_vm1, %v6059_v42, 0.0  ;;  %5621 = vmatpush3.msra.mxu1 %v5020_v38  ;;  %v56_v38 = vld [vmem:[%s7624_s4 + $0x38] sm:$0xff] }
 0x2ab   :  { %376 = vadd.xlane.f32.xlu0 %v375_v43  ;;  %5622 = vmatprep.subr.mxu1 %v5019_v39 }
 0x2ac   :  { %5623 = vmatpush3.msra.mxu1 %v5019_v39  ;;  %v55_v39 = vld [vmem:[%s7624_s4 + $0x30] sm:$0xff] }
 0x2ad   :  { %v6061_v44 = vpop.eup %6060 }
 0x2ae   :  { %v6063_v45 = vpop.eup %6062  ;;  %v381_v46 = vsel %vm326_vm1, %v6061_v44, 0.0 }
 0x2af   :  { %382 = vadd.xlane.f32.xlu0 %v381_v46  ;;  %v384_v47 = vsel %vm326_vm1, %v6063_v45, 0.0 }
 0x2b0   :  { %385 = vadd.xlane.f32.xlu1 %v384_v47 }
 0x2b1   :  { %v6065_v48 = vpop.eup %6064 }
 0x2b2   :  { %v6067_v49 = vpop.eup %6066  ;;  %v387_v50 = vsel %vm326_vm1, %v6065_v48, 0.0 }
 0x2b3   :  { %388 = vadd.xlane.f32.xlu0 %v387_v50  ;;  %v390_v51 = vsel %vm326_vm1, %v6067_v49, 0.0 }
 0x2b4   :  { %391 = vadd.xlane.f32.xlu1 %v390_v51 }
 0x2b5   :  { %v6069_v52 = vpop.eup %6068 }
 0x2b6   :  { %v6071_v54 = vpop.eup %6070  ;;  %v393_v55 = vsel %vm326_vm1, %v6069_v52, 0.0 }
 0x2b7   :  { %394 = vadd.xlane.f32.xlu0 %v393_v55  ;;  %v396_v56 = vsel %vm326_vm1, %v6071_v54, 0.0 }
 0x2b8   :  { %397 = vadd.xlane.f32.xlu1 %v396_v56 }
 0x2c9   :  { %417 = vrot.lane.b32.xlu1 %v6405_v12, %s6306_s10 }
 0x2cd   :  { %415 = vrot.lane.b32.xlu1 %v6409_v14, %s6306_s10  ;;  %167 = vrot.lane.b32.xlu0 %v6486_v53, %s6304_s9 }
 0x332   :  { %v380_v58 = vpop.xlane.xlu1 %379 }
 0x334   :  { %v377_v57 = vpop.xlane.xlu0 %376 }
 0x335   :  { %6072 = vrcp.f32 %v377_v57 }
 0x336   :  { %6074 = vrcp.f32 %v380_v58 }
 0x338   :  { %v383_v59 = vpop.xlane.xlu0 %382 }
 0x339   :  { %v386_v60 = vpop.xlane.xlu1 %385  ;;  %6076 = vrcp.f32 %v383_v59 }
 0x33a   :  { %6078 = vrcp.f32 %v386_v60 }
 0x33c   :  { %v389_v61 = vpop.xlane.xlu0 %388 }
 0x33d   :  { %v392_v62 = vpop.xlane.xlu1 %391  ;;  %6080 = vrcp.f32 %v389_v61 }
 0x33e   :  { %6082 = vrcp.f32 %v392_v62 }
 0x340   :  { %v395_v63 = vpop.xlane.xlu0 %394 }
 0x341   :  { %v398_v0 = vpop.xlane.xlu1 %397  ;;  %6084 = vrcp.f32 %v395_v63 }
 0x342   :  { %v6073_v12 = vpop.eup %6072  ;;  %6086 = vrcp.f32 %v398_v0  ;;  %v5047_v0 = vld [vmem:[%s7623_s5 + $0x1] ss:$0 sm:$0xff] }
 0x343   :  { %v400_v5 = vmul.f32 %v6073_v12, %v6059_v42  ;;  %v6075_v10 = vpop.eup %6074 }
 0x344   :  { %v6508_v14 = vpop.permute.xlu0 %167  ;;  %v402_v19 = vmul.f32 %v6075_v10, %v6057_v40  ;;  %v5018_v40 = vld [vmem:[%s7620_s3 + $0x20] sm:$0xff] }
 0x345   :  { %v418_v1 = vpop.permute.xlu1 %417  ;;  %v185_v3 = vmul.f32 %v6508_v14, %v6442_v22  ;;  %5624 = vmatprep.subr.mxu1 %v5018_v40 }
 0x346   :  { %5602 = vmatprep.subr.mxu0 %v418_v1  ;;  %v6077_v11 = vpop.eup %6076  ;;  %5625 = vmatpush3.msra.mxu1 %v5018_v40  ;;  %v54_v40 = vld [vmem:[%s7624_s4 + $0x28] sm:$0xff] }
 0x347   :  { %5603 = vmatpush3.msra.mxu0 %v418_v1  ;;  %5599 = vmatprep.mubr.msk.f32.mxu0 %vm63_vm0, %v185_v3  ;;  %v6079_v21 = vpop.eup %6078  ;;  %v404_v23 = vmul.f32 %v6077_v11, %v6061_v44 }
 0x348   :  { %5606 = vmatprep.mubr.msk.f32.mxu0 %vm326_vm1, %v400_v5  ;;  %v406_v22 = vmul.f32 %v6079_v21, %v6063_v45  ;;  %5640 = vmatprep.subr.mxu1 %v56_v38 }
 0x349   :  { %v416_v13 = vpop.permute.xlu1 %415 }
 0x34a   :  { %5604 = vmatprep.subr.mxu0 %v416_v13  ;;  %v6081_v25 = vpop.eup %6080 }
 0x34b   :  { %5605 = vmatpush3.msra.mxu0 %v416_v13  ;;  %v6083_v27 = vpop.eup %6082  ;;  %v408_v28 = vmul.f32 %v6081_v25, %v6065_v48 }
 0x34c   :  { %5607 = vmatmul.mubr.msk.f32.vlgmr.msra.gmra.mxu0 %vm326_vm1, %v402_v19  ;;  %v410_v32 = vmul.f32 %v6083_v27, %v6067_v49 }
 0x34d   :  { %5609 = vmatprep.mubr.msk.f32.mxu0 %vm326_vm1, %v404_v23 }
 0x34e   :  { %v6085_v30 = vpop.eup %6084 }
 0x34f   :  { %v6087_v34 = vpop.eup %6086  ;;  %v412_v35 = vmul.f32 %v6085_v30, %v6069_v52 }
 0x350   :  { %5610 = vmatmul.mubr.msk.f32.gmra.mxu0 %vm326_vm1, %v406_v22  ;;  %v414_v36 = vmul.f32 %v6087_v34, %v6071_v54 }
 0x351   :  { %5612 = vmatprep.mubr.msk.f32.mxu0 %vm326_vm1, %v408_v28 }
 0x354   :  { %5613 = vmatmul.mubr.msk.f32.gmra.mxu0 %vm326_vm1, %v410_v32 }
 0x355   :  { %5615 = vmatprep.mubr.msk.f32.mxu0 %vm326_vm1, %v412_v35  ;;  %v5024_v35 = vld [vmem:[%s7620_s3 + $0x50] sm:$0xff] }
 0x358   :  { %5616 = vmatmul.mubr.msk.f32.gmra.mxu0 %vm326_vm1, %v414_v36  ;;  %v5023_v36 = vld [vmem:[%s7620_s3 + $0x48] sm:$0xff] }
 0x40c   :  { %v5608_v41 = vpop.f32.mrf.mxu0 }
 0x40d   :  { %v551_v51 = vmul.f32 %v5608_v41, %v6434_v18  ;;  %v53_v41 = vld [vmem:[%s7624_s4 + $0x20] sm:$0xff] }
 0x40e   :  { %v511_v42 = vpop.f32.mrf.mxu0 }
 0x40f   :  { %v550_v49 = vmul.f32 %v511_v42, %v6436_v20 }
 0x410   :  { %v5611_v43 = vpop.f32.mrf.mxu0 }
 0x411   :  { %v553_v47 = vmul.f32 %v5611_v43, %v6449_v26 }
 0x412   :  { %v521_v44 = vpop.f32.mrf.mxu0 }
 0x413   :  { %v552_v46 = vmul.f32 %v521_v44, %v6446_v24  ;;  %v559_v56 = vadd.f32 %v553_v47, %v551_v51  ;;  %v5051_v51 = vld [vmem:[%s7623_s5 + $0x3] ss:$0 sm:$0xff] }
 0x414   :  { %v5614_v45 = vpop.f32.mrf.mxu0 }
 0x415   :  { %v555_v52 = vmul.f32 %v5614_v45, %v6456_v29  ;;  %v558_v55 = vadd.f32 %v552_v46, %v550_v49  ;;  %v5050_v49 = vld [vmem:[%s7623_s5 + $0x2] ss:$0 sm:$0xff] }
 0x416   :  { %v531_v48 = vpop.f32.mrf.mxu0 }
 0x417   :  { %v554_v50 = vmul.f32 %v531_v48, %v6460_v31  ;;  %v561_v61 = vadd.f32 %v559_v56, %v555_v52 }
 0x418   :  { %v5617_v54 = vpop.f32.mrf.mxu0 }
 0x419   :  { %v557_v57 = vmul.f32 %v5617_v54, %v6465_v33  ;;  %v560_v59 = vadd.f32 %v558_v55, %v554_v50 }
 0x41a   :  { %v541_v58 = vpop.f32.mrf.mxu0 }
 0x41b   :  { %v556_v60 = vmul.f32 %v541_v58, %v6508_v14  ;;  %v563_v63 = vadd.f32 %v561_v61, %v557_v57  ;;  %v50_v61 = vld [vmem:[%s7624_s4 + $0x8] sm:$0xff] }
 0x41d   :  { %v562_v62 = vadd.f32 %v560_v59, %v556_v60  ;;  %v52_v59 = vld [vmem:[%s7624_s4 + $0x18] sm:$0xff]  ;;  %v51_v60 = vld [vmem:[%s7624_s4 + $0x10] sm:$0xff] }
 0x41f   :  { %5626 = vmatprep.mubr.msk.f32.mxu1 %vm63_vm0, %v562_v62  ;;  %v49_v62 = vld [vmem:[%s7624_s4] sm:$0xff] }
 0x420   :  { %5627 = vmatmul.mubr.msk.f32.vlgmr.msra.gmra.mxu1 %vm63_vm0, %v563_v63  ;;  %v5052_v63 = vld [vmem:[%s7623_s5 + $0x4] ss:$0 sm:$0xff] }
 0x421   :  { %5641 = vmatpush3.msra.mxu1 %v56_v38 }
 0x422   :  { %5642 = vmatprep.subr.mxu1 %v55_v39 }
 0x423   :  { %5643 = vmatpush3.msra.mxu1 %v55_v39 }
 0x424   :  { %5644 = vmatprep.subr.mxu1 %v54_v40 }
 0x425   :  { %5645 = vmatpush3.msra.mxu1 %v54_v40  ;;  %v5063_v40 = vld [vmem:[%s7620_s3 + $0x78] sm:$0xff] }
 0x426   :  { %5646 = vmatprep.subr.mxu1 %v53_v41 }
 0x427   :  { %5647 = vmatpush3.msra.mxu1 %v53_v41  ;;  %v5062_v41 = vld [vmem:[%s7620_s3 + $0x70] sm:$0xff] }
 0x428   :  { %5648 = vmatprep.subr.mxu1 %v52_v59 }
 0x429   :  { %5649 = vmatpush3.msra.mxu1 %v52_v59 }
 0x42a   :  { %5650 = vmatprep.subr.mxu1 %v51_v60 }
 0x42b   :  { %5651 = vmatpush3.msra.mxu1 %v51_v60 }
 0x42c   :  { %5652 = vmatprep.subr.mxu1 %v50_v61 }
 0x42d   :  { %5653 = vmatpush3.msra.mxu1 %v50_v61  ;;  %v5080_v61 = vld [vmem:[%s7623_s5 + $0x8] ss:$0 sm:$0xff] }
 0x42e   :  { %5654 = vmatprep.subr.mxu1 %v49_v62 }
 0x42f   :  { %5655 = vmatpush3.msra.mxu1 %v49_v62 }
 0x4e0   :  { %v5628_v12 = vpop.f32.mrf.mxu1 }
 0x4e1   :  { %v646_v1 = vadd.f32 %v5628_v12, %v5047_v0 }
 0x4e2   :  { %v640_v3 = vpop.f32.mrf.mxu1 }
 0x4e3   :  { %v641_v5 = vadd.f32 %v5047_v0, %v640_v3  ;;  %v650_v10 = vadd.f32 %v646_v1, %v6375_v6 }
 0x4e5   :  { %v656_v11 = vsel %vm63_vm0, %v650_v10, 0.0  ;;  %v649_v13 = vadd.f32 %v641_v5, %v6398_v9  ;;  %v5025_v9 = vld [vmem:[%s7620_s3 + $0x58] sm:$0xff] }
 0x4e6   :  { %657 = vadd.xlane.f32.xlu1 %v656_v11  ;;  %5629 = vmatprep.subr.mxu0 %v5025_v9  ;;  %v5055_v11 = vld [vmem:[%s7623_s5 + $0x5] ss:$0 sm:$0xff] }
 0x4e7   :  { %v653_v19 = vsel %vm63_vm0, %v649_v13, 0.0  ;;  %5630 = vmatpush3.msra.mxu0 %v5025_v9 }
 0x4e8   :  { %654 = vadd.xlane.f32.xlu0 %v653_v19  ;;  %5631 = vmatprep.subr.mxu0 %v5024_v35 }
 0x4e9   :  { %5632 = vmatpush3.msra.mxu0 %v5024_v35 }
 0x4ea   :  { %5633 = vmatprep.subr.mxu0 %v5023_v36 }
 0x4eb   :  { %5634 = vmatpush3.msra.mxu0 %v5023_v36 }
 0x4ec   :  { %5635 = vmatprep.subr.mxu0 %v5022_v37 }
 0x4ed   :  { %5636 = vmatpush3.msra.mxu0 %v5022_v37 }
 0x4ee   :  { %5659 = vmatprep.subr.mxu0 %v5063_v40 }
 0x56f   :  { %v658_v21 = vpop.xlane.xlu1 %657 }
 0x570   :  { %v661_v23 = vmul.f32 0.03125, %v658_v21 }
 0x571   :  { %v655_v25 = vpop.xlane.xlu0 %654 }
 0x572   :  { %v660_v22 = vmul.f32 0.03125, %v655_v25  ;;  %v663_v27 = vsub.f32 %v650_v10, %v661_v23 }
 0x574   :  { %v662_v28 = vsub.f32 %v649_v13, %v660_v22  ;;  %v665_v34 = vmul.f32 %v663_v27, %v663_v27 }
 0x576   :  { %v664_v30 = vmul.f32 %v662_v28, %v662_v28  ;;  %v669_v6 = vsel %vm63_vm0, %v665_v34, 0.0 }
 0x578   :  { %v666_v32 = vsel %vm63_vm0, %v664_v30, 0.0 }
 0x579   :  { %667 = vadd.xlane.f32.xlu0 %v666_v32 }
 0x57d   :  { %670 = vadd.xlane.f32.xlu0 %v669_v6 }
 0x602   :  { %v668_v42 = vpop.xlane.xlu0 %667 }
 0x603   :  { %v672_v43 = vmul.f32 0.03125, %v668_v42  ;;  %v5061_v42 = vld [vmem:[%s7620_s3 + $0x68] sm:$0xff] }
 0x605   :  { %v674_v44 = vadd.f32 1e-05, %v672_v43  ;;  %v5060_v43 = vld [vmem:[%s7620_s3 + $0x60] sm:$0xff] }
 0x606   :  { %v671_v45 = vpop.xlane.xlu0 %670 }
 0x607   :  { %6088 = vrsqrt.f32 %v674_v44  ;;  %v673_v46 = vmul.f32 0.03125, %v671_v45 }
 0x609   :  { %v675_v47 = vadd.f32 1e-05, %v673_v46 }
 0x60b   :  { %6090 = vrsqrt.f32 %v675_v47 }
 0x614   :  { %v6089_v48 = vpop.eup %6088 }
 0x615   :  { %v678_v50 = vmul.f32 %v6089_v48, %v662_v28 }
 0x617   :  { %v684_v52 = vmul.f32 %v5050_v49, %v678_v50 }
 0x618   :  { %v6091_v54 = vpop.eup %6090 }
 0x619   :  { %v679_v55 = vmul.f32 %v6091_v54, %v663_v27  ;;  %v690_v56 = vadd.f32 %v5051_v51, %v684_v52 }
 0x61b   :  { %v685_v57 = vmul.f32 %v5050_v49, %v679_v55  ;;  %5637 = vmatprep.mubr.msk.f32.mxu0 %vm63_vm0, %v690_v56 }
 0x61d   :  { %v691_v58 = vadd.f32 %v5051_v51, %v685_v57  ;;  %v5058_v51 = vld [vmem:[%s7623_s5 + $0x6] ss:$0 sm:$0xff]  ;;  %v5059_v57 = vld [vmem:[%s7623_s5 + $0x7] ss:$0 sm:$0xff] }
 0x61f   :  { %5638 = vmatmul.mubr.msk.f32.vlgmr.msra.gmra.mxu0 %vm63_vm0, %v691_v58 }
 0x620   :  { %5660 = vmatpush3.msra.mxu0 %v5063_v40 }
 0x621   :  { %5661 = vmatprep.subr.mxu0 %v5062_v41 }
 0x622   :  { %5662 = vmatpush3.msra.mxu0 %v5062_v41 }
 0x623   :  { %5663 = vmatprep.subr.mxu0 %v5061_v42 }
 0x624   :  { %5664 = vmatpush3.msra.mxu0 %v5061_v42 }
 0x625   :  { %5665 = vmatprep.subr.mxu0 %v5060_v43 }
 0x626   :  { %5666 = vmatpush3.msra.mxu0 %v5060_v43 }
 0x6df   :  { %v5639_v0 = vpop.f32.mrf.mxu0 }
 0x6e0   :  { %v776_v12 = vadd.f32 %v5639_v0, %v5052_v63 }
 0x6e1   :  { %v770_v1 = vpop.f32.mrf.mxu0 }
 0x6e2   :  { %v771_v3 = vadd.f32 %v5052_v63, %v770_v1  ;;  %v780_v10 = vmax.f32 %v776_v12, 0.0 }
 0x6e4   :  { %v779_v5 = vmax.f32 %v771_v3, 0.0 }
 0x6e6   :  { %5656 = vmatprep.mubr.msk.f32.mxu1 %vm785_vm2, %v779_v5 }
 0x6e7   :  { %5657 = vmatmul.mubr.msk.f32.vlgmr.msra.gmra.mxu1 %vm785_vm2, %v780_v10 }
 0x7a7   :  { %v5658_v13 = vpop.f32.mrf.mxu1 }
 0x7a8   :  { %v864_v19 = vadd.f32 %v5658_v13, %v5055_v11 }
 0x7a9   :  { %v858_v21 = vpop.f32.mrf.mxu1 }
 0x7aa   :  { %v859_v23 = vadd.f32 %v5055_v11, %v858_v21  ;;  %v868_v25 = vadd.f32 %v864_v19, %v691_v58 }
 0x7ac   :  { %v874_v22 = vsel %vm63_vm0, %v868_v25, 0.0  ;;  %v867_v27 = vadd.f32 %v859_v23, %v690_v56 }
 0x7ad   :  { %875 = vadd.xlane.f32.xlu0 %v874_v22 }
 0x7ae   :  { %v871_v28 = vsel %vm63_vm0, %v867_v27, 0.0 }
 0x7af   :  { %872 = vadd.xlane.f32.xlu1 %v871_v28 }
 0x836   :  { %v876_v30 = vpop.xlane.xlu0 %875 }
 0x837   :  { %v878_v32 = vmul.f32 0.03125, %v876_v30 }
 0x838   :  { %v873_v34 = vpop.xlane.xlu1 %872 }
 0x839   :  { %v880_v6 = vsub.f32 %v868_v25, %v878_v32  ;;  %v877_v9 = vmul.f32 0.03125, %v873_v34 }
 0x83b   :  { %v879_v35 = vsub.f32 %v867_v27, %v877_v9  ;;  %v882_v36 = vmul.f32 %v880_v6, %v880_v6 }
 0x83d   :  { %v886_v37 = vsel %vm63_vm0, %v882_v36, 0.0  ;;  %v881_v38 = vmul.f32 %v879_v35, %v879_v35 }
 0x83e   :  { %887 = vadd.xlane.f32.xlu0 %v886_v37 }
 0x83f   :  { %v883_v39 = vsel %vm63_vm0, %v881_v38, 0.0 }
 0x840   :  { %884 = vadd.xlane.f32.xlu1 %v883_v39 }
 0x8c7   :  { %v888_v44 = vpop.xlane.xlu0 %887 }
 0x8c8   :  { %v890_v45 = vmul.f32 0.03125, %v888_v44 }
 0x8c9   :  { %v885_v46 = vpop.xlane.xlu1 %884 }
 0x8ca   :  { %v892_v47 = vadd.f32 1e-05, %v890_v45  ;;  %v889_v48 = vmul.f32 0.03125, %v885_v46 }
 0x8cc   :  { %6092 = vrsqrt.f32 %v892_v47  ;;  %v891_v49 = vadd.f32 1e-05, %v889_v48 }
 0x8ce   :  { %6094 = vrsqrt.f32 %v891_v49 }
 0x8d9   :  { %v6093_v50 = vpop.eup %6092 }
 0x8da   :  { %v896_v52 = vmul.f32 %v6093_v50, %v880_v6 }
 0x8db   :  { %v6095_v54 = vpop.eup %6094 }
 0x8dc   :  { %v895_v55 = vmul.f32 %v6095_v54, %v879_v35  ;;  %v902_v56 = vmul.f32 %v5058_v51, %v896_v52 }
 0x8de   :  { %v901_v58 = vmul.f32 %v5058_v51, %v895_v55  ;;  %v6628_v60 = vadd.f32 %v5059_v57, %v902_v56 }
 0x8e0   :  { %v6626_v59 = vadd.f32 %v5059_v57, %v901_v58 }
 0x8e2   :  { %5667 = vmatprep.mubr.msk.f32.mxu0 %vm63_vm0, %v6626_v59 }
 0x8e3   :  { %5668 = vmatmul.mubr.msk.f32.vlgmr.msra.gmra.mxu0 %vm63_vm0, %v6628_v60 }
 0x9a3   :  { %v5669_v62 = vpop.f32.mrf.mxu0 }
 0x9a4   :  { %v6637_v63 = vadd.f32 %v5669_v62, %v5080_v61 }
 0x9a5   :  { %v1011_v0 = vpop.f32.mrf.mxu0 }
 0x9a6   :  { %v6639_v12 = vadd.f32 %v5080_v61, %v1011_v0  ;;  %1034 = vrot.lane.b32.xlu1 %v6637_v63, %s6305_s24  ;;  %v1021_v11 = vmul.f32 0.35355338, %v6637_v63 }
 0x9a8   :  { %v1020_v1 = vmul.f32 0.35355338, %v6639_v12  ;;  %1032 = vrot.lane.b32.xlu0 %v6639_v12, %s6305_s24  ;;  %v1023_v13 = vmul.f32 %v1021_v11, %v6434_v18  ;;  %v1025_v21 = vmul.f32 %v1021_v11, %v6449_v26  ;;  %v1027_v25 = vmul.f32 %v1021_v11, %v6456_v29 }
 0x9a9   :  { %v1029_v27 = vmul.f32 %v1021_v11, %v6465_v33 }
 0x9aa   :  { %v1022_v3 = vmul.f32 %v1020_v1, %v6436_v20  ;;  %v1024_v19 = vmul.f32 %v1020_v1, %v6446_v24  ;;  %v1026_v23 = vmul.f32 %v1020_v1, %v6460_v31  ;;  %v1028_v22 = vmul.f32 %v1020_v1, %v6508_v14 }
 0x9ac   :  { %5674 = vmatprep.mubr.msk.f32.mxu0 %vm63_vm0, %v1022_v3 }
 0xa18   :  { %v1035_v5 = vpop.permute.xlu1 %1034 }
 0xa19   :  { %5670 = vmatprep.subr.msk.mxu0 %vm63_vm0, %v1035_v5 }
 0xa1a   :  { %5671 = vmatpush3.xpose.msk.msra.mxu0 %vm63_vm0, %v1035_v5  ;;  %v1033_v10 = vpop.permute.xlu0 %1032 }
 0xa1b   :  { %5672 = vmatprep.subr.msk.mxu0 %vm63_vm0, %v1033_v10 }
 0xa1e   :  { %5673 = vmatpush3.xpose.msk.msra.mxu0 %vm63_vm0, %v1033_v10 }
 0xa21   :  { %5675 = vmatmul.mubr.msk.f32.vlgmr.msra.gmra.mxu0 %vm63_vm0, %v1023_v13 }
 0xa22   :  { %5677 = vmatprep.mubr.msk.f32.mxu0 %vm63_vm0, %v1024_v19 }
 0xa25   :  { %5678 = vmatmul.mubr.msk.f32.gmra.mxu0 %vm63_vm0, %v1025_v21 }
 0xa26   :  { %5680 = vmatprep.mubr.msk.f32.mxu0 %vm63_vm0, %v1026_v23 }
 0xa29   :  { %5681 = vmatmul.mubr.msk.f32.gmra.mxu0 %vm63_vm0, %v1027_v25 }
 0xa2a   :  { %5683 = vmatprep.mubr.msk.f32.mxu0 %vm63_vm0, %v1028_v22 }
 0xa2d   :  { %5684 = vmatmul.mubr.msk.f32.gmra.mxu0 %vm63_vm0, %v1029_v27 }
 0xae1   :  { %v5676_v28 = vpop.f32.mrf.mxu0 }
 0xae2   :  { %v1136_v30 = vadd.f32 %v5676_v28, %v6357_v2 }
 0xae3   :  { %v1130_v32 = vpop.f32.mrf.mxu0 }
 0xae4   :  { %v1131_v34 = vadd.f32 %v1130_v32, %v6367_v4  ;;  %v1172_v6 = vsel %vm326_vm1, %v1136_v30, -inf }
 0xae5   :  { %1173 = vmax.xlane.f32.xlu0 %v1172_v6  ;;  %v5679_v9 = vpop.f32.mrf.mxu0 }
 0xae6   :  { %v1146_v35 = vadd.f32 %v5679_v9, %v6416_v15  ;;  %v1169_v36 = vsel %vm326_vm1, %v1131_v34, -inf }
 0xae7   :  { %v1140_v37 = vpop.f32.mrf.mxu0  ;;  %1170 = vmax.xlane.f32.xlu1 %v1169_v36 }
 0xae8   :  { %v1141_v38 = vadd.f32 %v1140_v37, %v6382_v7  ;;  %v1178_v39 = vsel %vm326_vm1, %v1146_v35, -inf }
 0xae9   :  { %1179 = vmax.xlane.f32.xlu0 %v1178_v39  ;;  %v5682_v40 = vpop.f32.mrf.mxu0 }
 0xaea   :  { %v1156_v2 = vadd.f32 %v5682_v40, %v6423_v16  ;;  %v1175_v4 = vsel %vm326_vm1, %v1141_v38, -inf }
 0xaeb   :  { %v1150_v41 = vpop.f32.mrf.mxu0  ;;  %1176 = vmax.xlane.f32.xlu1 %v1175_v4 }
 0xaec   :  { %v1151_v42 = vadd.f32 %v1150_v41, %v6391_v8  ;;  %v1184_v15 = vsel %vm326_vm1, %v1156_v2, -inf }
 0xaed   :  { %1185 = vmax.xlane.f32.xlu0 %v1184_v15  ;;  %v5685_v43 = vpop.f32.mrf.mxu0 }
 0xaee   :  { %v1166_v44 = vadd.f32 %v5685_v43, %v6430_v17  ;;  %v1181_v7 = vsel %vm326_vm1, %v1151_v42, -inf }
 0xaef   :  { %v1160_v45 = vpop.f32.mrf.mxu0  ;;  %1182 = vmax.xlane.f32.xlu1 %v1181_v7 }
 0xaf0   :  { %v1161_v46 = vadd.f32 %v1160_v45, %v6486_v53  ;;  %v1190_v16 = vsel %vm326_vm1, %v1166_v44, -inf }
 0xaf1   :  { %1191 = vmax.xlane.f32.xlu0 %v1190_v16 }
 0xaf2   :  { %v1187_v47 = vsel %vm326_vm1, %v1161_v46, -inf }
 0xaf3   :  { %1188 = vmax.xlane.f32.xlu1 %v1187_v47 }
 0xb6e   :  { %v1174_v48 = vpop.xlane.xlu0 %1173 }
 0xb6f   :  { %v1194_v8 = vsub.f32 %v1136_v30, %v1174_v48 }
 0xb70   :  { %v1171_v49 = vpop.xlane.xlu1 %1170 }
 0xb71   :  { %v1203_v50 = vmul.f32 1.442695, %v1194_v8  ;;  %v1193_v51 = vsub.f32 %v1131_v34, %v1171_v49 }
 0xb72   :  { %v1180_v52 = vpop.xlane.xlu0 %1179 }
 0xb73   :  { %6096 = vpow2.f32 %v1203_v50  ;;  %v1201_v17 = vmul.f32 1.442695, %v1193_v51  ;;  %v1196_v54 = vsub.f32 %v1146_v35, %v1180_v52 }
 0xb74   :  { %v1177_v55 = vpop.xlane.xlu1 %1176 }
 0xb75   :  { %6098 = vpow2.f32 %v1201_v17  ;;  %v1207_v56 = vmul.f32 1.442695, %v1196_v54  ;;  %v1195_v57 = vsub.f32 %v1141_v38, %v1177_v55 }
 0xb76   :  { %v1186_v53 = vpop.xlane.xlu0 %1185 }
 0xb77   :  { %6100 = vpow2.f32 %v1207_v56  ;;  %v1205_v58 = vmul.f32 1.442695, %v1195_v57  ;;  %v1198_v61 = vsub.f32 %v1156_v2, %v1186_v53 }
 0xb78   :  { %v1183_v62 = vpop.xlane.xlu1 %1182 }
 0xb79   :  { %6102 = vpow2.f32 %v1205_v58  ;;  %v1211_v0 = vmul.f32 1.442695, %v1198_v61  ;;  %v1197_v1 = vsub.f32 %v1151_v42, %v1183_v62  ;;  %v5067_v58 = vld [vmem:[%s7620_s3 + $0x98] sm:$0xff]  ;;  %v5066_v61 = vld [vmem:[%s7620_s3 + $0x90] sm:$0xff]  ;;  %v5065_v62 = vld [vmem:[%s7620_s3 + $0x88] sm:$0xff] }
 0xb7a   :  { %v1192_v3 = vpop.xlane.xlu0 %1191  ;;  %5702 = vmatprep.subr.mxu0 %v5067_v58 }
 0xb7b   :  { %6104 = vpow2.f32 %v1211_v0  ;;  %v1209_v5 = vmul.f32 1.442695, %v1197_v1  ;;  %v1200_v10 = vsub.f32 %v1166_v44, %v1192_v3  ;;  %5703 = vmatpush3.msra.mxu0 %v5067_v58  ;;  %v5064_v0 = vld [vmem:[%s7620_s3 + $0x80] sm:$0xff] }
 0xb7c   :  { %v1189_v11 = vpop.xlane.xlu1 %1188  ;;  %5704 = vmatprep.subr.mxu0 %v5066_v61 }
 0xb7d   :  { %6106 = vpow2.f32 %v1209_v5  ;;  %v1215_v13 = vmul.f32 1.442695, %v1200_v10  ;;  %v1199_v19 = vsub.f32 %v1161_v46, %v1189_v11  ;;  %5705 = vmatpush3.msra.mxu0 %v5066_v61 }
 0xb7e   :  { %5706 = vmatprep.subr.mxu0 %v5065_v62 }
 0xb7f   :  { %6108 = vpow2.f32 %v1215_v13  ;;  %v1213_v21 = vmul.f32 1.442695, %v1199_v19  ;;  %5707 = vmatpush3.msra.mxu0 %v5065_v62 }
 0xb80   :  { %v6097_v23 = vpop.eup %6096  ;;  %5708 = vmatprep.subr.mxu0 %v5064_v0 }
 0xb81   :  { %6110 = vpow2.f32 %v1213_v21  ;;  %v1220_v25 = vsel %vm326_vm1, %v6097_v23, 0.0  ;;  %5709 = vmatpush3.msra.mxu0 %v5064_v0 }
 0xb82   :  { %v6099_v22 = vpop.eup %6098  ;;  %1221 = vadd.xlane.f32.xlu0 %v1220_v25 }
 0xb83   :  { %v1217_v27 = vsel %vm326_vm1, %v6099_v22, 0.0 }
 0xb84   :  { %v6101_v28 = vpop.eup %6100  ;;  %1218 = vadd.xlane.f32.xlu1 %v1217_v27 }
 0xb85   :  { %v1226_v30 = vsel %vm326_vm1, %v6101_v28, 0.0 }
 0xb86   :  { %v6103_v32 = vpop.eup %6102  ;;  %1227 = vadd.xlane.f32.xlu0 %v1226_v30 }
 0xb87   :  { %v1223_v34 = vsel %vm326_vm1, %v6103_v32, 0.0 }
 0xb88   :  { %v6105_v6 = vpop.eup %6104  ;;  %1224 = vadd.xlane.f32.xlu1 %v1223_v34 }
 0xb89   :  { %v1232_v9 = vsel %vm326_vm1, %v6105_v6, 0.0 }
 0xb8a   :  { %v6107_v35 = vpop.eup %6106  ;;  %1233 = vadd.xlane.f32.xlu0 %v1232_v9 }
 0xb8b   :  { %v1229_v36 = vsel %vm326_vm1, %v6107_v35, 0.0 }
 0xb8c   :  { %v6109_v37 = vpop.eup %6108  ;;  %1230 = vadd.xlane.f32.xlu1 %v1229_v36 }
 0xb8d   :  { %v1238_v38 = vsel %vm326_vm1, %v6109_v37, 0.0 }
 0xb8e   :  { %v6111_v39 = vpop.eup %6110  ;;  %1239 = vadd.xlane.f32.xlu0 %v1238_v38 }
 0xb8f   :  { %v1235_v40 = vsel %vm326_vm1, %v6111_v39, 0.0 }
 0xb90   :  { %1236 = vadd.xlane.f32.xlu1 %v1235_v40 }
 0xba1   :  { %1259 = vrot.lane.b32.xlu1 %v6637_v63, %s6306_s10 }
 0xba4   :  { %1257 = vrot.lane.b32.xlu0 %v6639_v12, %s6306_s10 }
 0xc0b   :  { %v1222_v2 = vpop.xlane.xlu0 %1221 }
 0xc0d   :  { %v1219_v4 = vpop.xlane.xlu1 %1218 }
 0xc0e   :  { %6112 = vrcp.f32 %v1219_v4 }
 0xc0f   :  { %v1228_v41 = vpop.xlane.xlu0 %1227  ;;  %6114 = vrcp.f32 %v1222_v2 }
 0xc11   :  { %v1225_v42 = vpop.xlane.xlu1 %1224 }
 0xc12   :  { %6116 = vrcp.f32 %v1225_v42 }
 0xc13   :  { %v1234_v15 = vpop.xlane.xlu0 %1233  ;;  %6118 = vrcp.f32 %v1228_v41 }
 0xc15   :  { %v1231_v43 = vpop.xlane.xlu1 %1230 }
 0xc16   :  { %6120 = vrcp.f32 %v1231_v43 }
 0xc17   :  { %6122 = vrcp.f32 %v1234_v15  ;;  %v1240_v44 = vpop.xlane.xlu0 %1239 }
 0xc19   :  { %v1237_v7 = vpop.xlane.xlu1 %1236 }
 0xc1a   :  { %6124 = vrcp.f32 %v1237_v7 }
 0xc1b   :  { %v6113_v45 = vpop.eup %6112  ;;  %6126 = vrcp.f32 %v1240_v44  ;;  %v1258_v47 = vpop.permute.xlu0 %1257 }
 0xc1c   :  { %v1242_v63 = vmul.f32 %v6113_v45, %v6099_v22  ;;  %v6115_v46 = vpop.eup %6114 }
 0xc1d   :  { %v1260_v12 = vpop.permute.xlu1 %1259  ;;  %v1244_v48 = vmul.f32 %v6115_v46, %v6097_v23 }
 0xc1e   :  { %5686 = vmatprep.subr.mxu1 %v1260_v12  ;;  %5690 = vmatprep.mubr.msk.f32.mxu1 %vm326_vm1, %v1242_v63 }
 0xc1f   :  { %v6117_v16 = vpop.eup %6116  ;;  %5687 = vmatpush3.msra.mxu1 %v1260_v12 }
 0xc20   :  { %5688 = vmatprep.subr.mxu1 %v1258_v47  ;;  %v1246_v8 = vmul.f32 %v6117_v16, %v6103_v32  ;;  %v6119_v49 = vpop.eup %6118 }
 0xc21   :  { %5689 = vmatpush3.msra.mxu1 %v1258_v47  ;;  %v1248_v51 = vmul.f32 %v6119_v49, %v6101_v28  ;;  %v5070_v49 = vld [vmem:[%s7620_s3 + $0xb0] sm:$0xff] }
 0xc22   :  { %5691 = vmatmul.mubr.msk.f32.vlgmr.msra.gmra.mxu1 %vm326_vm1, %v1244_v48 }
 0xc23   :  { %v6121_v50 = vpop.eup %6120  ;;  %5693 = vmatprep.mubr.msk.f32.mxu1 %vm326_vm1, %v1246_v8 }
 0xc24   :  { %v1250_v52 = vmul.f32 %v6121_v50, %v6107_v35  ;;  %v6123_v17 = vpop.eup %6122  ;;  %v5069_v50 = vld [vmem:[%s7620_s3 + $0xa8] sm:$0xff] }
 0xc25   :  { %v1252_v55 = vmul.f32 %v6123_v17, %v6105_v6  ;;  %v5079_v17 = vld [vmem:[%s7624_s4 + $0x78] sm:$0xff] }
 0xc26   :  { %5694 = vmatmul.mubr.msk.f32.gmra.mxu1 %vm326_vm1, %v1248_v51  ;;  %v5068_v51 = vld [vmem:[%s7620_s3 + $0xa0] sm:$0xff]  ;;  %5724 = vmatprep.subr.mxu0 %v5079_v17 }
 0xc27   :  { %v6125_v54 = vpop.eup %6124  ;;  %5696 = vmatprep.mubr.msk.f32.mxu1 %vm326_vm1, %v1250_v52  ;;  %v5117_v52 = vld [vmem:[%s7620_s3 + $0xd8] sm:$0xff] }
 0xc28   :  { %v1254_v56 = vmul.f32 %v6125_v54, %v6111_v39  ;;  %v6127_v57 = vpop.eup %6126  ;;  %v5101_v39 = vld [vmem:[%s7623_s5 + $0x9] ss:$0 sm:$0xff]  ;;  %v5078_v54 = vld [vmem:[%s7624_s4 + $0x70] sm:$0xff] }
 0xc29   :  { %v1256_v53 = vmul.f32 %v6127_v57, %v6109_v37 }
 0xc2a   :  { %5697 = vmatmul.mubr.msk.f32.gmra.mxu1 %vm326_vm1, %v1252_v55  ;;  %v5077_v55 = vld [vmem:[%s7624_s4 + $0x68] sm:$0xff] }
 0xc2b   :  { %5699 = vmatprep.mubr.msk.f32.mxu1 %vm326_vm1, %v1254_v56  ;;  %v5076_v56 = vld [vmem:[%s7624_s4 + $0x60] sm:$0xff] }
 0xc2e   :  { %5700 = vmatmul.mubr.msk.f32.gmra.mxu1 %vm326_vm1, %v1256_v53 }
 0xce2   :  { %v5692_v1 = vpop.f32.mrf.mxu1 }
 0xce3   :  { %v1393_v22 = vmul.f32 %v5692_v1, %v6434_v18 }
 0xce4   :  { %v1353_v3 = vpop.f32.mrf.mxu1 }
 0xce5   :  { %v1392_v23 = vmul.f32 %v1353_v3, %v6436_v20  ;;  %v5104_v3 = vld [vmem:[%s7623_s5 + $0xa] ss:$0 sm:$0xff] }
 0xce6   :  { %v5695_v5 = vpop.f32.mrf.mxu1 }
 0xce7   :  { %v1395_v19 = vmul.f32 %v5695_v5, %v6449_v26 }
 0xce8   :  { %v1363_v10 = vpop.f32.mrf.mxu1 }
 0xce9   :  { %v1394_v13 = vmul.f32 %v1363_v10, %v6446_v24  ;;  %v1401_v32 = vadd.f32 %v1395_v19, %v1393_v22  ;;  %v5105_v19 = vld [vmem:[%s7623_s5 + $0xb] ss:$0 sm:$0xff]  ;;  %v6774_v22 = vld [vmem:[%s7625_s1] sm:$0xff] }
 0xcea   :  { %v5698_v11 = vpop.f32.mrf.mxu1 }
 0xceb   :  { %v1397_v27 = vmul.f32 %v5698_v11, %v6456_v29  ;;  %v1400_v30 = vadd.f32 %v1394_v13, %v1392_v23 }
 0xcec   :  { %v1373_v21 = vpop.f32.mrf.mxu1 }
 0xced   :  { %v1396_v25 = vmul.f32 %v1373_v21, %v6460_v31  ;;  %v1403_v36 = vadd.f32 %v1401_v32, %v1397_v27  ;;  %v5116_v27 = vld [vmem:[%s7620_s3 + $0xd0] sm:$0xff]  ;;  %v6794_v32 = vld [vmem:[%s7625_s1 + $0x8] sm:$0xff] }
 0xcee   :  { %v5701_v28 = vpop.f32.mrf.mxu1 }
 0xcef   :  { %v1399_v34 = vmul.f32 %v5701_v28, %v6465_v33  ;;  %v1402_v9 = vadd.f32 %v1400_v30, %v1396_v25  ;;  %v5115_v28 = vld [vmem:[%s7620_s3 + $0xc8] sm:$0xff]  ;;  %v5114_v30 = vld [vmem:[%s7620_s3 + $0xc0] sm:$0xff] }
 0xcf0   :  { %v1383_v6 = vpop.f32.mrf.mxu1 }
 0xcf1   :  { %v1398_v35 = vmul.f32 %v1383_v6, %v6508_v14  ;;  %v1405_v38 = vadd.f32 %v1403_v36, %v1399_v34  ;;  %v5075_v34 = vld [vmem:[%s7624_s4 + $0x58] sm:$0xff]  ;;  %v5074_v6 = vld [vmem:[%s7624_s4 + $0x50] sm:$0xff]  ;;  %v5106_v36 = vld [vmem:[%s7623_s5 + $0xc] ss:$0 sm:$0xff] }
 0xcf3   :  { %v1404_v37 = vadd.f32 %v1402_v9, %v1398_v35  ;;  %v5073_v9 = vld [vmem:[%s7624_s4 + $0x48] sm:$0xff]  ;;  %v5072_v35 = vld [vmem:[%s7624_s4 + $0x40] sm:$0xff] }
 0xcf5   :  { %5710 = vmatprep.mubr.msk.f32.mxu0 %vm63_vm0, %v1404_v37 }
 0xcf6   :  { %5711 = vmatmul.mubr.msk.f32.vlgmr.msra.gmra.mxu0 %vm63_vm0, %v1405_v38 }
 0xcf7   :  { %5725 = vmatpush3.msra.mxu0 %v5079_v17 }
 0xcf8   :  { %5726 = vmatprep.subr.mxu0 %v5078_v54 }
 0xcf9   :  { %5727 = vmatpush3.msra.mxu0 %v5078_v54 }
 0xcfa   :  { %5728 = vmatprep.subr.mxu0 %v5077_v55 }
 0xcfb   :  { %5729 = vmatpush3.msra.mxu0 %v5077_v55 }
 0xcfc   :  { %5730 = vmatprep.subr.mxu0 %v5076_v56 }
 0xcfd   :  { %5731 = vmatpush3.msra.mxu0 %v5076_v56 }
 0xcfe   :  { %5732 = vmatprep.subr.mxu0 %v5075_v34 }
 0xcff   :  { %5733 = vmatpush3.msra.mxu0 %v5075_v34 }
 0xd00   :  { %5734 = vmatprep.subr.mxu0 %v5074_v6 }
 0xd01   :  { %5735 = vmatpush3.msra.mxu0 %v5074_v6 }
 0xd02   :  { %5736 = vmatprep.subr.mxu0 %v5073_v9 }
 0xd03   :  { %5737 = vmatpush3.msra.mxu0 %v5073_v9 }
 0xd04   :  { %5738 = vmatprep.subr.mxu0 %v5072_v35 }
 0xd05   :  { %5739 = vmatpush3.msra.mxu0 %v5072_v35 }
 0xdb6   :  { %v5712_v40 = vpop.f32.mrf.mxu0 }
 0xdb7   :  { %v1488_v2 = vadd.f32 %v5712_v40, %v5101_v39 }
 0xdb8   :  { %v1482_v4 = vpop.f32.mrf.mxu0 }
 0xdb9   :  { %v1483_v41 = vadd.f32 %v5101_v39, %v1482_v4  ;;  %v1492_v42 = vadd.f32 %v1488_v2, %v6628_v60 }
 0xdbb   :  { %v1498_v15 = vsel %vm63_vm0, %v1492_v42, 0.0  ;;  %v1491_v43 = vadd.f32 %v1483_v41, %v6626_v59  ;;  %v5071_v59 = vld [vmem:[%s7620_s3 + $0xb8] sm:$0xff]  ;;  %v5142_v41 = vld [vmem:[%s7623_s5 + $0x10] ss:$0 sm:$0xff] }
 0xdbc   :  { %1499 = vadd.xlane.f32.xlu0 %v1498_v15  ;;  %5713 = vmatprep.subr.mxu1 %v5071_v59 }
 0xdbd   :  { %v1495_v44 = vsel %vm63_vm0, %v1491_v43, 0.0  ;;  %5714 = vmatpush3.msra.mxu1 %v5071_v59 }
 0xdbe   :  { %1496 = vadd.xlane.f32.xlu1 %v1495_v44  ;;  %5715 = vmatprep.subr.mxu1 %v5070_v49 }
 0xdbf   :  { %5716 = vmatpush3.msra.mxu1 %v5070_v49 }
 0xdc0   :  { %5717 = vmatprep.subr.mxu1 %v5069_v50 }
 0xdc1   :  { %5718 = vmatpush3.msra.mxu1 %v5069_v50 }
 0xdc2   :  { %5719 = vmatprep.subr.mxu1 %v5068_v51 }
 0xdc3   :  { %5720 = vmatpush3.msra.mxu1 %v5068_v51 }
 0xdc4   :  { %5743 = vmatprep.subr.mxu1 %v5117_v52 }
 0xe45   :  { %v1500_v7 = vpop.xlane.xlu0 %1499 }
 0xe46   :  { %v1502_v45 = vmul.f32 0.03125, %v1500_v7 }
 0xe47   :  { %v1497_v63 = vpop.xlane.xlu1 %1496 }
 0xe48   :  { %v1504_v46 = vsub.f32 %v1492_v42, %v1502_v45  ;;  %v1501_v12 = vmul.f32 0.03125, %v1497_v63  ;;  %v6832_v63 = vld [vmem:[%s7621_s2] sm:$0xff] }
 0xe4a   :  { %v1503_v16 = vsub.f32 %v1491_v43, %v1501_v12  ;;  %v1506_v47 = vmul.f32 %v1504_v46, %v1504_v46  ;;  %v6844_v12 = vld [vmem:[%s7621_s2 + $0x8] sm:$0xff] }
 0xe4c   :  { %v1510_v48 = vsel %vm63_vm0, %v1506_v47, 0.0  ;;  %v1505_v8 = vmul.f32 %v1503_v16, %v1503_v16  ;;  %v6856_v47 = vld [vmem:[%s7621_s2 + $0x18] sm:$0xff] }
 0xe4d   :  { %1511 = vadd.xlane.f32.xlu0 %v1510_v48  ;;  %v6862_v48 = vld [vmem:[%s7621_s2 + $0x30] sm:$0xff] }
 0xe4e   :  { %v1507_v60 = vsel %vm63_vm0, %v1505_v8, 0.0  ;;  %v6868_v8 = vld [vmem:[%s7621_s2 + $0x28] sm:$0xff] }
 0xe4f   :  { %1508 = vadd.xlane.f32.xlu1 %v1507_v60  ;;  %v6874_v60 = vld [vmem:[%s7621_s2 + $0x38] sm:$0xff] }
 0xed6   :  { %v1512_v57 = vpop.xlane.xlu0 %1511 }
 0xed7   :  { %v1514_v53 = vmul.f32 0.03125, %v1512_v57 }
 0xed8   :  { %v1509_v58 = vpop.xlane.xlu1 %1508 }
 0xed9   :  { %v1516_v61 = vadd.f32 1e-05, %v1514_v53  ;;  %v1513_v62 = vmul.f32 0.03125, %v1509_v58 }
 0xedb   :  { %6128 = vrsqrt.f32 %v1516_v61  ;;  %v1515_v0 = vadd.f32 1e-05, %v1513_v62 }
 0xedd   :  { %6130 = vrsqrt.f32 %v1515_v0 }
 0xee8   :  { %v6129_v1 = vpop.eup %6128 }
 0xee9   :  { %v1520_v5 = vmul.f32 %v6129_v1, %v1504_v46  ;;  %v6838_v46 = vld [vmem:[%s7621_s2 + $0x10] sm:$0xff] }
 0xeea   :  { %v6131_v10 = vpop.eup %6130 }
 0xeeb   :  { %v1519_v11 = vmul.f32 %v6131_v10, %v1503_v16  ;;  %v1526_v13 = vmul.f32 %v5104_v3, %v1520_v5  ;;  %v6850_v16 = vld [vmem:[%s7621_s2 + $0x20] sm:$0xff] }
 0xeed   :  { %v1525_v21 = vmul.f32 %v5104_v3, %v1519_v11  ;;  %v6769_v25 = vadd.f32 %v5105_v19, %v1526_v13 }
 0xeef   :  { %v6767_v23 = vadd.f32 %v5105_v19, %v1525_v21 }
 0xef1   :  { %5721 = vmatprep.mubr.msk.f32.mxu1 %vm63_vm0, %v6767_v23 }
 0xef2   :  { %5722 = vmatmul.mubr.msk.f32.vlgmr.msra.gmra.mxu1 %vm63_vm0, %v6769_v25 }
 0xef3   :  { %5744 = vmatpush3.msra.mxu1 %v5117_v52  ;;  %5751 = vmatprep.mubr.msk.f32.mxu1 %vm63_vm0, %v6774_v22 }
 0xef4   :  { %5745 = vmatprep.subr.mxu1 %v5116_v27 }
 0xef5   :  { %5746 = vmatpush3.msra.mxu1 %v5116_v27 }
 0xef6   :  { %5747 = vmatprep.subr.mxu1 %v5115_v28 }
 0xef7   :  { %5748 = vmatpush3.msra.mxu1 %v5115_v28 }
 0xef8   :  { %5749 = vmatprep.subr.mxu1 %v5114_v30 }
 0xef9   :  { %5750 = vmatpush3.msra.mxu1 %v5114_v30 }
 0xefa   :  { %5752 = vmatmul.mubr.msk.f32.vlgmr.msra.gmra.mxu1 %vm63_vm0, %v6794_v32 }
 0xfb2   :  { %v5723_v37 = vpop.f32.mrf.mxu1 }
 0xfb3   :  { %v1617_v38 = vadd.f32 %v5723_v37, %v5106_v36 }
 0xfb4   :  { %v1611_v39 = vpop.f32.mrf.mxu1 }
 0xfb5   :  { %v1612_v40 = vadd.f32 %v5106_v36, %v1611_v39  ;;  %v1621_v4 = vmax.f32 %v1617_v38, 0.0 }
 0xfb7   :  { %v1620_v2 = vmax.f32 %v1612_v40, 0.0 }
 0xfb9   :  { %5740 = vmatprep.mubr.msk.f32.mxu0 %vm785_vm2, %v1620_v2 }
 0xfba   :  { %v5753_v42 = vpop.f32.mrf.mxu1  ;;  %5741 = vmatmul.mubr.msk.f32.vlgmr.msra.gmra.mxu0 %vm785_vm2, %v1621_v4 }
 0xfbb   :  { %v6818_v15 = vadd.f32 %v5753_v42, %v5142_v41 }
 0xfbc   :  { %v1863_v43 = vpop.f32.mrf.mxu1 }
 0xfbd   :  { %v6820_v44 = vadd.f32 %v5142_v41, %v1863_v43  ;;  %1886 = vrot.lane.b32.xlu1 %v6818_v15, %s6305_s24  ;;  %v1873_v50 = vmul.f32 0.35355338, %v6818_v15 }
 0xfbf   :  { %v1872_v7 = vmul.f32 0.35355338, %v6820_v44  ;;  %1884 = vrot.lane.b32.xlu0 %v6820_v44, %s6305_s24  ;;  %v1875_v51 = vmul.f32 %v1873_v50, %v6434_v18  ;;  %v1877_v17 = vmul.f32 %v1873_v50, %v6449_v26  ;;  %v1879_v55 = vmul.f32 %v1873_v50, %v6456_v29 }
 0xfc0   :  { %v1881_v57 = vmul.f32 %v1873_v50, %v6465_v33 }
 0xfc1   :  { %v1874_v45 = vmul.f32 %v1872_v7, %v6436_v20  ;;  %1888 = vrot.lane.b32.xlu1 %v6832_v63, %s6307_s11  ;;  %v1876_v52 = vmul.f32 %v1872_v7, %v6446_v24  ;;  %v1878_v54 = vmul.f32 %v1872_v7, %v6460_v31  ;;  %v1880_v56 = vmul.f32 %v1872_v7, %v6508_v14 }
 0xfc3   :  { %5758 = vmatprep.mubr.msk.f32.mxu1 %vm63_vm0, %v1874_v45  ;;  %1892 = vrot.lane.b32.xlu0 %v6838_v46, %s6307_s11 }
 0xfc5   :  { %1890 = vrot.lane.b32.xlu1 %v6844_v12, %s6307_s11 }
 0xfc7   :  { %1896 = vrot.lane.b32.xlu0 %v6850_v16, %s6307_s11 }
 0xfc9   :  { %1894 = vrot.lane.b32.xlu1 %v6856_v47, %s6307_s11 }
 0xfcb   :  { %1900 = vrot.lane.b32.xlu0 %v6862_v48, %s6307_s11 }
 0xfcd   :  { %1898 = vrot.lane.b32.xlu1 %v6868_v8, %s6307_s11 }
 0xfd1   :  { %1902 = vrot.lane.b32.xlu1 %v6874_v60, %s6307_s11 }
0x102f   :  { %v1887_v59 = vpop.permute.xlu1 %1886 }
0x1030   :  { %5754 = vmatprep.subr.msk.mxu1 %vm63_vm0, %v1887_v59 }
0x1031   :  { %5755 = vmatpush3.xpose.msk.msra.mxu1 %vm63_vm0, %v1887_v59  ;;  %v1885_v49 = vpop.permute.xlu0 %1884 }
0x1032   :  { %5756 = vmatprep.subr.msk.mxu1 %vm63_vm0, %v1885_v49 }
0x1033   :  { %v6896_v53 = vpop.permute.xlu1 %1888 }
0x1035   :  { %5757 = vmatpush3.xpose.msk.msra.mxu1 %vm63_vm0, %v1885_v49  ;;  %v6900_v62 = vpop.permute.xlu0 %1892 }
0x1037   :  { %v6898_v58 = vpop.permute.xlu1 %1890 }
0x1038   :  { %5759 = vmatmul.mubr.msk.f32.vlgmr.msra.gmra.mxu1 %vm63_vm0, %v1875_v51 }
0x1039   :  { %5761 = vmatprep.mubr.msk.f32.mxu1 %vm63_vm0, %v1876_v52  ;;  %v6908_v21 = vpop.permute.xlu0 %1896 }
0x103b   :  { %v6903_v3 = vpop.permute.xlu1 %1894 }
0x103c   :  { %5762 = vmatmul.mubr.msk.f32.gmra.mxu1 %vm63_vm0, %v1877_v17 }
0x103d   :  { %5764 = vmatprep.mubr.msk.f32.mxu1 %vm63_vm0, %v1878_v54  ;;  %v6916_v37 = vpop.permute.xlu0 %1900 }
0x103f   :  { %v6911_v28 = vpop.permute.xlu1 %1898 }
0x1040   :  { %5765 = vmatmul.mubr.msk.f32.gmra.mxu1 %vm63_vm0, %v1879_v55 }
0x1041   :  { %5767 = vmatprep.mubr.msk.f32.mxu1 %vm63_vm0, %v1880_v56 }
0x1043   :  { %v6921_v2 = vpop.permute.xlu1 %1902 }
0x1044   :  { %5768 = vmatmul.mubr.msk.f32.gmra.mxu1 %vm63_vm0, %v1881_v57 }
0x10f8   :  { %v5760_v61 = vpop.f32.mrf.mxu1 }
0x10f9   :  { %v2012_v0 = vadd.f32 %v5760_v61, %v6898_v58 }
0x10fa   :  { %v2006_v1 = vpop.f32.mrf.mxu1 }
0x10fb   :  { %v2007_v5 = vadd.f32 %v2006_v1, %v6896_v53  ;;  %v2048_v10 = vsel %vm326_vm1, %v2012_v0, -inf }
0x10fc   :  { %2049 = vmax.xlane.f32.xlu1 %v2048_v10  ;;  %v5763_v11 = vpop.f32.mrf.mxu1 }
0x10fd   :  { %v2045_v13 = vsel %vm326_vm1, %v2007_v5, -inf  ;;  %v2022_v34 = vadd.f32 %v5763_v11, %v6903_v3 }
0x10fe   :  { %v2016_v19 = vpop.f32.mrf.mxu1  ;;  %2046 = vmax.xlane.f32.xlu0 %v2045_v13 }
0x10ff   :  { %v2017_v27 = vadd.f32 %v2016_v19, %v6900_v62  ;;  %v2054_v40 = vsel %vm326_vm1, %v2022_v34, -inf }
0x1100   :  { %v5766_v30 = vpop.f32.mrf.mxu1 }
0x1101   :  { %v2051_v6 = vsel %vm326_vm1, %v2017_v27, -inf  ;;  %v2032_v38 = vadd.f32 %v5766_v30, %v6911_v28 }
0x1102   :  { %v2026_v9 = vpop.f32.mrf.mxu1  ;;  %2052 = vmax.xlane.f32.xlu0 %v2051_v6 }
0x1103   :  { %v2027_v35 = vadd.f32 %v2026_v9, %v6908_v21  ;;  %v2060_v7 = vsel %vm326_vm1, %v2032_v38, -inf }
0x1104   :  { %v5769_v36 = vpop.f32.mrf.mxu1 }
0x1105   :  { %v2057_v39 = vsel %vm326_vm1, %v2027_v35, -inf  ;;  %v2042_v42 = vadd.f32 %v5769_v36, %v6921_v2 }
0x1106   :  { %v2036_v4 = vpop.f32.mrf.mxu1  ;;  %2058 = vmax.xlane.f32.xlu1 %v2057_v39  ;;  %2055 = vmax.xlane.f32.xlu0 %v2054_v40 }
0x1107   :  { %v2037_v41 = vadd.f32 %v2036_v4, %v6916_v37  ;;  %v2066_v45 = vsel %vm326_vm1, %v2042_v42, -inf }
0x1109   :  { %v2063_v43 = vsel %vm326_vm1, %v2037_v41, -inf }
0x110a   :  { %2064 = vmax.xlane.f32.xlu1 %v2063_v43  ;;  %2061 = vmax.xlane.f32.xlu0 %v2060_v7 }
0x110e   :  { %2067 = vmax.xlane.f32.xlu0 %v2066_v45 }
0x1185   :  { %v2050_v59 = vpop.xlane.xlu1 %2049 }
0x1186   :  { %v2070_v49 = vsub.f32 %v2012_v0, %v2050_v59 }
0x1187   :  { %v2047_v50 = vpop.xlane.xlu0 %2046 }
0x1188   :  { %v2079_v51 = vmul.f32 1.442695, %v2070_v49  ;;  %v2069_v52 = vsub.f32 %v2007_v5, %v2047_v50 }
0x118a   :  { %6132 = vpow2.f32 %v2079_v51  ;;  %v2077_v17 = vmul.f32 1.442695, %v2069_v52 }
0x118b   :  { %v2053_v54 = vpop.xlane.xlu0 %2052 }
0x118c   :  { %6134 = vpow2.f32 %v2077_v17  ;;  %v2071_v55 = vsub.f32 %v2017_v27, %v2053_v54  ;;  %v5742_v54 = vpop.f32.mrf.mxu0 }
0x118e   :  { %v2081_v56 = vmul.f32 1.442695, %v2071_v55  ;;  %v1698_v55 = vpop.f32.mrf.mxu0 }
0x118f   :  { %v2059_v57 = vpop.xlane.xlu1 %2058  ;;  %v2056_v61 = vpop.xlane.xlu0 %2055 }
0x1190   :  { %6136 = vpow2.f32 %v2081_v56  ;;  %v2073_v1 = vsub.f32 %v2027_v35, %v2059_v57  ;;  %v2072_v10 = vsub.f32 %v2022_v34, %v2056_v61  ;;  %v5109_v56 = vld [vmem:[%s7623_s5 + $0xd] ss:$0 sm:$0xff] }
0x1191   :  { %v1699_v57 = vadd.f32 %v5109_v56, %v1698_v55 }
0x1192   :  { %v2085_v11 = vmul.f32 1.442695, %v2073_v1  ;;  %v2083_v13 = vmul.f32 1.442695, %v2072_v10  ;;  %v1704_v1 = vadd.f32 %v5742_v54, %v5109_v56 }
0x1193   :  { %v2065_v19 = vpop.xlane.xlu1 %2064  ;;  %v2062_v30 = vpop.xlane.xlu0 %2061  ;;  %v6953_v61 = vadd.f32 %v1699_v57, %v6767_v23 }
0x1194   :  { %6138 = vpow2.f32 %v2085_v11  ;;  %v2075_v0 = vsub.f32 %v2037_v41, %v2065_v19  ;;  %v2074_v6 = vsub.f32 %v2032_v38, %v2062_v30 }
0x1195   :  { %6140 = vpow2.f32 %v2083_v13  ;;  %v1711_v10 = vsel %vm63_vm0, %v6953_v61, 0.0 }
0x1196   :  { %v2089_v5 = vmul.f32 1.442695, %v2075_v0  ;;  %v2087_v9 = vmul.f32 1.442695, %v2074_v6 }
0x1197   :  { %v6928_v36 = vpop.eup %6132  ;;  %v2068_v39 = vpop.xlane.xlu0 %2067 }
0x1198   :  { %6142 = vpow2.f32 %v2089_v5  ;;  %v2076_v27 = vsub.f32 %v2042_v42, %v2068_v39  ;;  %v2096_v40 = vsel %vm326_vm1, %v6928_v36, 0.0 }
0x1199   :  { %v6135_v35 = vpop.eup %6134  ;;  %6144 = vpow2.f32 %v2087_v9  ;;  %2097 = vadd.xlane.f32.xlu0 %v2096_v40 }
0x119a   :  { %v2091_v34 = vmul.f32 1.442695, %v2076_v27  ;;  %v2093_v4 = vsel %vm326_vm1, %v6135_v35, 0.0 }
0x119b   :  { %2094 = vadd.xlane.f32.xlu1 %v2093_v4 }
0x119c   :  { %6146 = vpow2.f32 %v2091_v34 }
0x119d   :  { %v6137_v38 = vpop.eup %6136 }
0x119e   :  { %v2099_v41 = vsel %vm326_vm1, %v6137_v38, 0.0 }
0x119f   :  { %2100 = vadd.xlane.f32.xlu1 %v2099_v41 }
0x11a1   :  { %v6934_v43 = vpop.eup %6138 }
0x11a2   :  { %v6141_v7 = vpop.eup %6140  ;;  %v2105_v42 = vsel %vm326_vm1, %v6934_v43, 0.0 }
0x11a3   :  { %2106 = vadd.xlane.f32.xlu1 %v2105_v42  ;;  %v2102_v45 = vsel %vm326_vm1, %v6141_v7, 0.0 }
0x11a4   :  { %2103 = vadd.xlane.f32.xlu0 %v2102_v45 }
0x11a5   :  { %v6939_v59 = vpop.eup %6142 }
0x11a6   :  { %v6145_v49 = vpop.eup %6144  ;;  %v2111_v50 = vsel %vm326_vm1, %v6939_v59, 0.0 }
0x11a7   :  { %2112 = vadd.xlane.f32.xlu1 %v2111_v50  ;;  %v2108_v51 = vsel %vm326_vm1, %v6145_v49, 0.0 }
0x11a8   :  { %2109 = vadd.xlane.f32.xlu0 %v2108_v51 }
0x11a9   :  { %v6147_v52 = vpop.eup %6146 }
0x11aa   :  { %v2114_v17 = vsel %vm326_vm1, %v6147_v52, 0.0 }
0x11ac   :  { %2115 = vadd.xlane.f32.xlu0 %v2114_v17 }
0x11b8   :  { %2135 = vrot.lane.b32.xlu1 %v6818_v15, %s6306_s10  ;;  %v6958_v15 = vadd.f32 %v1704_v1, %v6769_v25 }
0x11c2   :  { %2133 = vrot.lane.b32.xlu0 %v6820_v44, %s6306_s10  ;;  %v1714_v44 = vsel %vm63_vm0, %v6958_v15, 0.0 }
0x11dc   :  { %1712 = vadd.xlane.f32.xlu1 %v1711_v10 }
0x11e1   :  { %1715 = vadd.xlane.f32.xlu0 %v1714_v44 }
0x1222   :  { %v2098_v13 = vpop.xlane.xlu0 %2097 }
0x1224   :  { %v2095_v11 = vpop.xlane.xlu1 %2094 }
0x1225   :  { %6148 = vrcp.f32 %v2095_v11 }
0x1226   :  { %6150 = vrcp.f32 %v2098_v13 }
0x1228   :  { %v2101_v19 = vpop.xlane.xlu1 %2100 }
0x1229   :  { %6152 = vrcp.f32 %v2101_v19 }
0x122c   :  { %v2107_v23 = vpop.xlane.xlu1 %2106 }
0x122d   :  { %v2104_v30 = vpop.xlane.xlu0 %2103 }
0x122e   :  { %6154 = vrcp.f32 %v2104_v30 }
0x122f   :  { %6156 = vrcp.f32 %v2107_v23 }
0x1230   :  { %v2113_v0 = vpop.xlane.xlu1 %2112 }
0x1231   :  { %v2110_v6 = vpop.xlane.xlu0 %2109 }
0x1232   :  { %v6149_v5 = vpop.eup %6148  ;;  %6158 = vrcp.f32 %v2110_v6 }
0x1233   :  { %6160 = vrcp.f32 %v2113_v0  ;;  %v2118_v25 = vmul.f32 %v6149_v5, %v6135_v35  ;;  %v6151_v27 = vpop.eup %6150 }
0x1234   :  { %v2136_v9 = vpop.permute.xlu1 %2135  ;;  %v2120_v4 = vmul.f32 %v6151_v27, %v6928_v36 }
0x1235   :  { %v2116_v39 = vpop.xlane.xlu0 %2115  ;;  %5770 = vmatprep.subr.mxu0 %v2136_v9  ;;  %5774 = vmatprep.mubr.msk.f32.mxu0 %vm326_vm1, %v2118_v25 }
0x1236   :  { %6162 = vrcp.f32 %v2116_v39  ;;  %5771 = vmatpush3.msra.mxu0 %v2136_v9  ;;  %v6153_v40 = vpop.eup %6152 }
0x1237   :  { %v2122_v42 = vmul.f32 %v6153_v40, %v6137_v38 }
0x1239   :  { %v2134_v34 = vpop.permute.xlu0 %2133 }
0x123a   :  { %5772 = vmatprep.subr.mxu0 %v2134_v34 }
0x123b   :  { %v6155_v41 = vpop.eup %6154  ;;  %5773 = vmatpush3.msra.mxu0 %v2134_v34 }
0x123c   :  { %v6157_v45 = vpop.eup %6156  ;;  %5775 = vmatmul.mubr.msk.f32.vlgmr.msra.gmra.mxu0 %vm326_vm1, %v2120_v4  ;;  %v2124_v35 = vmul.f32 %v6155_v41, %v6141_v7  ;;  %v5120_v7 = vld [vmem:[%s7620_s3 + $0xf0] sm:$0xff] }
0x123d   :  { %5777 = vmatprep.mubr.msk.f32.mxu0 %vm326_vm1, %v2122_v42  ;;  %v2126_v51 = vmul.f32 %v6157_v45, %v6934_v43  ;;  %v5121_v43 = vld [vmem:[%s7620_s3 + $0xf8] sm:$0xff] }
0x123e   :  { %5786 = vmatprep.subr.mxu1 %v5121_v43  ;;  %v5125_v42 = vld [vmem:[%s7620_s3 + $0x118] sm:$0xff] }
0x123f   :  { %v6159_v50 = vpop.eup %6158  ;;  %5787 = vmatpush3.msra.mxu1 %v5121_v43  ;;  %5797 = vmatprep.subr.mxu0 %v5125_v42 }
0x1240   :  { %v6161_v17 = vpop.eup %6160  ;;  %5778 = vmatmul.mubr.msk.f32.gmra.mxu0 %vm326_vm1, %v2124_v35  ;;  %v2128_v54 = vmul.f32 %v6159_v50, %v6145_v49  ;;  %5788 = vmatprep.subr.mxu1 %v5120_v7  ;;  %v5118_v49 = vld [vmem:[%s7620_s3 + $0xe0] sm:$0xff] }
0x1241   :  { %5780 = vmatprep.mubr.msk.f32.mxu0 %vm326_vm1, %v2126_v51  ;;  %v2130_v36 = vmul.f32 %v6161_v17, %v6939_v59  ;;  %5789 = vmatpush3.msra.mxu1 %v5120_v7  ;;  %v5119_v59 = vld [vmem:[%s7620_s3 + $0xe8] sm:$0xff]  ;;  %v5163_v51 = vld [vmem:[%s7623_s5 + $0x11] ss:$0 sm:$0xff] }
0x1242   :  { %5790 = vmatprep.subr.mxu1 %v5119_v59  ;;  %5798 = vmatpush3.msra.mxu0 %v5125_v42 }
0x1243   :  { %v6163_v55 = vpop.eup %6162  ;;  %5791 = vmatpush3.msra.mxu1 %v5119_v59 }
0x1244   :  { %5781 = vmatmul.mubr.msk.f32.gmra.mxu0 %vm326_vm1, %v2128_v54  ;;  %v2132_v38 = vmul.f32 %v6163_v55, %v6147_v52  ;;  %5792 = vmatprep.subr.mxu1 %v5118_v49 }
0x1245   :  { %5783 = vmatprep.mubr.msk.f32.mxu0 %vm326_vm1, %v2130_v36  ;;  %5793 = vmatpush3.msra.mxu1 %v5118_v49 }
0x1248   :  { %5784 = vmatmul.mubr.msk.f32.gmra.mxu0 %vm326_vm1, %v2132_v38 }
0x1265   :  { %v1713_v35 = vpop.xlane.xlu1 %1712 }
0x1266   :  { %v1717_v17 = vmul.f32 0.03125, %v1713_v35 }
0x1268   :  { %v1719_v43 = vsub.f32 %v6953_v61, %v1717_v17  ;;  %v5122_v61 = vld [vmem:[%s7620_s3 + $0x100] sm:$0xff] }
0x126a   :  { %v1716_v45 = vpop.xlane.xlu0 %1715 }
0x126b   :  { %v1718_v50 = vmul.f32 0.03125, %v1716_v45  ;;  %v5112_v45 = vld [vmem:[%s7623_s5 + $0xe] ss:$0 sm:$0xff] }
0x126d   :  { %v1720_v55 = vsub.f32 %v6958_v15, %v1718_v50 }
0x12fc   :  { %v5776_v52 = vpop.f32.mrf.mxu0 }
0x12fd   :  { %v2269_v30 = vmul.f32 %v5776_v52, %v6434_v18 }
0x12fe   :  { %v2229_v56 = vpop.f32.mrf.mxu0 }
0x12ff   :  { %v2268_v19 = vmul.f32 %v2229_v56, %v6436_v20  ;;  %v1722_v56 = vmul.f32 %v1720_v55, %v1720_v55 }
0x1300   :  { %v5779_v57 = vpop.f32.mrf.mxu0 }
0x1301   :  { %v2271_v11 = vmul.f32 %v5779_v57, %v6449_v26 }
0x1302   :  { %v2239_v1 = vpop.f32.mrf.mxu0 }
0x1303   :  { %v2270_v44 = vmul.f32 %v2239_v1, %v6446_v24  ;;  %v2277_v25 = vadd.f32 %v2271_v11, %v2269_v30  ;;  %v1721_v1 = vmul.f32 %v1719_v43, %v1719_v43 }
0x1304   :  { %v5782_v10 = vpop.f32.mrf.mxu0 }
0x1305   :  { %v2273_v0 = vmul.f32 %v5782_v10, %v6456_v29  ;;  %v2276_v5 = vadd.f32 %v2270_v44, %v2268_v19  ;;  %v1726_v10 = vsel %vm63_vm0, %v1722_v56, 0.0  ;;  %v1723_v15 = vsel %vm63_vm0, %v1721_v1, 0.0 }
0x1306   :  { %v2249_v13 = vpop.f32.mrf.mxu0 }
0x1307   :  { %v2272_v23 = vmul.f32 %v2249_v13, %v6460_v31  ;;  %v2279_v34 = vadd.f32 %v2277_v25, %v2273_v0 }
0x1308   :  { %v5785_v6 = vpop.f32.mrf.mxu0 }
0x1309   :  { %v2275_v9 = vmul.f32 %v5785_v6, %v6465_v33  ;;  %v2278_v27 = vadd.f32 %v2276_v5, %v2272_v23 }
0x130a   :  { %v2259_v39 = vpop.f32.mrf.mxu0 }
0x130b   :  { %v2274_v40 = vmul.f32 %v2259_v39, %v6508_v14  ;;  %v2281_v41 = vadd.f32 %v2279_v34, %v2275_v9 }
0x130d   :  { %v2280_v4 = vadd.f32 %v2278_v27, %v2274_v40 }
0x130f   :  { %5794 = vmatprep.mubr.msk.f32.mxu1 %vm63_vm0, %v2280_v4 }
0x1310   :  { %5795 = vmatmul.mubr.msk.f32.vlgmr.msra.gmra.mxu1 %vm63_vm0, %v2281_v41 }
0x13d0   :  { %v5796_v54 = vpop.f32.mrf.mxu1 }
0x13d1   :  { %v2364_v36 = vadd.f32 %v5796_v54, %v5163_v51 }
0x13d2   :  { %v2358_v38 = vpop.f32.mrf.mxu1 }
0x13d3   :  { %v2359_v7 = vadd.f32 %v5163_v51, %v2358_v38  ;;  %v2368_v59 = vadd.f32 %v2364_v36, %v6794_v32  ;;  %v5123_v32 = vld [vmem:[%s7620_s3 + $0x108] sm:$0xff] }
0x13d4   :  { %v5113_v51 = vld [vmem:[%s7623_s5 + $0xf] ss:$0 sm:$0xff] }
0x13d5   :  { %v2374_v49 = vsel %vm63_vm0, %v2368_v59, 0.0  ;;  %v2367_v52 = vadd.f32 %v2359_v7, %v6774_v22  ;;  %v5124_v22 = vld [vmem:[%s7620_s3 + $0x110] sm:$0xff] }
0x13d6   :  { %2375 = vadd.xlane.f32.xlu0 %v2374_v49  ;;  %5799 = vmatprep.subr.mxu0 %v5124_v22 }
0x13d7   :  { %v2371_v57 = vsel %vm63_vm0, %v2367_v52, 0.0  ;;  %5800 = vmatpush3.msra.mxu0 %v5124_v22 }
0x13d8   :  { %2372 = vadd.xlane.f32.xlu1 %v2371_v57  ;;  %5801 = vmatprep.subr.mxu0 %v5123_v32 }
0x13d9   :  { %5802 = vmatpush3.msra.mxu0 %v5123_v32 }
0x13da   :  { %1727 = vadd.xlane.f32.xlu0 %v1726_v10  ;;  %5803 = vmatprep.subr.mxu0 %v5122_v61  ;;  %v5167_v10 = vld [vmem:[%s7623_s5 + $0x13] ss:$0 sm:$0xff] }
0x13db   :  { %5804 = vmatpush3.msra.mxu0 %v5122_v61 }
0x13dc   :  { %1724 = vadd.xlane.f32.xlu1 %v1723_v15 }
0x13ed   :  { %2506 = vrot.lane.b32.xlu1 %v5125_v42, %s6305_s24 }
0x13f1   :  { %2502 = vrot.lane.b32.xlu1 %v5123_v32, %s6305_s24 }
0x145f   :  { %v2376_v44 = vpop.xlane.xlu0 %2375 }
0x1460   :  { %v2378_v11 = vmul.f32 0.03125, %v2376_v44 }
0x1461   :  { %v2373_v13 = vpop.xlane.xlu1 %2372 }
0x1462   :  { %v7020_v19 = vsub.f32 %v2368_v59, %v2378_v11  ;;  %v2377_v23 = vmul.f32 0.03125, %v2373_v13 }
0x1463   :  { %v1728_v30 = vpop.xlane.xlu0 %1727 }
0x1464   :  { %v2379_v0 = vsub.f32 %v2367_v52, %v2377_v23  ;;  %v1730_v6 = vmul.f32 0.03125, %v1728_v30  ;;  %v2382_v5 = vmul.f32 %v7020_v19, %v7020_v19 }
0x1465   :  { %v1725_v25 = vpop.xlane.xlu1 %1724 }
0x1466   :  { %v1732_v9 = vadd.f32 1e-05, %v1730_v6  ;;  %v1729_v39 = vmul.f32 0.03125, %v1725_v25  ;;  %v2386_v27 = vsel %vm63_vm0, %v2382_v5, 0.0  ;;  %v2381_v40 = vmul.f32 %v2379_v0, %v2379_v0 }
0x1467   :  { %2387 = vadd.xlane.f32.xlu0 %v2386_v27 }
0x1468   :  { %6164 = vrsqrt.f32 %v1732_v9  ;;  %v1731_v34 = vadd.f32 1e-05, %v1729_v39  ;;  %v2383_v4 = vsel %vm63_vm0, %v2381_v40, 0.0 }
0x1469   :  { %2384 = vadd.xlane.f32.xlu1 %v2383_v4  ;;  %v2507_v41 = vpop.permute.xlu1 %2506 }
0x146a   :  { %6166 = vrsqrt.f32 %v1731_v34  ;;  %5808 = vmatprep.subr.mxu1 %v2507_v41 }
0x146b   :  { %5809 = vmatpush3.msra.mxu1 %v2507_v41 }
0x1475   :  { %v6165_v42 = vpop.eup %6164 }
0x1476   :  { %v1736_v35 = vmul.f32 %v6165_v42, %v1720_v55  ;;  %v5168_v55 = vld [vmem:[%s7623_s5 + $0x14] ss:$0 sm:$0xff] }
0x1477   :  { %v6167_v50 = vpop.eup %6166 }
0x1478   :  { %v1735_v17 = vmul.f32 %v6167_v50, %v1719_v43  ;;  %v1742_v54 = vmul.f32 %v5112_v45, %v1736_v35 }
0x147a   :  { %v1741_v36 = vmul.f32 %v5112_v45, %v1735_v17  ;;  %v7032_v38 = vadd.f32 %v5113_v51, %v1742_v54  ;;  %2500 = vrot.lane.b32.xlu1 %v5122_v61, %s6305_s24 }
0x147c   :  { %v7035_v7 = vadd.f32 %v5113_v51, %v1741_v36 }
0x147d   :  { %2504 = vrot.lane.b32.xlu0 %v5124_v22, %s6305_s24 }
0x147e   :  { %5816 = vmatprep.mubr.msk.f32.mxu1 %vm63_vm0, %v7035_v7  ;;  %2607 = vrot.lane.b32.xlu1 %v6832_v63, %s6305_s24  ;;  %v2503_v63 = vpop.permute.xlu1 %2502 }
0x1481   :  { %2513 = vrot.lane.b32.xlu0 %v5168_v55, %s6305_s24 }
0x1482   :  { %2611 = vrot.lane.b32.xlu1 %v6838_v46, %s6305_s24 }
0x1485   :  { %2609 = vrot.lane.b32.xlu0 %v6844_v12, %s6305_s24 }
0x1486   :  { %2615 = vrot.lane.b32.xlu1 %v6850_v16, %s6305_s24 }
0x1489   :  { %2613 = vrot.lane.b32.xlu0 %v6856_v47, %s6305_s24 }
0x148a   :  { %2619 = vrot.lane.b32.xlu1 %v6862_v48, %s6305_s24 }
0x148d   :  { %2617 = vrot.lane.b32.xlu0 %v6868_v8, %s6305_s24  ;;  %v5166_v8 = vld [vmem:[%s7623_s5 + $0x12] ss:$0 sm:$0xff] }
0x1491   :  { %2621 = vrot.lane.b32.xlu0 %v6874_v60, %s6305_s24 }
0x14f0   :  { %v2388_v46 = vpop.xlane.xlu0 %2387 }
0x14f1   :  { %v2390_v16 = vmul.f32 0.03125, %v2388_v46 }
0x14f2   :  { %v2385_v48 = vpop.xlane.xlu1 %2384 }
0x14f3   :  { %v2392_v43 = vadd.f32 1e-05, %v2390_v16  ;;  %v2389_v59 = vmul.f32 0.03125, %v2385_v48 }
0x14f4   :  { %v2505_v49 = vpop.permute.xlu0 %2504 }
0x14f5   :  { %6168 = vrsqrt.f32 %v2392_v43  ;;  %v2391_v52 = vadd.f32 1e-05, %v2389_v59  ;;  %5810 = vmatprep.subr.mxu1 %v2505_v49 }
0x14f6   :  { %5811 = vmatpush3.msra.mxu1 %v2505_v49  ;;  %v2501_v12 = vpop.permute.xlu1 %2500 }
0x14f7   :  { %6170 = vrsqrt.f32 %v2391_v52  ;;  %5812 = vmatprep.subr.mxu1 %v2503_v63 }
0x14f8   :  { %5813 = vmatpush3.msra.mxu1 %v2503_v63  ;;  %v2514_v61 = vpop.permute.xlu0 %2513 }
0x14f9   :  { %5814 = vmatprep.subr.mxu1 %v2501_v12 }
0x14fa   :  { %5815 = vmatpush3.msra.mxu1 %v2501_v12  ;;  %v7107_v35 = vpop.permute.xlu1 %2607 }
0x14fb   :  { %5817 = vmatmul.mubr.msk.f32.vlgmr.msra.gmra.mxu1 %vm63_vm0, %v7032_v38 }
0x14fc   :  { %v7105_v45 = vpop.permute.xlu0 %2609 }
0x14fe   :  { %v7111_v17 = vpop.permute.xlu1 %2611 }
0x1500   :  { %v7109_v50 = vpop.permute.xlu0 %2613 }
0x1502   :  { %v6169_v47 = vpop.eup %6168  ;;  %v7120_v49 = vpop.permute.xlu1 %2615 }
0x1503   :  { %v2396_v60 = vmul.f32 %v6169_v47, %v7020_v19 }
0x1504   :  { %v6171_v56 = vpop.eup %6170  ;;  %v7116_v16 = vpop.permute.xlu0 %2617 }
0x1505   :  { %v2395_v57 = vmul.f32 %v6171_v56, %v2379_v0  ;;  %v2402_v1 = vmul.f32 %v5166_v8, %v2396_v60 }
0x1507   :  { %v2401_v15 = vmul.f32 %v5166_v8, %v2395_v57  ;;  %v7071_v22 = vadd.f32 %v5167_v10, %v2402_v1 }
0x1508   :  { %v7126_v57 = vpop.permute.xlu0 %2621 }
0x1509   :  { %v7069_v32 = vadd.f32 %v5167_v10, %v2401_v15  ;;  %v7129_v15 = vpop.permute.xlu1 %2619 }
0x150b   :  { %5805 = vmatprep.mubr.msk.f32.mxu0 %vm63_vm0, %v7069_v32 }
0x150c   :  { %5806 = vmatmul.mubr.msk.f32.vlgmr.msra.gmra.mxu0 %vm63_vm0, %v7071_v22 }
0x15bb   :  { %v5818_v44 = vpop.f32.mrf.mxu1 }
0x15bc   :  { %v7077_v11 = vadd.f32 %v5818_v44, %v2514_v61 }
0x15bd   :  { %v2588_v13 = vpop.f32.mrf.mxu1 }
0x15be   :  { %v7079_v19 = vadd.f32 %v2588_v13, %v2514_v61  ;;  %5819 = vmatprep.subr.msk.mxu0 %vm63_vm0, %v7077_v11 }
0x15bf   :  { %5820 = vmatpush3.xpose.msk.msra.mxu0 %vm63_vm0, %v7077_v11 }
0x15c0   :  { %5821 = vmatprep.subr.msk.mxu0 %vm63_vm0, %v7079_v19 }
0x15c3   :  { %5822 = vmatpush3.xpose.msk.msra.mxu0 %vm63_vm0, %v7079_v19 }
0x15cc   :  { %v5807_v23 = vpop.f32.mrf.mxu0 }
0x15cd   :  { %v2493_v30 = vadd.f32 %v5807_v23, %v5168_v55 }
0x15ce   :  { %v2487_v0 = vpop.f32.mrf.mxu0 }
0x15cf   :  { %v2488_v6 = vadd.f32 %v5168_v55, %v2487_v0  ;;  %v2598_v5 = vmul.f32 0.35355338, %v2493_v30 }
0x15d1   :  { %v2597_v25 = vmul.f32 0.35355338, %v2488_v6  ;;  %v2600_v39 = vmul.f32 %v2598_v5, %v6434_v18  ;;  %v2602_v40 = vmul.f32 %v2598_v5, %v6449_v26  ;;  %v2604_v4 = vmul.f32 %v2598_v5, %v6456_v29 }
0x15d2   :  { %v2606_v42 = vmul.f32 %v2598_v5, %v6465_v33 }
0x15d3   :  { %v2599_v9 = vmul.f32 %v2597_v25, %v6436_v20  ;;  %v2601_v27 = vmul.f32 %v2597_v25, %v6446_v24  ;;  %v2603_v34 = vmul.f32 %v2597_v25, %v6460_v31  ;;  %v2605_v41 = vmul.f32 %v2597_v25, %v6508_v14 }
0x15d5   :  { %5823 = vmatprep.mubr.msk.f32.mxu0 %vm63_vm0, %v2599_v9 }
0x15d6   :  { %5824 = vmatmul.mubr.msk.f32.vlgmr.msra.gmra.mxu0 %vm63_vm0, %v2600_v39 }
0x15d7   :  { %5826 = vmatprep.mubr.msk.f32.mxu0 %vm63_vm0, %v2601_v27 }
0x15da   :  { %5827 = vmatmul.mubr.msk.f32.gmra.mxu0 %vm63_vm0, %v2602_v40 }
0x15db   :  { %5829 = vmatprep.mubr.msk.f32.mxu0 %vm63_vm0, %v2603_v34 }
0x15de   :  { %5830 = vmatmul.mubr.msk.f32.gmra.mxu0 %vm63_vm0, %v2604_v4 }
0x15df   :  { %5832 = vmatprep.mubr.msk.f32.mxu0 %vm63_vm0, %v2605_v41 }
0x15e2   :  { %5833 = vmatmul.mubr.msk.f32.gmra.mxu0 %vm63_vm0, %v2606_v42 }
0x1696   :  { %v5825_v51 = vpop.f32.mrf.mxu0 }
0x1697   :  { %v2733_v54 = vadd.f32 %v5825_v51, %v7105_v45 }
0x1698   :  { %v2727_v36 = vpop.f32.mrf.mxu0 }
0x1699   :  { %v2728_v55 = vadd.f32 %v2727_v36, %v7107_v35  ;;  %v2769_v63 = vsel %vm326_vm1, %v2733_v54, -inf }
0x169a   :  { %2770 = vmax.xlane.f32.xlu0 %v2769_v63  ;;  %v5828_v46 = vpop.f32.mrf.mxu0 }
0x169b   :  { %v2743_v48 = vadd.f32 %v5828_v46, %v7109_v50  ;;  %v2766_v43 = vsel %vm326_vm1, %v2728_v55, -inf }
0x169c   :  { %v2737_v59 = vpop.f32.mrf.mxu0  ;;  %2767 = vmax.xlane.f32.xlu1 %v2766_v43 }
0x169d   :  { %v2738_v52 = vadd.f32 %v2737_v59, %v7111_v17  ;;  %v2775_v8 = vsel %vm326_vm1, %v2743_v48, -inf }
0x169e   :  { %v5831_v12 = vpop.f32.mrf.mxu0 }
0x169f   :  { %v2753_v47 = vadd.f32 %v5831_v12, %v7116_v16  ;;  %v2772_v60 = vsel %vm326_vm1, %v2738_v52, -inf }
0x16a0   :  { %v2747_v56 = vpop.f32.mrf.mxu0  ;;  %2776 = vmax.xlane.f32.xlu1 %v2775_v8  ;;  %2773 = vmax.xlane.f32.xlu0 %v2772_v60 }
0x16a1   :  { %v2748_v1 = vadd.f32 %v2747_v56, %v7120_v49  ;;  %v2781_v44 = vsel %vm326_vm1, %v2753_v47, -inf }
0x16a2   :  { %v5834_v10 = vpop.f32.mrf.mxu0 }
0x16a3   :  { %v2763_v61 = vadd.f32 %v5834_v10, %v7126_v57  ;;  %v2778_v13 = vsel %vm326_vm1, %v2748_v1, -inf }
0x16a4   :  { %v2757_v23 = vpop.f32.mrf.mxu0  ;;  %2782 = vmax.xlane.f32.xlu1 %v2781_v44  ;;  %2779 = vmax.xlane.f32.xlu0 %v2778_v13 }
0x16a5   :  { %v2758_v30 = vadd.f32 %v2757_v23, %v7129_v15  ;;  %v2787_v0 = vsel %vm326_vm1, %v2763_v61, -inf }
0x16a7   :  { %v2784_v6 = vsel %vm326_vm1, %v2758_v30, -inf }
0x16a8   :  { %2788 = vmax.xlane.f32.xlu1 %v2787_v0  ;;  %2785 = vmax.xlane.f32.xlu0 %v2784_v6 }
0x1723   :  { %v2771_v5 = vpop.xlane.xlu0 %2770 }
0x1724   :  { %v2791_v25 = vsub.f32 %v2733_v54, %v2771_v5 }
0x1725   :  { %v2768_v9 = vpop.xlane.xlu1 %2767 }
0x1726   :  { %v2800_v39 = vmul.f32 1.442695, %v2791_v25  ;;  %v2790_v27 = vsub.f32 %v2728_v55, %v2768_v9 }
0x1728   :  { %6172 = vpow2.f32 %v2800_v39  ;;  %v2798_v40 = vmul.f32 1.442695, %v2790_v27 }
0x1729   :  { %v2774_v34 = vpop.xlane.xlu0 %2773  ;;  %v2777_v4 = vpop.xlane.xlu1 %2776 }
0x172a   :  { %6174 = vpow2.f32 %v2798_v40  ;;  %v2792_v41 = vsub.f32 %v2738_v52, %v2774_v34  ;;  %v2793_v42 = vsub.f32 %v2743_v48, %v2777_v4 }
0x172c   :  { %v2802_v51 = vmul.f32 1.442695, %v2792_v41  ;;  %v2804_v36 = vmul.f32 1.442695, %v2793_v42 }
0x172d   :  { %v2780_v63 = vpop.xlane.xlu0 %2779  ;;  %v2783_v46 = vpop.xlane.xlu1 %2782 }
0x172e   :  { %6176 = vpow2.f32 %v2802_v51  ;;  %v2794_v43 = vsub.f32 %v2748_v1, %v2780_v63  ;;  %v2795_v59 = vsub.f32 %v2753_v47, %v2783_v46 }
0x172f   :  { %6178 = vpow2.f32 %v2804_v36 }
0x1730   :  { %v2806_v12 = vmul.f32 1.442695, %v2794_v43  ;;  %v2808_v54 = vmul.f32 1.442695, %v2795_v59 }
0x1731   :  { %v2786_v8 = vpop.xlane.xlu0 %2785  ;;  %v2789_v60 = vpop.xlane.xlu1 %2788 }
0x1732   :  { %6180 = vpow2.f32 %v2806_v12  ;;  %v2796_v55 = vsub.f32 %v2758_v30, %v2786_v8  ;;  %v2797_v56 = vsub.f32 %v2763_v61, %v2789_v60 }
0x1733   :  { %6182 = vpow2.f32 %v2808_v54 }
0x1734   :  { %v2810_v10 = vmul.f32 1.442695, %v2796_v55  ;;  %v2812_v44 = vmul.f32 1.442695, %v2797_v56 }
0x1735   :  { %v6173_v52 = vpop.eup %6172 }
0x1736   :  { %6184 = vpow2.f32 %v2810_v10  ;;  %v2817_v48 = vsel %vm326_vm1, %v6173_v52, 0.0 }
0x1737   :  { %v6175_v13 = vpop.eup %6174  ;;  %6186 = vpow2.f32 %v2812_v44  ;;  %2818 = vadd.xlane.f32.xlu1 %v2817_v48 }
0x1738   :  { %v2814_v47 = vsel %vm326_vm1, %v6175_v13, 0.0 }
0x1739   :  { %2815 = vadd.xlane.f32.xlu0 %v2814_v47 }
0x173b   :  { %v6177_v1 = vpop.eup %6176 }
0x173c   :  { %v6179_v23 = vpop.eup %6178  ;;  %v2820_v0 = vsel %vm326_vm1, %v6177_v1, 0.0 }
0x173d   :  { %2821 = vadd.xlane.f32.xlu0 %v2820_v0  ;;  %v2823_v61 = vsel %vm326_vm1, %v6179_v23, 0.0 }
0x173e   :  { %2824 = vadd.xlane.f32.xlu1 %v2823_v61 }
0x173f   :  { %v6181_v30 = vpop.eup %6180 }
0x1740   :  { %v6183_v6 = vpop.eup %6182  ;;  %v2826_v5 = vsel %vm326_vm1, %v6181_v30, 0.0 }
0x1741   :  { %2827 = vadd.xlane.f32.xlu0 %v2826_v5  ;;  %v2829_v25 = vsel %vm326_vm1, %v6183_v6, 0.0 }
0x1742   :  { %2830 = vadd.xlane.f32.xlu1 %v2829_v25 }
0x1743   :  { %v6185_v9 = vpop.eup %6184 }
0x1744   :  { %v6187_v39 = vpop.eup %6186  ;;  %v2832_v27 = vsel %vm326_vm1, %v6185_v9, 0.0 }
0x1745   :  { %2833 = vadd.xlane.f32.xlu0 %v2832_v27  ;;  %v2835_v40 = vsel %vm326_vm1, %v6187_v39, 0.0 }
0x1746   :  { %2836 = vadd.xlane.f32.xlu1 %v2835_v40 }
0x1757   :  { %2854 = vrot.lane.b32.xlu1 %v7079_v19, %s6305_s24 }
0x175b   :  { %2856 = vrot.lane.b32.xlu0 %v7077_v11, %s6305_s24 }
0x17c0   :  { %v2819_v34 = vpop.xlane.xlu1 %2818 }
0x17c2   :  { %v2816_v4 = vpop.xlane.xlu0 %2815 }
0x17c3   :  { %6188 = vrcp.f32 %v2816_v4 }
0x17c4   :  { %6190 = vrcp.f32 %v2819_v34 }
0x17c6   :  { %v2822_v41 = vpop.xlane.xlu0 %2821 }
0x17c7   :  { %6192 = vrcp.f32 %v2822_v41  ;;  %v2825_v42 = vpop.xlane.xlu1 %2824 }
0x17c8   :  { %6194 = vrcp.f32 %v2825_v42 }
0x17ca   :  { %v2828_v51 = vpop.xlane.xlu0 %2827 }
0x17cb   :  { %6196 = vrcp.f32 %v2828_v51  ;;  %v2831_v36 = vpop.xlane.xlu1 %2830 }
0x17cc   :  { %6198 = vrcp.f32 %v2831_v36 }
0x17ce   :  { %v2834_v63 = vpop.xlane.xlu0 %2833 }
0x17cf   :  { %6200 = vrcp.f32 %v2834_v63  ;;  %v2837_v46 = vpop.xlane.xlu1 %2836 }
0x17d0   :  { %v6189_v43 = vpop.eup %6188  ;;  %6202 = vrcp.f32 %v2837_v46 }
0x17d1   :  { %v2839_v19 = vmul.f32 %v6189_v43, %v6175_v13  ;;  %v6191_v59 = vpop.eup %6190 }
0x17d2   :  { %v2857_v11 = vpop.permute.xlu0 %2856  ;;  %v2841_v8 = vmul.f32 %v6191_v59, %v6173_v52 }
0x17d3   :  { %5835 = vmatprep.subr.mxu1 %v2857_v11  ;;  %5839 = vmatprep.mubr.msk.f32.mxu1 %vm326_vm1, %v2839_v19  ;;  %v2855_v54 = vpop.permute.xlu1 %2854 }
0x17d4   :  { %v6193_v12 = vpop.eup %6192  ;;  %5836 = vmatpush3.msra.mxu1 %v2857_v11 }
0x17d5   :  { %5837 = vmatprep.subr.mxu1 %v2855_v54  ;;  %v2843_v60 = vmul.f32 %v6193_v12, %v6177_v1  ;;  %v6195_v55 = vpop.eup %6194  ;;  %v5129_v1 = vld [vmem:[%s7620_s3 + $0x138] sm:$0xff] }
0x17d6   :  { %5838 = vmatpush3.msra.mxu1 %v2855_v54  ;;  %v2845_v10 = vmul.f32 %v6195_v55, %v6179_v23  ;;  %5851 = vmatprep.subr.mxu0 %v5129_v1  ;;  %v5128_v23 = vld [vmem:[%s7620_s3 + $0x130] sm:$0xff] }
0x17d7   :  { %5840 = vmatmul.mubr.msk.f32.vlgmr.msra.gmra.mxu1 %vm326_vm1, %v2841_v8  ;;  %5852 = vmatpush3.msra.mxu0 %v5129_v1  ;;  %v5191_v55 = vld [vmem:[%s7623_s5 + $0x15] ss:$0 sm:$0xff] }
0x17d8   :  { %v6197_v56 = vpop.eup %6196  ;;  %5842 = vmatprep.mubr.msk.f32.mxu1 %vm326_vm1, %v2843_v60  ;;  %5853 = vmatprep.subr.mxu0 %v5128_v23 }
0x17d9   :  { %v2847_v44 = vmul.f32 %v6197_v56, %v6181_v30  ;;  %v6199_v48 = vpop.eup %6198  ;;  %5854 = vmatpush3.msra.mxu0 %v5128_v23  ;;  %v5127_v30 = vld [vmem:[%s7620_s3 + $0x128] sm:$0xff] }
0x17da   :  { %v2849_v47 = vmul.f32 %v6199_v48, %v6183_v6  ;;  %5855 = vmatprep.subr.mxu0 %v5127_v30  ;;  %v5126_v6 = vld [vmem:[%s7620_s3 + $0x120] sm:$0xff] }
0x17db   :  { %5843 = vmatmul.mubr.msk.f32.gmra.mxu1 %vm326_vm1, %v2845_v10  ;;  %5856 = vmatpush3.msra.mxu0 %v5127_v30 }
0x17dc   :  { %v6201_v13 = vpop.eup %6200  ;;  %5845 = vmatprep.mubr.msk.f32.mxu1 %vm326_vm1, %v2847_v44  ;;  %5857 = vmatprep.subr.mxu0 %v5126_v6 }
0x17dd   :  { %v2851_v0 = vmul.f32 %v6201_v13, %v6185_v9  ;;  %v6203_v61 = vpop.eup %6202  ;;  %5858 = vmatpush3.msra.mxu0 %v5126_v6 }
0x17de   :  { %v2853_v52 = vmul.f32 %v6203_v61, %v6187_v39 }
0x17df   :  { %5846 = vmatmul.mubr.msk.f32.gmra.mxu1 %vm326_vm1, %v2849_v47 }
0x17e0   :  { %5848 = vmatprep.mubr.msk.f32.mxu1 %vm326_vm1, %v2851_v0 }
0x17e3   :  { %5849 = vmatmul.mubr.msk.f32.gmra.mxu1 %vm326_vm1, %v2853_v52 }
0x1897   :  { %v5841_v5 = vpop.f32.mrf.mxu1 }
0x1898   :  { %v2990_v51 = vmul.f32 %v5841_v5, %v6434_v18 }
0x1899   :  { %v2950_v25 = vpop.f32.mrf.mxu1 }
0x189a   :  { %v2989_v41 = vmul.f32 %v2950_v25, %v6436_v20 }
0x189b   :  { %v5844_v9 = vpop.f32.mrf.mxu1 }
0x189c   :  { %v2992_v34 = vmul.f32 %v5844_v9, %v6449_v26 }
0x189d   :  { %v2960_v39 = vpop.f32.mrf.mxu1 }
0x189e   :  { %v2991_v40 = vmul.f32 %v2960_v39, %v6446_v24  ;;  %v2998_v43 = vadd.f32 %v2992_v34, %v2990_v51  ;;  %v5130_v34 = vld [vmem:[%s7620_s3 + $0x140] sm:$0xff] }
0x189f   :  { %v5847_v27 = vpop.f32.mrf.mxu1  ;;  %v5138_v51 = vld [vmem:[%s7624_s4 + $0xa0] sm:$0xff] }
0x18a0   :  { %v2994_v36 = vmul.f32 %v5847_v27, %v6456_v29  ;;  %v2997_v46 = vadd.f32 %v2991_v40, %v2989_v41  ;;  %v5132_v27 = vld [vmem:[%s7620_s3 + $0x150] sm:$0xff]  ;;  %v5131_v40 = vld [vmem:[%s7620_s3 + $0x148] sm:$0xff] }
0x18a1   :  { %v2970_v4 = vpop.f32.mrf.mxu1  ;;  %v5140_v41 = vld [vmem:[%s7624_s4 + $0xb0] sm:$0xff] }
0x18a2   :  { %v2993_v42 = vmul.f32 %v2970_v4, %v6460_v31  ;;  %v3000_v54 = vadd.f32 %v2998_v43, %v2994_v36  ;;  %v5141_v4 = vld [vmem:[%s7624_s4 + $0xb8] sm:$0xff] }
0x18a3   :  { %v5850_v63 = vpop.f32.mrf.mxu1  ;;  %5873 = vmatprep.subr.mxu0 %v5141_v4 }
0x18a4   :  { %v2996_v19 = vmul.f32 %v5850_v63, %v6465_v33  ;;  %v2999_v11 = vadd.f32 %v2997_v46, %v2993_v42  ;;  %v5139_v42 = vld [vmem:[%s7624_s4 + $0xa8] sm:$0xff] }
0x18a5   :  { %v2980_v59 = vpop.f32.mrf.mxu1 }
0x18a6   :  { %v2995_v12 = vmul.f32 %v2980_v59, %v6508_v14  ;;  %v3002_v60 = vadd.f32 %v3000_v54, %v2996_v19 }
0x18a8   :  { %v3001_v8 = vadd.f32 %v2999_v11, %v2995_v12  ;;  %v5194_v12 = vld [vmem:[%s7623_s5 + $0x16] ss:$0 sm:$0xff] }
0x18aa   :  { %5859 = vmatprep.mubr.msk.f32.mxu0 %vm63_vm0, %v3001_v8 }
0x18ab   :  { %5860 = vmatmul.mubr.msk.f32.vlgmr.msra.gmra.mxu0 %vm63_vm0, %v3002_v60 }
0x18ac   :  { %5874 = vmatpush3.msra.mxu0 %v5141_v4 }
0x18ad   :  { %5875 = vmatprep.subr.mxu0 %v5140_v41 }
0x18ae   :  { %5876 = vmatpush3.msra.mxu0 %v5140_v41 }
0x18af   :  { %5877 = vmatprep.subr.mxu0 %v5139_v42 }
0x18b0   :  { %5878 = vmatpush3.msra.mxu0 %v5139_v42 }
0x18b1   :  { %5879 = vmatprep.subr.mxu0 %v5138_v51 }
0x18b2   :  { %5880 = vmatpush3.msra.mxu0 %v5138_v51 }
0x196b   :  { %v5861_v56 = vpop.f32.mrf.mxu0 }
0x196c   :  { %v3085_v10 = vadd.f32 %v5861_v56, %v5191_v55  ;;  %v5195_v56 = vld [vmem:[%s7623_s5 + $0x17] ss:$0 sm:$0xff] }
0x196d   :  { %v3079_v44 = vpop.f32.mrf.mxu0 }
0x196e   :  { %v3089_v48 = vadd.f32 %v3085_v10, %v7071_v22  ;;  %v3080_v13 = vadd.f32 %v5191_v55, %v3079_v44 }
0x1970   :  { %v3088_v47 = vadd.f32 %v3080_v13, %v7069_v32  ;;  %v3095_v0 = vsel %vm63_vm0, %v3089_v48, 0.0  ;;  %v5133_v32 = vld [vmem:[%s7620_s3 + $0x158] sm:$0xff] }
0x1971   :  { %3096 = vadd.xlane.f32.xlu0 %v3095_v0  ;;  %5862 = vmatprep.subr.mxu1 %v5133_v32  ;;  %v5137_v13 = vld [vmem:[%s7624_s4 + $0x98] sm:$0xff]  ;;  %v5135_v0 = vld [vmem:[%s7624_s4 + $0x88] sm:$0xff] }
0x1972   :  { %v3092_v61 = vsel %vm63_vm0, %v3088_v47, 0.0  ;;  %5863 = vmatpush3.msra.mxu1 %v5133_v32  ;;  %5881 = vmatprep.subr.mxu0 %v5137_v13 }
0x1973   :  { %3093 = vadd.xlane.f32.xlu1 %v3092_v61  ;;  %5864 = vmatprep.subr.mxu1 %v5132_v27  ;;  %v5134_v61 = vld [vmem:[%s7624_s4 + $0x80] sm:$0xff] }
0x1974   :  { %5865 = vmatpush3.msra.mxu1 %v5132_v27  ;;  %5882 = vmatpush3.msra.mxu0 %v5137_v13 }
0x1975   :  { %5866 = vmatprep.subr.mxu1 %v5131_v40 }
0x1976   :  { %5867 = vmatpush3.msra.mxu1 %v5131_v40 }
0x1977   :  { %5868 = vmatprep.subr.mxu1 %v5130_v34 }
0x1978   :  { %5869 = vmatpush3.msra.mxu1 %v5130_v34 }
0x19fa   :  { %v3097_v52 = vpop.xlane.xlu0 %3096 }
0x19fb   :  { %v3099_v1 = vmul.f32 0.03125, %v3097_v52  ;;  %v5196_v52 = vld [vmem:[%s7623_s5 + $0x18] ss:$0 sm:$0xff] }
0x19fc   :  { %v3094_v23 = vpop.xlane.xlu1 %3093 }
0x19fd   :  { %v3101_v30 = vsub.f32 %v3089_v48, %v3099_v1  ;;  %v3098_v6 = vmul.f32 0.03125, %v3094_v23 }
0x19ff   :  { %v3100_v5 = vsub.f32 %v3088_v47, %v3098_v6  ;;  %v3103_v25 = vmul.f32 %v3101_v30, %v3101_v30  ;;  %v5136_v47 = vld [vmem:[%s7624_s4 + $0x90] sm:$0xff] }
0x1a00   :  { %5883 = vmatprep.subr.mxu0 %v5136_v47 }
0x1a01   :  { %v3107_v9 = vsel %vm63_vm0, %v3103_v25, 0.0  ;;  %v3102_v39 = vmul.f32 %v3100_v5, %v3100_v5  ;;  %5884 = vmatpush3.msra.mxu0 %v5136_v47 }
0x1a02   :  { %3108 = vadd.xlane.f32.xlu1 %v3107_v9  ;;  %5885 = vmatprep.subr.mxu0 %v5135_v0  ;;  %v5199_v9 = vld [vmem:[%s7623_s5 + $0x19] ss:$0 sm:$0xff] }
0x1a03   :  { %v3104_v22 = vsel %vm63_vm0, %v3102_v39, 0.0  ;;  %5886 = vmatpush3.msra.mxu0 %v5135_v0 }
0x1a04   :  { %3105 = vadd.xlane.f32.xlu0 %v3104_v22  ;;  %5887 = vmatprep.subr.mxu0 %v5134_v61 }
0x1a05   :  { %5888 = vmatpush3.msra.mxu0 %v5134_v61  ;;  %v5202_v61 = vld [vmem:[%s7623_s5 + $0x1a] ss:$0 sm:$0xff] }
0x1a8b   :  { %v3109_v36 = vpop.xlane.xlu1 %3108 }
0x1a8c   :  { %v3111_v63 = vmul.f32 0.03125, %v3109_v36 }
0x1a8d   :  { %v3106_v46 = vpop.xlane.xlu0 %3105 }
0x1a8e   :  { %v3113_v43 = vadd.f32 1e-05, %v3111_v63  ;;  %v3110_v19 = vmul.f32 0.03125, %v3106_v46 }
0x1a90   :  { %6204 = vrsqrt.f32 %v3113_v43  ;;  %v3112_v59 = vadd.f32 1e-05, %v3110_v19 }
0x1a92   :  { %6206 = vrsqrt.f32 %v3112_v59 }
0x1a9d   :  { %v6205_v11 = vpop.eup %6204 }
0x1a9e   :  { %v3117_v54 = vmul.f32 %v6205_v11, %v3101_v30 }
0x1a9f   :  { %v6207_v8 = vpop.eup %6206 }
0x1aa0   :  { %v3116_v60 = vmul.f32 %v6207_v8, %v3100_v5  ;;  %v3123_v55 = vmul.f32 %v5194_v12, %v3117_v54  ;;  %v5207_v54 = vld [vmem:[%s7620_s3 + $0x178] sm:$0xff]  ;;  %v5206_v8 = vld [vmem:[%s7620_s3 + $0x170] sm:$0xff] }
0x1aa1   :  { %5892 = vmatprep.subr.mxu1 %v5207_v54 }
0x1aa2   :  { %v3122_v10 = vmul.f32 %v5194_v12, %v3116_v60  ;;  %v3129_v48 = vadd.f32 %v5195_v56, %v3123_v55  ;;  %v5205_v60 = vld [vmem:[%s7620_s3 + $0x168] sm:$0xff]  ;;  %v5204_v55 = vld [vmem:[%s7620_s3 + $0x160] sm:$0xff] }
0x1aa4   :  { %v3128_v44 = vadd.f32 %v5195_v56, %v3122_v10 }
0x1aa6   :  { %5870 = vmatprep.mubr.msk.f32.mxu1 %vm63_vm0, %v3128_v44 }
0x1aa7   :  { %5871 = vmatmul.mubr.msk.f32.vlgmr.msra.gmra.mxu1 %vm63_vm0, %v3129_v48 }
0x1aa8   :  { %5893 = vmatpush3.msra.mxu1 %v5207_v54 }
0x1aa9   :  { %5894 = vmatprep.subr.mxu1 %v5206_v8 }
0x1aaa   :  { %5895 = vmatpush3.msra.mxu1 %v5206_v8 }
0x1aab   :  { %5896 = vmatprep.subr.mxu1 %v5205_v60 }
0x1aac   :  { %5897 = vmatpush3.msra.mxu1 %v5205_v60 }
0x1aad   :  { %5898 = vmatprep.subr.mxu1 %v5204_v55 }
0x1aae   :  { %5899 = vmatpush3.msra.mxu1 %v5204_v55 }
0x1b67   :  { %v5872_v1 = vpop.f32.mrf.mxu1 }
0x1b68   :  { %v3214_v23 = vadd.f32 %v5872_v1, %v5196_v52 }
0x1b69   :  { %v3208_v30 = vpop.f32.mrf.mxu1 }
0x1b6a   :  { %v3209_v6 = vadd.f32 %v5196_v52, %v3208_v30  ;;  %v3218_v25 = vmax.f32 %v3214_v23, 0.0 }
0x1b6c   :  { %v3217_v5 = vmax.f32 %v3209_v6, 0.0  ;;  %v5203_v6 = vld [vmem:[%s7623_s5 + $0x1b] ss:$0 sm:$0xff] }
0x1b6e   :  { %5889 = vmatprep.mubr.msk.f32.mxu0 %vm785_vm2, %v3217_v5 }
0x1b6f   :  { %5890 = vmatmul.mubr.msk.f32.vlgmr.msra.gmra.mxu0 %vm785_vm2, %v3218_v25 }
0x1c2f   :  { %v5891_v39 = vpop.f32.mrf.mxu0 }
0x1c30   :  { %v3301_v22 = vadd.f32 %v5891_v39, %v5199_v9  ;;  %v5232_v39 = vld [vmem:[%s7623_s5 + $0x1c] ss:$0 sm:$0xff] }
0x1c31   :  { %v3295_v32 = vpop.f32.mrf.mxu0 }
0x1c32   :  { %v3305_v27 = vadd.f32 %v3301_v22, %v3129_v48  ;;  %v3296_v40 = vadd.f32 %v5199_v9, %v3295_v32 }
0x1c34   :  { %v3304_v34 = vadd.f32 %v3296_v40, %v3128_v44  ;;  %v3311_v4 = vsel %vm63_vm0, %v3305_v27, 0.0 }
0x1c35   :  { %3312 = vadd.xlane.f32.xlu1 %v3311_v4 }
0x1c36   :  { %v3308_v41 = vsel %vm63_vm0, %v3304_v34, 0.0 }
0x1c37   :  { %3309 = vadd.xlane.f32.xlu0 %v3308_v41 }
0x1cbe   :  { %v3313_v42 = vpop.xlane.xlu1 %3312 }
0x1cbf   :  { %v3315_v51 = vmul.f32 0.03125, %v3313_v42 }
0x1cc0   :  { %v3310_v36 = vpop.xlane.xlu0 %3309 }
0x1cc1   :  { %v3317_v63 = vsub.f32 %v3305_v27, %v3315_v51  ;;  %v3314_v46 = vmul.f32 0.03125, %v3310_v36 }
0x1cc3   :  { %v3316_v43 = vsub.f32 %v3304_v34, %v3314_v46  ;;  %v3319_v19 = vmul.f32 %v3317_v63, %v3317_v63 }
0x1cc5   :  { %v3323_v59 = vsel %vm63_vm0, %v3319_v19, 0.0  ;;  %v3318_v11 = vmul.f32 %v3316_v43, %v3316_v43 }
0x1cc6   :  { %3324 = vadd.xlane.f32.xlu1 %v3323_v59 }
0x1cc7   :  { %v3320_v12 = vsel %vm63_vm0, %v3318_v11, 0.0 }
0x1cc8   :  { %3321 = vadd.xlane.f32.xlu0 %v3320_v12 }
0x1d4f   :  { %v3325_v56 = vpop.xlane.xlu1 %3324 }
0x1d50   :  { %v3327_v10 = vmul.f32 0.03125, %v3325_v56 }
0x1d51   :  { %v3322_v44 = vpop.xlane.xlu0 %3321 }
0x1d52   :  { %v3329_v48 = vadd.f32 1e-05, %v3327_v10  ;;  %v3326_v13 = vmul.f32 0.03125, %v3322_v44 }
0x1d54   :  { %6208 = vrsqrt.f32 %v3329_v48  ;;  %v3328_v47 = vadd.f32 1e-05, %v3326_v13 }
0x1d56   :  { %6210 = vrsqrt.f32 %v3328_v47 }
0x1d61   :  { %v6209_v0 = vpop.eup %6208 }
0x1d62   :  { %v3333_v52 = vmul.f32 %v6209_v0, %v3317_v63 }
0x1d63   :  { %v6211_v1 = vpop.eup %6210 }
0x1d64   :  { %v3332_v23 = vmul.f32 %v6211_v1, %v3316_v43  ;;  %v3339_v30 = vmul.f32 %v5202_v61, %v3333_v52 }
0x1d66   :  { %v3338_v5 = vmul.f32 %v5202_v61, %v3332_v23  ;;  %v7264_v9 = vadd.f32 %v5203_v6, %v3339_v30 }
0x1d68   :  { %v7262_v25 = vadd.f32 %v5203_v6, %v3338_v5 }
0x1d6a   :  { %5900 = vmatprep.mubr.msk.f32.mxu1 %vm63_vm0, %v7262_v25 }
0x1d6b   :  { %5901 = vmatmul.mubr.msk.f32.vlgmr.msra.gmra.mxu1 %vm63_vm0, %v7264_v9 }
0x1e2b   :  { %v5902_v22 = vpop.f32.mrf.mxu1 }
0x1e2c   :  { %v7273_v32 = vadd.f32 %v5902_v22, %v5232_v39 }
0x1e2d   :  { %v3458_v27 = vpop.f32.mrf.mxu1 }
0x1e2e   :  { %v7275_v40 = vadd.f32 %v5232_v39, %v3458_v27  ;;  %3481 = vrot.lane.b32.xlu0 %v7273_v32, %s6305_s24  ;;  %v3468_v51 = vmul.f32 0.35355338, %v7273_v32 }
0x1e30   :  { %v3467_v34 = vmul.f32 0.35355338, %v7275_v40  ;;  %3479 = vrot.lane.b32.xlu1 %v7275_v40, %s6305_s24  ;;  %v3470_v36 = vmul.f32 %v3468_v51, %v6434_v18  ;;  %v3472_v46 = vmul.f32 %v3468_v51, %v6449_v26  ;;  %v3474_v19 = vmul.f32 %v3468_v51, %v6456_v29 }
0x1e31   :  { %v3476_v11 = vmul.f32 %v3468_v51, %v6465_v33 }
0x1e32   :  { %v3469_v4 = vmul.f32 %v3467_v34, %v6436_v20  ;;  %v3471_v63 = vmul.f32 %v3467_v34, %v6446_v24  ;;  %v3473_v43 = vmul.f32 %v3467_v34, %v6460_v31  ;;  %v3475_v59 = vmul.f32 %v3467_v34, %v6508_v14 }
0x1e34   :  { %5907 = vmatprep.mubr.msk.f32.mxu1 %vm63_vm0, %v3469_v4 }
0x1ea0   :  { %v3482_v41 = vpop.permute.xlu0 %3481 }
0x1ea1   :  { %5903 = vmatprep.subr.msk.mxu1 %vm63_vm0, %v3482_v41 }
0x1ea2   :  { %5904 = vmatpush3.xpose.msk.msra.mxu1 %vm63_vm0, %v3482_v41  ;;  %v3480_v42 = vpop.permute.xlu1 %3479 }
0x1ea3   :  { %5905 = vmatprep.subr.msk.mxu1 %vm63_vm0, %v3480_v42 }
0x1ea6   :  { %5906 = vmatpush3.xpose.msk.msra.mxu1 %vm63_vm0, %v3480_v42 }
0x1ea9   :  { %5908 = vmatmul.mubr.msk.f32.vlgmr.msra.gmra.mxu1 %vm63_vm0, %v3470_v36 }
0x1eaa   :  { %5910 = vmatprep.mubr.msk.f32.mxu1 %vm63_vm0, %v3471_v63 }
0x1ead   :  { %5911 = vmatmul.mubr.msk.f32.gmra.mxu1 %vm63_vm0, %v3472_v46 }
0x1eae   :  { %5913 = vmatprep.mubr.msk.f32.mxu1 %vm63_vm0, %v3473_v43 }
0x1eb1   :  { %5914 = vmatmul.mubr.msk.f32.gmra.mxu1 %vm63_vm0, %v3474_v19 }
0x1eb2   :  { %5916 = vmatprep.mubr.msk.f32.mxu1 %vm63_vm0, %v3475_v59 }
0x1eb5   :  { %5917 = vmatmul.mubr.msk.f32.gmra.mxu1 %vm63_vm0, %v3476_v11 }
0x1f69   :  { %v5909_v12 = vpop.f32.mrf.mxu1 }
0x1f6a   :  { %v3583_v54 = vadd.f32 %v5909_v12, %v6898_v58 }
0x1f6b   :  { %v3577_v8 = vpop.f32.mrf.mxu1 }
0x1f6c   :  { %v3578_v60 = vadd.f32 %v3577_v8, %v6896_v53  ;;  %v3619_v55 = vsel %vm326_vm1, %v3583_v54, -inf }
0x1f6d   :  { %3620 = vmax.xlane.f32.xlu0 %v3619_v55  ;;  %v5912_v56 = vpop.f32.mrf.mxu1 }
0x1f6e   :  { %v3593_v10 = vadd.f32 %v5912_v56, %v6903_v3  ;;  %v3616_v44 = vsel %vm326_vm1, %v3578_v60, -inf }
0x1f6f   :  { %v3587_v48 = vpop.f32.mrf.mxu1  ;;  %3617 = vmax.xlane.f32.xlu1 %v3616_v44 }
0x1f70   :  { %v3588_v13 = vadd.f32 %v3587_v48, %v6900_v62  ;;  %v3625_v61 = vsel %vm326_vm1, %v3593_v10, -inf }
0x1f71   :  { %v5915_v47 = vpop.f32.mrf.mxu1 }
0x1f72   :  { %v3603_v0 = vadd.f32 %v5915_v47, %v6911_v28  ;;  %v3622_v58 = vsel %vm326_vm1, %v3588_v13, -inf }
0x1f73   :  { %v3597_v53 = vpop.f32.mrf.mxu1  ;;  %3623 = vmax.xlane.f32.xlu0 %v3622_v58  ;;  %3626 = vmax.xlane.f32.xlu1 %v3625_v61 }
0x1f74   :  { %v3598_v52 = vadd.f32 %v3597_v53, %v6908_v21  ;;  %v3631_v30 = vsel %vm326_vm1, %v3603_v0, -inf }
0x1f75   :  { %v5918_v1 = vpop.f32.mrf.mxu1 }
0x1f76   :  { %v3613_v3 = vadd.f32 %v5918_v1, %v6921_v2  ;;  %v3628_v23 = vsel %vm326_vm1, %v3598_v52, -inf }
0x1f77   :  { %v3607_v62 = vpop.f32.mrf.mxu1  ;;  %3629 = vmax.xlane.f32.xlu0 %v3628_v23  ;;  %3632 = vmax.xlane.f32.xlu1 %v3631_v30 }
0x1f78   :  { %v3608_v28 = vadd.f32 %v3607_v62, %v6916_v37  ;;  %v3637_v5 = vsel %vm326_vm1, %v3613_v3, -inf }
0x1f7a   :  { %v3634_v6 = vsel %vm326_vm1, %v3608_v28, -inf }
0x1f7b   :  { %3635 = vmax.xlane.f32.xlu0 %v3634_v6  ;;  %3638 = vmax.xlane.f32.xlu1 %v3637_v5 }
0x1ff6   :  { %v3621_v39 = vpop.xlane.xlu0 %3620 }
0x1ff7   :  { %v3641_v21 = vsub.f32 %v3583_v54, %v3621_v39 }
0x1ff8   :  { %v3618_v22 = vpop.xlane.xlu1 %3617 }
0x1ff9   :  { %v3650_v27 = vmul.f32 1.442695, %v3641_v21  ;;  %v3640_v2 = vsub.f32 %v3578_v60, %v3618_v22 }
0x1ffb   :  { %6212 = vpow2.f32 %v3650_v27  ;;  %v3648_v34 = vmul.f32 1.442695, %v3640_v2 }
0x1ffc   :  { %v3624_v4 = vpop.xlane.xlu0 %3623  ;;  %v3627_v41 = vpop.xlane.xlu1 %3626 }
0x1ffd   :  { %6214 = vpow2.f32 %v3648_v34  ;;  %v3642_v42 = vsub.f32 %v3588_v13, %v3624_v4  ;;  %v3643_v51 = vsub.f32 %v3593_v10, %v3627_v41 }
0x1fff   :  { %v3652_v36 = vmul.f32 1.442695, %v3642_v42  ;;  %v3654_v37 = vmul.f32 1.442695, %v3643_v51 }
0x2000   :  { %v3630_v63 = vpop.xlane.xlu0 %3629  ;;  %v3633_v46 = vpop.xlane.xlu1 %3632 }
0x2001   :  { %6216 = vpow2.f32 %v3652_v36  ;;  %v3644_v43 = vsub.f32 %v3598_v52, %v3630_v63  ;;  %v3645_v19 = vsub.f32 %v3603_v0, %v3633_v46 }
0x2002   :  { %6218 = vpow2.f32 %v3654_v37 }
0x2003   :  { %v3656_v59 = vmul.f32 1.442695, %v3644_v43  ;;  %v3658_v11 = vmul.f32 1.442695, %v3645_v19 }
0x2004   :  { %v3636_v12 = vpop.xlane.xlu0 %3635  ;;  %v3639_v54 = vpop.xlane.xlu1 %3638 }
0x2005   :  { %6220 = vpow2.f32 %v3656_v59  ;;  %v3646_v8 = vsub.f32 %v3608_v28, %v3636_v12  ;;  %v3647_v60 = vsub.f32 %v3613_v3, %v3639_v54 }
0x2006   :  { %6222 = vpow2.f32 %v3658_v11 }
0x2007   :  { %v3660_v55 = vmul.f32 1.442695, %v3646_v8  ;;  %v3662_v56 = vmul.f32 1.442695, %v3647_v60 }
0x2008   :  { %v6213_v44 = vpop.eup %6212 }
0x2009   :  { %6224 = vpow2.f32 %v3660_v55  ;;  %v3667_v10 = vsel %vm326_vm1, %v6213_v44, 0.0  ;;  %v5211_v55 = vld [vmem:[%s7620_s3 + $0x198] sm:$0xff] }
0x200a   :  { %v6215_v48 = vpop.eup %6214  ;;  %6226 = vpow2.f32 %v3662_v56  ;;  %3668 = vadd.xlane.f32.xlu1 %v3667_v10  ;;  %5935 = vmatprep.subr.mxu1 %v5211_v55  ;;  %v5210_v56 = vld [vmem:[%s7620_s3 + $0x190] sm:$0xff]  ;;  %v5208_v10 = vld [vmem:[%s7620_s3 + $0x180] sm:$0xff] }
0x200b   :  { %v3664_v13 = vsel %vm326_vm1, %v6215_v48, 0.0  ;;  %5936 = vmatpush3.msra.mxu1 %v5211_v55 }
0x200c   :  { %3665 = vadd.xlane.f32.xlu0 %v3664_v13  ;;  %5937 = vmatprep.subr.mxu1 %v5210_v56 }
0x200d   :  { %5938 = vmatpush3.msra.mxu1 %v5210_v56 }
0x200e   :  { %v6217_v47 = vpop.eup %6216 }
0x200f   :  { %v6219_v0 = vpop.eup %6218  ;;  %v3670_v58 = vsel %vm326_vm1, %v6217_v47, 0.0 }
0x2010   :  { %3671 = vadd.xlane.f32.xlu0 %v3670_v58  ;;  %v3673_v61 = vsel %vm326_vm1, %v6219_v0, 0.0 }
0x2011   :  { %3674 = vadd.xlane.f32.xlu1 %v3673_v61 }
0x2012   :  { %v6221_v53 = vpop.eup %6220 }
0x2013   :  { %v6223_v52 = vpop.eup %6222  ;;  %v3676_v1 = vsel %vm326_vm1, %v6221_v53, 0.0 }
0x2014   :  { %3677 = vadd.xlane.f32.xlu0 %v3676_v1  ;;  %v3679_v3 = vsel %vm326_vm1, %v6223_v52, 0.0 }
0x2015   :  { %3680 = vadd.xlane.f32.xlu1 %v3679_v3 }
0x2016   :  { %v6225_v23 = vpop.eup %6224 }
0x2017   :  { %v6227_v30 = vpop.eup %6226  ;;  %v3682_v62 = vsel %vm326_vm1, %v6225_v23, 0.0 }
0x2018   :  { %3683 = vadd.xlane.f32.xlu0 %v3682_v62  ;;  %v3685_v28 = vsel %vm326_vm1, %v6227_v30, 0.0 }
0x2019   :  { %3686 = vadd.xlane.f32.xlu1 %v3685_v28 }
0x202a   :  { %3704 = vrot.lane.b32.xlu1 %v7275_v40, %s6306_s10 }
0x202e   :  { %3706 = vrot.lane.b32.xlu0 %v7273_v32, %s6306_s10 }
0x2093   :  { %v3669_v6 = vpop.xlane.xlu1 %3668 }
0x2095   :  { %v3666_v5 = vpop.xlane.xlu0 %3665 }
0x2096   :  { %6228 = vrcp.f32 %v3666_v5 }
0x2097   :  { %6230 = vrcp.f32 %v3669_v6 }
0x2099   :  { %v3672_v39 = vpop.xlane.xlu0 %3671 }
0x209a   :  { %6232 = vrcp.f32 %v3672_v39  ;;  %v3675_v21 = vpop.xlane.xlu1 %3674 }
0x209b   :  { %6234 = vrcp.f32 %v3675_v21 }
0x209d   :  { %v3678_v22 = vpop.xlane.xlu0 %3677 }
0x209e   :  { %6236 = vrcp.f32 %v3678_v22  ;;  %v3681_v27 = vpop.xlane.xlu1 %3680 }
0x209f   :  { %6238 = vrcp.f32 %v3681_v27 }
0x20a1   :  { %v3684_v2 = vpop.xlane.xlu0 %3683 }
0x20a2   :  { %6240 = vrcp.f32 %v3684_v2  ;;  %v3687_v34 = vpop.xlane.xlu1 %3686 }
0x20a3   :  { %v6229_v4 = vpop.eup %6228  ;;  %6242 = vrcp.f32 %v3687_v34 }
0x20a4   :  { %v3689_v40 = vmul.f32 %v6229_v4, %v6215_v48  ;;  %v6231_v41 = vpop.eup %6230  ;;  %v5253_v4 = vld [vmem:[%s7623_s5 + $0x1d] ss:$0 sm:$0xff] }
0x20a5   :  { %v3707_v32 = vpop.permute.xlu0 %3706  ;;  %v3691_v36 = vmul.f32 %v6231_v41, %v6213_v44  ;;  %v5209_v44 = vld [vmem:[%s7620_s3 + $0x188] sm:$0xff] }
0x20a6   :  { %5919 = vmatprep.subr.mxu0 %v3707_v32  ;;  %5923 = vmatprep.mubr.msk.f32.mxu0 %vm326_vm1, %v3689_v40  ;;  %v3705_v51 = vpop.permute.xlu1 %3704 }
0x20a7   :  { %v6233_v42 = vpop.eup %6232  ;;  %5920 = vmatpush3.msra.mxu0 %v3707_v32  ;;  %5939 = vmatprep.subr.mxu1 %v5209_v44 }
0x20a8   :  { %5921 = vmatprep.subr.mxu0 %v3705_v51  ;;  %v3693_v37 = vmul.f32 %v6233_v42, %v6217_v47  ;;  %v6235_v63 = vpop.eup %6234  ;;  %5940 = vmatpush3.msra.mxu1 %v5209_v44  ;;  %v5258_v44 = vld [vmem:[%s7623_s5 + $0x20] ss:$0 sm:$0xff] }
0x20a9   :  { %5922 = vmatpush3.msra.mxu0 %v3705_v51  ;;  %v3695_v43 = vmul.f32 %v6235_v63, %v6219_v0  ;;  %5941 = vmatprep.subr.mxu1 %v5208_v10 }
0x20aa   :  { %5924 = vmatmul.mubr.msk.f32.vlgmr.msra.gmra.mxu0 %vm326_vm1, %v3691_v36  ;;  %5942 = vmatpush3.msra.mxu1 %v5208_v10 }
0x20ab   :  { %v6237_v46 = vpop.eup %6236  ;;  %5926 = vmatprep.mubr.msk.f32.mxu0 %vm326_vm1, %v3693_v37 }
0x20ac   :  { %v3697_v19 = vmul.f32 %v6237_v46, %v6221_v53  ;;  %v6239_v59 = vpop.eup %6238  ;;  %v5214_v46 = vld [vmem:[%s7620_s3 + $0x1b0] sm:$0xff] }
0x20ad   :  { %v3699_v12 = vmul.f32 %v6239_v59, %v6223_v52 }
0x20ae   :  { %5927 = vmatmul.mubr.msk.f32.gmra.mxu0 %vm326_vm1, %v3695_v43 }
0x20af   :  { %v6241_v11 = vpop.eup %6240  ;;  %5929 = vmatprep.mubr.msk.f32.mxu0 %vm326_vm1, %v3697_v19 }
0x20b0   :  { %v3701_v54 = vmul.f32 %v6241_v11, %v6225_v23  ;;  %v6243_v8 = vpop.eup %6242 }
0x20b1   :  { %v3703_v60 = vmul.f32 %v6243_v8, %v6227_v30 }
0x20b2   :  { %5930 = vmatmul.mubr.msk.f32.gmra.mxu0 %vm326_vm1, %v3699_v12 }
0x20b3   :  { %5932 = vmatprep.mubr.msk.f32.mxu0 %vm326_vm1, %v3701_v54 }
0x20b6   :  { %5933 = vmatmul.mubr.msk.f32.gmra.mxu0 %vm326_vm1, %v3703_v60 }
0x216a   :  { %v5925_v48 = vpop.f32.mrf.mxu0 }
0x216b   :  { %v3840_v23 = vmul.f32 %v5925_v48, %v6434_v18 }
0x216c   :  { %v3800_v13 = vpop.f32.mrf.mxu0 }
0x216d   :  { %v3839_v1 = vmul.f32 %v3800_v13, %v6436_v20 }
0x216e   :  { %v5928_v47 = vpop.f32.mrf.mxu0 }
0x216f   :  { %v3842_v53 = vmul.f32 %v5928_v47, %v6449_v26 }
0x2170   :  { %v3810_v0 = vpop.f32.mrf.mxu0 }
0x2171   :  { %v3841_v61 = vmul.f32 %v3810_v0, %v6446_v24  ;;  %v3848_v6 = vadd.f32 %v3842_v53, %v3840_v23  ;;  %v5256_v23 = vld [vmem:[%s7623_s5 + $0x1e] ss:$0 sm:$0xff] }
0x2172   :  { %v5931_v58 = vpop.f32.mrf.mxu0 }
0x2173   :  { %v3844_v30 = vmul.f32 %v5931_v58, %v6456_v29  ;;  %v3847_v28 = vadd.f32 %v3841_v61, %v3839_v1 }
0x2174   :  { %v3820_v52 = vpop.f32.mrf.mxu0 }
0x2175   :  { %v3843_v3 = vmul.f32 %v3820_v52, %v6460_v31  ;;  %v3850_v27 = vadd.f32 %v3848_v6, %v3844_v30 }
0x2176   :  { %v5934_v62 = vpop.f32.mrf.mxu0 }
0x2177   :  { %v3846_v5 = vmul.f32 %v5934_v62, %v6465_v33  ;;  %v3849_v21 = vadd.f32 %v3847_v28, %v3843_v3 }
0x2178   :  { %v3830_v39 = vpop.f32.mrf.mxu0 }
0x2179   :  { %v3845_v22 = vmul.f32 %v3830_v39, %v6508_v14  ;;  %v3852_v34 = vadd.f32 %v3850_v27, %v3846_v5  ;;  %v5257_v5 = vld [vmem:[%s7623_s5 + $0x1f] ss:$0 sm:$0xff] }
0x217b   :  { %v3851_v2 = vadd.f32 %v3849_v21, %v3845_v22 }
0x217d   :  { %5943 = vmatprep.mubr.msk.f32.mxu1 %vm63_vm0, %v3851_v2 }
0x217e   :  { %5944 = vmatmul.mubr.msk.f32.vlgmr.msra.gmra.mxu1 %vm63_vm0, %v3852_v34 }
0x217f   :  { %5965 = vmatprep.mubr.msk.f32.mxu1 %vm63_vm0, %v7035_v7  ;;  %v5215_v7 = vld [vmem:[%s7620_s3 + $0x1b8] sm:$0xff] }
0x2180   :  { %5946 = vmatprep.subr.mxu0 %v5215_v7 }
0x2181   :  { %5947 = vmatpush3.msra.mxu0 %v5215_v7 }
0x2182   :  { %5948 = vmatprep.subr.mxu0 %v5214_v46 }
0x2183   :  { %5949 = vmatpush3.msra.mxu0 %v5214_v46 }
0x223e   :  { %v5945_v40 = vpop.f32.mrf.mxu1 }
0x223f   :  { %v3935_v41 = vadd.f32 %v5945_v40, %v5253_v4 }
0x2240   :  { %v3929_v32 = vpop.f32.mrf.mxu1 }
0x2241   :  { %v3939_v42 = vadd.f32 %v3935_v41, %v7264_v9  ;;  %v3930_v51 = vadd.f32 %v5253_v4, %v3929_v32  ;;  %v5212_v9 = vld [vmem:[%s7620_s3 + $0x1a0] sm:$0xff] }
0x2243   :  { %v3938_v36 = vadd.f32 %v3930_v51, %v7262_v25  ;;  %v3945_v37 = vsel %vm63_vm0, %v3939_v42, 0.0  ;;  %v5213_v25 = vld [vmem:[%s7620_s3 + $0x1a8] sm:$0xff] }
0x2244   :  { %3946 = vadd.xlane.f32.xlu0 %v3945_v37  ;;  %5950 = vmatprep.subr.mxu0 %v5213_v25 }
0x2245   :  { %v3942_v63 = vsel %vm63_vm0, %v3938_v36, 0.0  ;;  %5951 = vmatpush3.msra.mxu0 %v5213_v25 }
0x2246   :  { %3943 = vadd.xlane.f32.xlu1 %v3942_v63  ;;  %5952 = vmatprep.subr.mxu0 %v5212_v9 }
0x2247   :  { %5953 = vmatpush3.msra.mxu0 %v5212_v9 }
0x22cd   :  { %v3947_v43 = vpop.xlane.xlu0 %3946 }
0x22ce   :  { %v3949_v19 = vmul.f32 0.03125, %v3947_v43 }
0x22cf   :  { %v3944_v59 = vpop.xlane.xlu1 %3943 }
0x22d0   :  { %v3951_v11 = vsub.f32 %v3939_v42, %v3949_v19  ;;  %v3948_v12 = vmul.f32 0.03125, %v3944_v59 }
0x22d2   :  { %v3950_v54 = vsub.f32 %v3938_v36, %v3948_v12  ;;  %v3953_v8 = vmul.f32 %v3951_v11, %v3951_v11 }
0x22d4   :  { %v3957_v60 = vsel %vm63_vm0, %v3953_v8, 0.0  ;;  %v3952_v55 = vmul.f32 %v3950_v54, %v3950_v54 }
0x22d5   :  { %3958 = vadd.xlane.f32.xlu1 %v3957_v60 }
0x22d6   :  { %v3954_v56 = vsel %vm63_vm0, %v3952_v55, 0.0 }
0x22d7   :  { %3955 = vadd.xlane.f32.xlu0 %v3954_v56 }
0x22e6   :  { %4075 = vrot.lane.b32.xlu1 %v5214_v46, %s6305_s24 }
0x22ea   :  { %4073 = vrot.lane.b32.xlu1 %v5213_v25, %s6305_s24 }
0x22ed   :  { %4077 = vrot.lane.b32.xlu0 %v5215_v7, %s6305_s24 }
0x22ee   :  { %4084 = vrot.lane.b32.xlu1 %v5258_v44, %s6305_s24 }
0x22f1   :  { %4071 = vrot.lane.b32.xlu0 %v5212_v9, %s6305_s24 }
0x235e   :  { %v3959_v10 = vpop.xlane.xlu1 %3958 }
0x235f   :  { %v3961_v48 = vmul.f32 0.03125, %v3959_v10 }
0x2360   :  { %v3956_v13 = vpop.xlane.xlu0 %3955 }
0x2361   :  { %v3963_v47 = vadd.f32 1e-05, %v3961_v48  ;;  %v3960_v0 = vmul.f32 0.03125, %v3956_v13 }
0x2362   :  { %v4076_v58 = vpop.permute.xlu1 %4075 }
0x2363   :  { %6244 = vrsqrt.f32 %v3963_v47  ;;  %v3962_v61 = vadd.f32 1e-05, %v3960_v0 }
0x2364   :  { %v4078_v53 = vpop.permute.xlu0 %4077 }
0x2365   :  { %6246 = vrsqrt.f32 %v3962_v61  ;;  %5957 = vmatprep.subr.mxu1 %v4078_v53 }
0x2366   :  { %5958 = vmatpush3.msra.mxu1 %v4078_v53  ;;  %v4074_v52 = vpop.permute.xlu1 %4073 }
0x2367   :  { %5959 = vmatprep.subr.mxu1 %v4076_v58 }
0x2368   :  { %5960 = vmatpush3.msra.mxu1 %v4076_v58  ;;  %v4072_v1 = vpop.permute.xlu0 %4071 }
0x2369   :  { %5961 = vmatprep.subr.mxu1 %v4074_v52 }
0x236a   :  { %5962 = vmatpush3.msra.mxu1 %v4074_v52 }
0x236b   :  { %5963 = vmatprep.subr.mxu1 %v4072_v1 }
0x236c   :  { %5964 = vmatpush3.msra.mxu1 %v4072_v1 }
0x236d   :  { %5966 = vmatmul.mubr.msk.f32.vlgmr.msra.gmra.mxu1 %vm63_vm0, %v7032_v38  ;;  %v4085_v38 = vpop.permute.xlu1 %4084 }
0x2370   :  { %v6245_v3 = vpop.eup %6244 }
0x2371   :  { %v3967_v30 = vmul.f32 %v6245_v3, %v3951_v11 }
0x2372   :  { %v6247_v62 = vpop.eup %6246 }
0x2373   :  { %v3966_v28 = vmul.f32 %v6247_v62, %v3950_v54  ;;  %v3973_v6 = vmul.f32 %v5256_v23, %v3967_v30 }
0x2375   :  { %v3972_v39 = vmul.f32 %v5256_v23, %v3966_v28  ;;  %v7402_v22 = vadd.f32 %v5257_v5, %v3973_v6 }
0x2377   :  { %v7400_v21 = vadd.f32 %v5257_v5, %v3972_v39 }
0x2379   :  { %5954 = vmatprep.mubr.msk.f32.mxu0 %vm63_vm0, %v7400_v21 }
0x237a   :  { %5955 = vmatmul.mubr.msk.f32.vlgmr.msra.gmra.mxu0 %vm63_vm0, %v7402_v22 }
0x242d   :  { %v5967_v27 = vpop.f32.mrf.mxu1 }
0x242e   :  { %v7408_v2 = vadd.f32 %v5967_v27, %v4085_v38 }
0x242f   :  { %v4153_v34 = vpop.f32.mrf.mxu1 }
0x2430   :  { %v7410_v4 = vadd.f32 %v4153_v34, %v4085_v38  ;;  %5968 = vmatprep.subr.msk.mxu0 %vm63_vm0, %v7408_v2 }
0x2431   :  { %5969 = vmatpush3.xpose.msk.msra.mxu0 %vm63_vm0, %v7408_v2 }
0x2432   :  { %5970 = vmatprep.subr.msk.mxu0 %vm63_vm0, %v7410_v4 }
0x2435   :  { %5971 = vmatpush3.xpose.msk.msra.mxu0 %vm63_vm0, %v7410_v4 }
0x243a   :  { %v5956_v40 = vpop.f32.mrf.mxu0 }
0x243b   :  { %v4064_v41 = vadd.f32 %v5956_v40, %v5258_v44 }
0x243c   :  { %v4058_v32 = vpop.f32.mrf.mxu0 }
0x243d   :  { %v4059_v42 = vadd.f32 %v5258_v44, %v4058_v32  ;;  %v4163_v51 = vmul.f32 0.35355338, %v4064_v41 }
0x243f   :  { %v4162_v36 = vmul.f32 0.35355338, %v4059_v42  ;;  %v4165_v63 = vmul.f32 %v4163_v51, %v6434_v18  ;;  %v4167_v46 = vmul.f32 %v4163_v51, %v6449_v26  ;;  %v4169_v9 = vmul.f32 %v4163_v51, %v6456_v29 }
0x2440   :  { %v4171_v19 = vmul.f32 %v4163_v51, %v6465_v33 }
0x2441   :  { %v4164_v37 = vmul.f32 %v4162_v36, %v6436_v20  ;;  %v4166_v7 = vmul.f32 %v4162_v36, %v6446_v24  ;;  %v4168_v25 = vmul.f32 %v4162_v36, %v6460_v31  ;;  %v4170_v43 = vmul.f32 %v4162_v36, %v6508_v14 }
0x2443   :  { %5972 = vmatprep.mubr.msk.f32.mxu0 %vm63_vm0, %v4164_v37 }
0x2444   :  { %5973 = vmatmul.mubr.msk.f32.vlgmr.msra.gmra.mxu0 %vm63_vm0, %v4165_v63 }
0x2445   :  { %5975 = vmatprep.mubr.msk.f32.mxu0 %vm63_vm0, %v4166_v7 }
0x2448   :  { %5976 = vmatmul.mubr.msk.f32.gmra.mxu0 %vm63_vm0, %v4167_v46 }
0x2449   :  { %5978 = vmatprep.mubr.msk.f32.mxu0 %vm63_vm0, %v4168_v25 }
0x244c   :  { %5979 = vmatmul.mubr.msk.f32.gmra.mxu0 %vm63_vm0, %v4169_v9 }
0x244d   :  { %5981 = vmatprep.mubr.msk.f32.mxu0 %vm63_vm0, %v4170_v43 }
0x2450   :  { %5982 = vmatmul.mubr.msk.f32.gmra.mxu0 %vm63_vm0, %v4171_v19 }
0x2504   :  { %v5974_v59 = vpop.f32.mrf.mxu0 }
0x2505   :  { %v4274_v11 = vadd.f32 %v5974_v59, %v7105_v45 }
0x2506   :  { %v4268_v12 = vpop.f32.mrf.mxu0 }
0x2507   :  { %v4269_v54 = vadd.f32 %v4268_v12, %v7107_v35  ;;  %v4310_v8 = vsel %vm326_vm1, %v4274_v11, -inf }
0x2508   :  { %4311 = vmax.xlane.f32.xlu1 %v4310_v8  ;;  %v5977_v60 = vpop.f32.mrf.mxu0 }
0x2509   :  { %v4307_v55 = vsel %vm326_vm1, %v4269_v54, -inf  ;;  %v4284_v48 = vadd.f32 %v5977_v60, %v7109_v50 }
0x250a   :  { %v4278_v56 = vpop.f32.mrf.mxu0  ;;  %4308 = vmax.xlane.f32.xlu0 %v4307_v55 }
0x250b   :  { %v4279_v44 = vadd.f32 %v4278_v56, %v7111_v17  ;;  %v4316_v61 = vsel %vm326_vm1, %v4284_v48, -inf }
0x250c   :  { %v5980_v10 = vpop.f32.mrf.mxu0 }
0x250d   :  { %v4313_v13 = vsel %vm326_vm1, %v4279_v44, -inf  ;;  %v4294_v0 = vadd.f32 %v5980_v10, %v7116_v16 }
0x250e   :  { %v4288_v47 = vpop.f32.mrf.mxu0  ;;  %4314 = vmax.xlane.f32.xlu0 %v4313_v13 }
0x250f   :  { %v4289_v45 = vadd.f32 %v4288_v47, %v7120_v49  ;;  %v4322_v1 = vsel %vm326_vm1, %v4294_v0, -inf }
0x2510   :  { %v5983_v35 = vpop.f32.mrf.mxu0 }
0x2511   :  { %v4319_v58 = vsel %vm326_vm1, %v4289_v45, -inf  ;;  %v4304_v50 = vadd.f32 %v5983_v35, %v7126_v57 }
0x2512   :  { %v4298_v53 = vpop.f32.mrf.mxu0  ;;  %4320 = vmax.xlane.f32.xlu1 %v4319_v58  ;;  %4317 = vmax.xlane.f32.xlu0 %v4316_v61 }
0x2513   :  { %v4299_v17 = vadd.f32 %v4298_v53, %v7129_v15  ;;  %v4328_v49 = vsel %vm326_vm1, %v4304_v50, -inf }
0x2515   :  { %v4325_v52 = vsel %vm326_vm1, %v4299_v17, -inf }
0x2516   :  { %4326 = vmax.xlane.f32.xlu1 %v4325_v52  ;;  %4323 = vmax.xlane.f32.xlu0 %v4322_v1 }
0x251a   :  { %4329 = vmax.xlane.f32.xlu0 %v4328_v49 }
0x2591   :  { %v4312_v16 = vpop.xlane.xlu1 %4311 }
0x2592   :  { %v4332_v3 = vsub.f32 %v4274_v11, %v4312_v16 }
0x2593   :  { %v4309_v23 = vpop.xlane.xlu0 %4308 }
0x2594   :  { %v4341_v30 = vmul.f32 1.442695, %v4332_v3  ;;  %v4331_v62 = vsub.f32 %v4269_v54, %v4309_v23 }
0x2596   :  { %6248 = vpow2.f32 %v4341_v30  ;;  %v4339_v28 = vmul.f32 1.442695, %v4331_v62 }
0x2597   :  { %v4315_v6 = vpop.xlane.xlu0 %4314 }
0x2598   :  { %6250 = vpow2.f32 %v4339_v28  ;;  %v4333_v15 = vsub.f32 %v4279_v44, %v4315_v6 }
0x259a   :  { %v4343_v57 = vmul.f32 1.442695, %v4333_v15 }
0x259b   :  { %v4321_v5 = vpop.xlane.xlu1 %4320  ;;  %v4318_v39 = vpop.xlane.xlu0 %4317 }
0x259c   :  { %6252 = vpow2.f32 %v4343_v57  ;;  %v4335_v38 = vsub.f32 %v4289_v45, %v4321_v5  ;;  %v4334_v27 = vsub.f32 %v4284_v48, %v4318_v39 }
0x259e   :  { %v4347_v34 = vmul.f32 1.442695, %v4335_v38  ;;  %v4345_v40 = vmul.f32 1.442695, %v4334_v27  ;;  %v5219_v27 = vld [vmem:[%s7620_s3 + $0x1d8] sm:$0xff] }
0x259f   :  { %v4327_v41 = vpop.xlane.xlu1 %4326  ;;  %v4324_v32 = vpop.xlane.xlu0 %4323  ;;  %6000 = vmatprep.subr.mxu0 %v5219_v27 }
0x25a0   :  { %6254 = vpow2.f32 %v4347_v34  ;;  %v4337_v42 = vsub.f32 %v4299_v17, %v4327_v41  ;;  %v4336_v51 = vsub.f32 %v4294_v0, %v4324_v32  ;;  %6001 = vmatpush3.msra.mxu0 %v5219_v27  ;;  %v5218_v34 = vld [vmem:[%s7620_s3 + $0x1d0] sm:$0xff]  ;;  %v5216_v41 = vld [vmem:[%s7620_s3 + $0x1c0] sm:$0xff] }
0x25a1   :  { %6256 = vpow2.f32 %v4345_v40  ;;  %6002 = vmatprep.subr.mxu0 %v5218_v34  ;;  %v5217_v40 = vld [vmem:[%s7620_s3 + $0x1c8] sm:$0xff] }
0x25a2   :  { %v4351_v36 = vmul.f32 1.442695, %v4337_v42  ;;  %v4349_v37 = vmul.f32 1.442695, %v4336_v51  ;;  %6003 = vmatpush3.msra.mxu0 %v5218_v34  ;;  %v5285_v34 = vld [vmem:[%s7623_s5 + $0x23] ss:$0 sm:$0xff] }
0x25a3   :  { %v6249_v63 = vpop.eup %6248  ;;  %v4330_v7 = vpop.xlane.xlu0 %4329  ;;  %6004 = vmatprep.subr.mxu0 %v5217_v40 }
0x25a4   :  { %6258 = vpow2.f32 %v4351_v36  ;;  %v4338_v46 = vsub.f32 %v4304_v50, %v4330_v7  ;;  %v4358_v25 = vsel %vm326_vm1, %v6249_v63, 0.0  ;;  %6005 = vmatpush3.msra.mxu0 %v5217_v40 }
0x25a5   :  { %v6251_v9 = vpop.eup %6250  ;;  %6260 = vpow2.f32 %v4349_v37  ;;  %4359 = vadd.xlane.f32.xlu0 %v4358_v25  ;;  %6006 = vmatprep.subr.mxu0 %v5216_v41 }
0x25a6   :  { %v4353_v43 = vmul.f32 1.442695, %v4338_v46  ;;  %v4355_v19 = vsel %vm326_vm1, %v6251_v9, 0.0  ;;  %6007 = vmatpush3.msra.mxu0 %v5216_v41 }
0x25a7   :  { %4356 = vadd.xlane.f32.xlu1 %v4355_v19 }
0x25a8   :  { %6262 = vpow2.f32 %v4353_v43 }
0x25a9   :  { %v6253_v59 = vpop.eup %6252 }
0x25aa   :  { %v4361_v11 = vsel %vm326_vm1, %v6253_v59, 0.0 }
0x25ab   :  { %4362 = vadd.xlane.f32.xlu1 %v4361_v11 }
0x25ad   :  { %v6255_v12 = vpop.eup %6254 }
0x25ae   :  { %v6257_v54 = vpop.eup %6256  ;;  %v4367_v8 = vsel %vm326_vm1, %v6255_v12, 0.0 }
0x25af   :  { %4368 = vadd.xlane.f32.xlu1 %v4367_v8  ;;  %v4364_v60 = vsel %vm326_vm1, %v6257_v54, 0.0 }
0x25b0   :  { %4365 = vadd.xlane.f32.xlu0 %v4364_v60 }
0x25b1   :  { %v6259_v55 = vpop.eup %6258 }
0x25b2   :  { %v6261_v56 = vpop.eup %6260  ;;  %v4373_v44 = vsel %vm326_vm1, %v6259_v55, 0.0 }
0x25b3   :  { %4374 = vadd.xlane.f32.xlu1 %v4373_v44  ;;  %v4370_v10 = vsel %vm326_vm1, %v6261_v56, 0.0 }
0x25b4   :  { %4371 = vadd.xlane.f32.xlu0 %v4370_v10 }
0x25b5   :  { %v6263_v48 = vpop.eup %6262 }
0x25b6   :  { %v4376_v13 = vsel %vm326_vm1, %v6263_v48, 0.0 }
0x25b8   :  { %4377 = vadd.xlane.f32.xlu0 %v4376_v13 }
0x25c4   :  { %4397 = vrot.lane.b32.xlu1 %v7408_v2, %s6305_s24 }
0x25ce   :  { %4395 = vrot.lane.b32.xlu0 %v7410_v4, %s6305_s24 }
0x262e   :  { %v4360_v47 = vpop.xlane.xlu0 %4359 }
0x262f   :  { %6264 = vrcp.f32 %v4360_v47 }
0x2630   :  { %v4357_v45 = vpop.xlane.xlu1 %4356 }
0x2631   :  { %6266 = vrcp.f32 %v4357_v45 }
0x2634   :  { %v4363_v35 = vpop.xlane.xlu1 %4362 }
0x2635   :  { %6268 = vrcp.f32 %v4363_v35 }
0x2638   :  { %v4369_v0 = vpop.xlane.xlu1 %4368 }
0x2639   :  { %6270 = vrcp.f32 %v4369_v0  ;;  %v4366_v58 = vpop.xlane.xlu0 %4365 }
0x263a   :  { %6272 = vrcp.f32 %v4366_v58 }
0x263c   :  { %v6265_v61 = vpop.eup %6264  ;;  %v4375_v53 = vpop.xlane.xlu1 %4374 }
0x263d   :  { %6274 = vrcp.f32 %v4375_v53  ;;  %v4372_v17 = vpop.xlane.xlu0 %4371  ;;  %v4382_v50 = vmul.f32 %v6265_v61, %v6249_v63 }
0x263e   :  { %v6267_v52 = vpop.eup %6266  ;;  %6276 = vrcp.f32 %v4372_v17 }
0x263f   :  { %v4380_v2 = vmul.f32 %v6267_v52, %v6251_v9  ;;  %4630 = vst.msk [vmem:[%s7626_s7 + $0x8] sm:$0xff] %vm326_vm1, %v4382_v50  ;;  %v5221_v52 = vld [vmem:[%s7620_s3 + $0x1e8] sm:$0xff] }
0x2640   :  { %v4398_v4 = vpop.permute.xlu1 %4397 }
0x2641   :  { %v4378_v1 = vpop.xlane.xlu0 %4377  ;;  %5984 = vmatprep.subr.mxu1 %v4398_v4  ;;  %5988 = vmatprep.mubr.msk.f32.mxu1 %vm326_vm1, %v4380_v2  ;;  %4629 = vst.msk [vmem:[%s7626_s7] sm:$0xff] %vm326_vm1, %v4380_v2  ;;  %v5220_v2 = vld [vmem:[%s7620_s3 + $0x1e0] sm:$0xff] }
0x2642   :  { %v6269_v49 = vpop.eup %6268  ;;  %6278 = vrcp.f32 %v4378_v1  ;;  %5985 = vmatpush3.msra.mxu1 %v4398_v4  ;;  %v5231_v4 = vld [vmem:[%s7624_s4 + $0xf8] sm:$0xff]  ;;  %v5230_v1 = vld [vmem:[%s7624_s4 + $0xf0] sm:$0xff] }
0x2643   :  { %v4384_v16 = vmul.f32 %v6269_v49, %v6253_v59  ;;  %6022 = vmatprep.subr.mxu0 %v5231_v4  ;;  %v5229_v49 = vld [vmem:[%s7624_s4 + $0xe8] sm:$0xff] }
0x2645   :  { %v4396_v3 = vpop.permute.xlu0 %4395  ;;  %4631 = vst.msk [vmem:[%s7626_s7 + $0x10] sm:$0xff] %vm326_vm1, %v4384_v16 }
0x2646   :  { %v6271_v23 = vpop.eup %6270  ;;  %5986 = vmatprep.subr.mxu1 %v4396_v3 }
0x2647   :  { %v6273_v30 = vpop.eup %6272  ;;  %5987 = vmatpush3.msra.mxu1 %v4396_v3  ;;  %v4388_v62 = vmul.f32 %v6271_v23, %v6255_v12 }
0x2648   :  { %5989 = vmatmul.mubr.msk.f32.vlgmr.msra.gmra.mxu1 %vm326_vm1, %v4382_v50  ;;  %v4386_v28 = vmul.f32 %v6273_v30, %v6257_v54  ;;  %v5222_v50 = vld [vmem:[%s7620_s3 + $0x1f0] sm:$0xff] }
0x2649   :  { %5991 = vmatprep.mubr.msk.f32.mxu1 %vm326_vm1, %v4384_v16  ;;  %4633 = vst.msk [vmem:[%s7626_s7 + $0x20] sm:$0xff] %vm326_vm1, %v4388_v62  ;;  %v5228_v16 = vld [vmem:[%s7624_s4 + $0xe0] sm:$0xff] }
0x264a   :  { %v6275_v6 = vpop.eup %6274  ;;  %4632 = vst.msk [vmem:[%s7626_s7 + $0x18] sm:$0xff] %vm326_vm1, %v4386_v28 }
0x264b   :  { %v6277_v15 = vpop.eup %6276  ;;  %v4392_v57 = vmul.f32 %v6275_v6, %v6259_v55 }
0x264c   :  { %5992 = vmatmul.mubr.msk.f32.gmra.mxu1 %vm326_vm1, %v4386_v28  ;;  %v4390_v5 = vmul.f32 %v6277_v15, %v6261_v56 }
0x264d   :  { %5994 = vmatprep.mubr.msk.f32.mxu1 %vm326_vm1, %v4388_v62  ;;  %4635 = vst.msk [vmem:[%s7626_s7 + $0x30] sm:$0xff] %vm326_vm1, %v4392_v57 }
0x264e   :  { %4634 = vst.msk [vmem:[%s7626_s7 + $0x28] sm:$0xff] %vm326_vm1, %v4390_v5 }
0x264f   :  { %v6279_v39 = vpop.eup %6278 }
0x2650   :  { %5995 = vmatmul.mubr.msk.f32.gmra.mxu1 %vm326_vm1, %v4390_v5  ;;  %v4394_v38 = vmul.f32 %v6279_v39, %v6263_v48 }
0x2651   :  { %5997 = vmatprep.mubr.msk.f32.mxu1 %vm326_vm1, %v4392_v57  ;;  %v5284_v57 = vld [vmem:[%s7623_s5 + $0x22] ss:$0 sm:$0xff] }
0x2652   :  { %4636 = vst.msk [vmem:[%s7626_s7 + $0x38] sm:$0xff] %vm326_vm1, %v4394_v38 }
0x2654   :  { %5998 = vmatmul.mubr.msk.f32.gmra.mxu1 %vm326_vm1, %v4394_v38 }
0x2708   :  { %v5990_v32 = vpop.f32.mrf.mxu1 }
0x2709   :  { %v4531_v43 = vmul.f32 %v5990_v32, %v6434_v18  ;;  %v5281_v18 = vld [vmem:[%s7623_s5 + $0x21] ss:$0 sm:$0xff] }
0x270a   :  { %v4491_v42 = vpop.f32.mrf.mxu1 }
0x270b   :  { %v4530_v25 = vmul.f32 %v4491_v42, %v6436_v20  ;;  %v5227_v42 = vld [vmem:[%s7624_s4 + $0xd8] sm:$0xff] }
0x270c   :  { %v5993_v51 = vpop.f32.mrf.mxu1 }
0x270d   :  { %v4533_v7 = vmul.f32 %v5993_v51, %v6449_v26  ;;  %v5226_v51 = vld [vmem:[%s7624_s4 + $0xd0] sm:$0xff] }
0x270e   :  { %v4501_v36 = vpop.f32.mrf.mxu1 }
0x270f   :  { %v4532_v63 = vmul.f32 %v4501_v36, %v6446_v24  ;;  %v4539_v12 = vadd.f32 %v4533_v7, %v4531_v43  ;;  %v5225_v36 = vld [vmem:[%s7624_s4 + $0xc8] sm:$0xff] }
0x2710   :  { %v5996_v37 = vpop.f32.mrf.mxu1 }
0x2711   :  { %v4535_v19 = vmul.f32 %v5996_v37, %v6456_v29  ;;  %v4538_v11 = vadd.f32 %v4532_v63, %v4530_v25  ;;  %v5224_v37 = vld [vmem:[%s7624_s4 + $0xc0] sm:$0xff] }
0x2712   :  { %v4511_v46 = vpop.f32.mrf.mxu1  ;;  %v5286_v63 = vld [vmem:[%s7623_s5 + $0x24] ss:$0 sm:$0xff] }
0x2713   :  { %v4534_v9 = vmul.f32 %v4511_v46, %v6460_v31  ;;  %v4541_v55 = vadd.f32 %v4539_v12, %v4535_v19 }
0x2714   :  { %v5999_v59 = vpop.f32.mrf.mxu1 }
0x2715   :  { %v4537_v54 = vmul.f32 %v5999_v59, %v6465_v33  ;;  %v4540_v60 = vadd.f32 %v4538_v11, %v4534_v9  ;;  %v5289_v59 = vld [vmem:[%s7623_s5 + $0x25] ss:$0 sm:$0xff] }
0x2716   :  { %v4521_v8 = vpop.f32.mrf.mxu1 }
0x2717   :  { %v4536_v24 = vmul.f32 %v4521_v8, %v6508_v14  ;;  %v4543_v56 = vadd.f32 %v4541_v55, %v4537_v54 }
0x2719   :  { %v4542_v26 = vadd.f32 %v4540_v60, %v4536_v24 }
0x271b   :  { %6008 = vmatprep.mubr.msk.f32.mxu0 %vm63_vm0, %v4542_v26 }
0x271c   :  { %6009 = vmatmul.mubr.msk.f32.vlgmr.msra.gmra.mxu0 %vm63_vm0, %v4543_v56 }
0x271d   :  { %6023 = vmatpush3.msra.mxu0 %v5231_v4 }
0x271e   :  { %6024 = vmatprep.subr.mxu0 %v5230_v1 }
0x271f   :  { %6025 = vmatpush3.msra.mxu0 %v5230_v1 }
0x2720   :  { %6026 = vmatprep.subr.mxu0 %v5229_v49 }
0x2721   :  { %6027 = vmatpush3.msra.mxu0 %v5229_v49  ;;  %v5293_v49 = vld [vmem:[%s7623_s5 + $0x27] ss:$0 sm:$0xff] }
0x2722   :  { %6028 = vmatprep.subr.mxu0 %v5228_v16 }
0x2723   :  { %6029 = vmatpush3.msra.mxu0 %v5228_v16 }
0x2724   :  { %6030 = vmatprep.subr.mxu0 %v5227_v42 }
0x2725   :  { %6031 = vmatpush3.msra.mxu0 %v5227_v42 }
0x2726   :  { %6032 = vmatprep.subr.mxu0 %v5226_v51 }
0x2727   :  { %6033 = vmatpush3.msra.mxu0 %v5226_v51 }
0x2728   :  { %6034 = vmatprep.subr.mxu0 %v5225_v36 }
0x2729   :  { %6035 = vmatpush3.msra.mxu0 %v5225_v36 }
0x272a   :  { %6036 = vmatprep.subr.mxu0 %v5224_v37 }
0x272b   :  { %6037 = vmatpush3.msra.mxu0 %v5224_v37 }
0x27dc   :  { %v6010_v20 = vpop.f32.mrf.mxu0 }
0x27dd   :  { %v4626_v29 = vadd.f32 %v6010_v20, %v5281_v18 }
0x27de   :  { %v4620_v31 = vpop.f32.mrf.mxu0 }
0x27df   :  { %v4638_v33 = vadd.f32 %v4626_v29, %v7402_v22  ;;  %v4621_v44 = vadd.f32 %v5281_v18, %v4620_v31 }
0x27e1   :  { %v4637_v10 = vadd.f32 %v4621_v44, %v7400_v21  ;;  %v4644_v14 = vsel %vm63_vm0, %v4638_v33, 0.0  ;;  %v5223_v21 = vld [vmem:[%s7620_s3 + $0x1f8] sm:$0xff] }
0x27e2   :  { %4645 = vadd.xlane.f32.xlu0 %v4644_v14  ;;  %6011 = vmatprep.subr.mxu1 %v5223_v21 }
0x27e3   :  { %v4641_v48 = vsel %vm63_vm0, %v4637_v10, 0.0  ;;  %6012 = vmatpush3.msra.mxu1 %v5223_v21 }
0x27e4   :  { %4642 = vadd.xlane.f32.xlu1 %v4641_v48  ;;  %6013 = vmatprep.subr.mxu1 %v5222_v50 }
0x27e5   :  { %6014 = vmatpush3.msra.mxu1 %v5222_v50  ;;  %v5292_v50 = vld [vmem:[%s7623_s5 + $0x26] ss:$0 sm:$0xff] }
0x27e6   :  { %6015 = vmatprep.subr.mxu1 %v5221_v52 }
0x27e7   :  { %6016 = vmatpush3.msra.mxu1 %v5221_v52 }
0x27e8   :  { %6017 = vmatprep.subr.mxu1 %v5220_v2 }
0x27e9   :  { %6018 = vmatpush3.msra.mxu1 %v5220_v2 }
0x286b   :  { %v4646_v13 = vpop.xlane.xlu0 %4645 }
0x286c   :  { %v4648_v47 = vmul.f32 0.03125, %v4646_v13  ;;  %v5297_v13 = vld [vmem:[%s7620_s3 + $0x218] sm:$0xff] }
0x286d   :  { %v4643_v45 = vpop.xlane.xlu1 %4642  ;;  %6041 = vmatprep.subr.mxu1 %v5297_v13 }
0x286e   :  { %v4650_v35 = vsub.f32 %v4638_v33, %v4648_v47  ;;  %v4647_v0 = vmul.f32 0.03125, %v4643_v45  ;;  %v5296_v47 = vld [vmem:[%s7620_s3 + $0x210] sm:$0xff]  ;;  %v5295_v45 = vld [vmem:[%s7620_s3 + $0x208] sm:$0xff] }
0x2870   :  { %v4649_v58 = vsub.f32 %v4637_v10, %v4647_v0  ;;  %v4652_v61 = vmul.f32 %v4650_v35, %v4650_v35 }
0x2872   :  { %v4656_v53 = vsel %vm63_vm0, %v4652_v61, 0.0  ;;  %v4651_v17 = vmul.f32 %v4649_v58, %v4649_v58 }
0x2873   :  { %4657 = vadd.xlane.f32.xlu0 %v4656_v53 }
0x2874   :  { %v4653_v22 = vsel %vm63_vm0, %v4651_v17, 0.0 }
0x2875   :  { %4654 = vadd.xlane.f32.xlu1 %v4653_v22 }
0x28fc   :  { %v4658_v3 = vpop.xlane.xlu0 %4657 }
0x28fd   :  { %v4660_v23 = vmul.f32 0.03125, %v4658_v3 }
0x28fe   :  { %v4655_v30 = vpop.xlane.xlu1 %4654 }
0x28ff   :  { %v4662_v62 = vadd.f32 1e-05, %v4660_v23  ;;  %v4659_v28 = vmul.f32 0.03125, %v4655_v30  ;;  %v5298_v30 = vld [vmem:[%s7623_s5 + $0x28] ss:$0 sm:$0xff] }
0x2901   :  { %6280 = vrsqrt.f32 %v4662_v62  ;;  %v4661_v6 = vadd.f32 1e-05, %v4659_v28 }
0x2903   :  { %6282 = vrsqrt.f32 %v4661_v6 }
0x290e   :  { %v6281_v15 = vpop.eup %6280 }
0x290f   :  { %v4666_v5 = vmul.f32 %v6281_v15, %v4650_v35  ;;  %v5294_v35 = vld [vmem:[%s7620_s3 + $0x200] sm:$0xff] }
0x2910   :  { %v6283_v39 = vpop.eup %6282 }
0x2911   :  { %v4665_v38 = vmul.f32 %v6283_v39, %v4649_v58  ;;  %v4672_v27 = vmul.f32 %v5284_v57, %v4666_v5 }
0x2913   :  { %v4671_v40 = vmul.f32 %v5284_v57, %v4665_v38  ;;  %v4678_v32 = vadd.f32 %v5285_v34, %v4672_v27 }
0x2915   :  { %v4677_v41 = vadd.f32 %v5285_v34, %v4671_v40 }
0x2917   :  { %6019 = vmatprep.mubr.msk.f32.mxu1 %vm63_vm0, %v4677_v41 }
0x2918   :  { %6020 = vmatmul.mubr.msk.f32.vlgmr.msra.gmra.mxu1 %vm63_vm0, %v4678_v32 }
0x2919   :  { %6042 = vmatpush3.msra.mxu1 %v5297_v13 }
0x291a   :  { %6043 = vmatprep.subr.mxu1 %v5296_v47 }
0x291b   :  { %6044 = vmatpush3.msra.mxu1 %v5296_v47 }
0x291c   :  { %6045 = vmatprep.subr.mxu1 %v5295_v45 }
0x291d   :  { %6046 = vmatpush3.msra.mxu1 %v5295_v45 }
0x291e   :  { %6047 = vmatprep.subr.mxu1 %v5294_v35 }
0x291f   :  { %6048 = vmatpush3.msra.mxu1 %v5294_v35 }
0x29d8   :  { %v6021_v7 = vpop.f32.mrf.mxu1 }
0x29d9   :  { %v4763_v46 = vadd.f32 %v6021_v7, %v5286_v63 }
0x29da   :  { %v4757_v25 = vpop.f32.mrf.mxu1 }
0x29db   :  { %v4758_v9 = vadd.f32 %v5286_v63, %v4757_v25  ;;  %v4767_v19 = vmax.f32 %v4763_v46, 0.0 }
0x29dd   :  { %v4766_v43 = vmax.f32 %v4758_v9, 0.0 }
0x29df   :  { %6038 = vmatprep.mubr.msk.f32.mxu0 %vm785_vm2, %v4766_v43 }
0x29e0   :  { %6039 = vmatmul.mubr.msk.f32.vlgmr.msra.gmra.mxu0 %vm785_vm2, %v4767_v19 }
0x2aa0   :  { %v6040_v11 = vpop.f32.mrf.mxu0 }
0x2aa1   :  { %v4850_v12 = vadd.f32 %v6040_v11, %v5289_v59 }
0x2aa2   :  { %v4844_v54 = vpop.f32.mrf.mxu0 }
0x2aa3   :  { %v4854_v8 = vadd.f32 %v4850_v12, %v4678_v32  ;;  %v4845_v60 = vadd.f32 %v5289_v59, %v4844_v54 }
0x2aa5   :  { %v4853_v24 = vadd.f32 %v4845_v60, %v4677_v41  ;;  %v4860_v55 = vsel %vm63_vm0, %v4854_v8, 0.0 }
0x2aa6   :  { %4861 = vadd.xlane.f32.xlu0 %v4860_v55 }
0x2aa7   :  { %v4857_v26 = vsel %vm63_vm0, %v4853_v24, 0.0 }
0x2aa8   :  { %4858 = vadd.xlane.f32.xlu1 %v4857_v26 }
0x2b2f   :  { %v4862_v56 = vpop.xlane.xlu0 %4861 }
0x2b30   :  { %v4864_v18 = vmul.f32 0.03125, %v4862_v56 }
0x2b31   :  { %v4859_v20 = vpop.xlane.xlu1 %4858 }
0x2b32   :  { %v4866_v29 = vsub.f32 %v4854_v8, %v4864_v18  ;;  %v4863_v31 = vmul.f32 0.03125, %v4859_v20 }
0x2b34   :  { %v4865_v33 = vsub.f32 %v4853_v24, %v4863_v31  ;;  %v4868_v44 = vmul.f32 %v4866_v29, %v4866_v29 }
0x2b36   :  { %v4872_v10 = vsel %vm63_vm0, %v4868_v44, 0.0  ;;  %v4867_v14 = vmul.f32 %v4865_v33, %v4865_v33 }
0x2b37   :  { %4873 = vadd.xlane.f32.xlu0 %v4872_v10 }
0x2b38   :  { %v4869_v48 = vsel %vm63_vm0, %v4867_v14, 0.0 }
0x2b39   :  { %4870 = vadd.xlane.f32.xlu1 %v4869_v48 }
0x2bc0   :  { %v4874_v0 = vpop.xlane.xlu0 %4873 }
0x2bc1   :  { %v4876_v58 = vmul.f32 0.03125, %v4874_v0 }
0x2bc2   :  { %v4871_v61 = vpop.xlane.xlu1 %4870 }
0x2bc3   :  { %v4878_v53 = vadd.f32 1e-05, %v4876_v58  ;;  %v4875_v17 = vmul.f32 0.03125, %v4871_v61 }
0x2bc5   :  { %6284 = vrsqrt.f32 %v4878_v53  ;;  %v4877_v22 = vadd.f32 1e-05, %v4875_v17 }
0x2bc7   :  { %6286 = vrsqrt.f32 %v4877_v22 }
0x2bd2   :  { %v6285_v21 = vpop.eup %6284 }
0x2bd3   :  { %v4882_v52 = vmul.f32 %v6285_v21, %v4866_v29 }
0x2bd4   :  { %v6287_v2 = vpop.eup %6286 }
0x2bd5   :  { %v4881_v4 = vmul.f32 %v6287_v2, %v4865_v33  ;;  %v4888_v1 = vmul.f32 %v5292_v50, %v4882_v52 }
0x2bd7   :  { %v4887_v16 = vmul.f32 %v5292_v50, %v4881_v4  ;;  %v4894_v23 = vadd.f32 %v5293_v49, %v4888_v1 }
0x2bd9   :  { %v4893_v3 = vadd.f32 %v5293_v49, %v4887_v16 }
0x2bdb   :  { %6049 = vmatprep.mubr.msk.f32.mxu1 %vm63_vm0, %v4893_v3 }
0x2bdc   :  { %6050 = vmatmul.mubr.msk.f32.vlgmr.msra.gmra.mxu1 %vm63_vm0, %v4894_v23 }
0x2c9c   :  { %v6051_v62 = vpop.f32.mrf.mxu1 }
0x2c9d   :  { %v4983_v28 = vadd.f32 %v6051_v62, %v5298_v30 }
0x2c9e   :  { %v4977_v6 = vpop.f32.mrf.mxu1 }
0x2c9f   :  { %v4978_v15 = vadd.f32 %v5298_v30, %v4977_v6  ;;  %4988 = vmax.xlane.f32.xlu0 %v4983_v28 }
0x2ca1   :  { %4986 = vmax.xlane.f32.xlu1 %v4978_v15 }
0x2d28   :  { %v4989_v57 = vpop.xlane.xlu0 %4988 }
0x2d29   :  { %v4991_v5 = vsub.f32 %v4983_v28, %v4989_v57 }
0x2d2a   :  { %v4987_v39 = vpop.xlane.xlu1 %4986 }
0x2d2b   :  { %v4994_v38 = vmul.f32 1.442695, %v4991_v5  ;;  %v4990_v27 = vsub.f32 %v4978_v15, %v4987_v39 }
0x2d2d   :  { %6288 = vpow2.f32 %v4994_v38  ;;  %v4992_v34 = vmul.f32 1.442695, %v4990_v27 }
0x2d2f   :  { %6290 = vpow2.f32 %v4992_v34 }
0x2d3a   :  { %v6289_v40 = vpop.eup %6288 }
0x2d3b   :  { %4998 = vadd.xlane.f32.xlu0 %v6289_v40 }
0x2d3c   :  { %v6291_v41 = vpop.eup %6290 }
0x2d3d   :  { %4996 = vadd.xlane.f32.xlu1 %v6291_v41 }
0x2dc4   :  { %v4999_v32 = vpop.xlane.xlu0 %4998 }
0x2dc5   :  { %6292 = vlog2.f32 %v4999_v32 }
0x2dc6   :  { %v4997_v42 = vpop.xlane.xlu1 %4996 }
0x2dc7   :  { %6294 = vlog2.f32 %v4997_v42 }
0x2dd2   :  { %v6293_v51 = vpop.eup %6292 }
0x2dd3   :  { %v5003_v36 = vmul.f32 0.6931472, %v6293_v51 }
0x2dd4   :  { %v6295_v37 = vpop.eup %6294 }
0x2dd5   :  { %v5005_v63 = vadd.f32 %v5003_v36, %v4989_v57  ;;  %v5001_v7 = vmul.f32 0.6931472, %v6295_v37 }
0x2dd7   :  { %v5007_v46 = vsub.f32 %v4983_v28, %v5005_v63  ;;  %v5004_v25 = vadd.f32 %v5001_v7, %v4987_v39 }
0x2dd9   :  { %5009 = vst [vmem:[%s7627_s6 + $0x8] sm:$0xff] %v5007_v46  ;;  %v5006_v9 = vsub.f32 %v4978_v15, %v5004_v25 }
0x2ddb   :  { %5008 = vst [vmem:[%s7627_s6] sm:$0xff] %v5006_v9 }

</bundles_post_ra>
